<compile_context>
chip_gen: v7x
topology: tpu7x:2x2x1
jax: 0.10.0
libtpu: 0.0.40
codegen_flags: <defaults>
</compile_context>

<pallas_src>
import numpy as np
import jax
import jax.numpy as jnp
from jax.experimental import pallas as pl
from jax.experimental.pallas import tpu as pltpu

K = 3                                   # all ConvTranspose kernels are 3x3
REF_PREC = jax.lax.Precision.HIGHEST    # only used by the pure-JAX reference


# ------------------------- the single fused Pallas kernel -------------------------

def _decoder_kernel(x_ref, w1_ref, b1_ref, w2_ref, b2_ref,
                    m1_ref, s1_ref, m2_ref, s2_ref, m3_ref, s3_ref, o_ref):
    # AdaptiveAvgPool2d(1) + Flatten == mean over spatial positions
    h = jnp.mean(x_ref[...], axis=-1)                                   # (B, latent) f32
    # Linear -> ReLU  (tiny, keep f32 operands)
    h = jnp.maximum(
        jnp.dot(h, w1_ref[...], preferred_element_type=jnp.float32) + b1_ref[...], 0.0)
    # Linear -> ReLU  (bf16 operands, f32 accumulation)
    h = jnp.maximum(
        jnp.dot(h.astype(jnp.bfloat16), w2_ref[...],
                preferred_element_type=jnp.float32) + b2_ref[...], 0.0)
    # ConvT(32->16,k3,s2) + BN + ReLU   (BN/bias folded into m1/s1)
    h = jnp.maximum(
        jnp.dot(h.astype(jnp.bfloat16), m1_ref[...],
                preferred_element_type=jnp.float32) + s1_ref[...], 0.0)
    # ConvT(16->8,k3,s2,p1,op1) + BN + ReLU
    h = jnp.maximum(
        jnp.dot(h.astype(jnp.bfloat16), m2_ref[...],
                preferred_element_type=jnp.float32) + s2_ref[...], 0.0)
    # ConvT(8->Cout,k3,s2,p1,op1) + nearest-interp column selection + sigmoid
    o_ref[...] = jax.nn.sigmoid(
        jnp.dot(h.astype(jnp.bfloat16), m3_ref[...],
                preferred_element_type=jnp.float32) + s3_ref[...])


# ------------------------- weight preparation (runs once, outside the kernel) -----

def _deconv_as_dense(wt, Hi, stride, pad, out_pad, in_chan_major):
    """Dense matrix M with  vec(x) @ M == vec_NHWC(ConvTranspose2d(x, wt))  (no bias).

    Rows index the flattened input:  (c, iy, ix) if in_chan_major (NCHW-flatten,
    matches nn.Unflatten), else (iy, ix, c) (NHWC-flatten).
    Columns index the flattened output in NHWC order: (oy, ox, co).
    """
    Cin, Cout, Kh, Kw = wt.shape
    Wi = Hi
    Ho = (Hi - 1) * stride - 2 * pad + Kh + out_pad
    Wo = Ho

    iy, ix, ky, kx = np.meshgrid(np.arange(Hi), np.arange(Wi),
                                 np.arange(Kh), np.arange(Kw), indexing="ij")
    oy = stride * iy - pad + ky
    ox = stride * ix - pad + kx
    valid = (oy >= 0) & (oy < Ho) & (ox >= 0) & (ox < Wo)
    iy, ix, ky, kx, oy, ox = (a[valid] for a in (iy, ix, ky, kx, oy, ox))
    n = iy.shape[0]

    IY, IX = iy[:, None, None], ix[:, None, None]
    KY, KX = ky[:, None, None], kx[:, None, None]
    OY, OX = oy[:, None, None], ox[:, None, None]
    CI = np.arange(Cin)[None, :, None]
    CO = np.arange(Cout)[None, None, :]

    if in_chan_major:
        rows = (CI * Hi + IY) * Wi + IX            # (c, iy, ix) flatten
    else:
        rows = (IY * Wi + IX) * Cin + CI           # (iy, ix, c) flatten
    cols = (OY * Wo + OX) * Cout + CO              # (oy, ox, co) flatten

    shape = (n, Cin, Cout)
    rows = np.broadcast_to(rows, shape).ravel().astype(np.int32)
    cols = np.broadcast_to(cols, shape).ravel().astype(np.int32)
    ci_f = np.broadcast_to(CI, shape).ravel().astype(np.int32)
    co_f = np.broadcast_to(CO, shape).ravel().astype(np.int32)
    ky_f = np.broadcast_to(KY, shape).ravel().astype(np.int32)
    kx_f = np.broadcast_to(KX, shape).ravel().astype(np.int32)

    vals = wt[ci_f, co_f, ky_f, kx_f]              # gather of the real conv weights
    M = jnp.zeros((Hi * Wi * Cin, Ho * Wo * Cout), jnp.float32)
    M = M.at[rows, cols].set(vals)                 # (row, col) pairs are unique
    return M, Ho


def prepare_decoder_params(params, out_size=24, eps=1e-5):
    """Fold ConvTranspose + eval-mode BN + bias + nearest-interp into matmul weights.

    Large matrices are stored bf16 (HBM-bandwidth bound kernel); biases/scales f32.
    """
    # layer 1: ConvT(32->16, k3, s2, p0, op0) + BN + ReLU, input is NCHW-flattened feat
    m1, H1 = _deconv_as_dense(params["wt1"], 3, 2, 0, 0, in_chan_major=True)
    sc1 = params["g1"] / jnp.sqrt(params["v1"] + eps)
    sh1 = sc1 * (params["cb1"] - params["m1"]) + params["be1"]
    m1 = m1 * jnp.tile(sc1, H1 * H1)[None, :]
    s1 = jnp.tile(sh1, H1 * H1)

    # layer 2: ConvT(16->8, k3, s2, p1, op1) + BN + ReLU
    m2, H2 = _deconv_as_dense(params["wt2"], H1, 2, 1, 1, in_chan_major=False)
    sc2 = params["g2"] / jnp.sqrt(params["v2"] + eps)
    sh2 = sc2 * (params["cb2"] - params["m2"]) + params["be2"]
    m2 = m2 * jnp.tile(sc2, H2 * H2)[None, :]
    s2 = jnp.tile(sh2, H2 * H2)

    # layer 3: ConvT(8->Cout, k3, s2, p1, op1), then nearest interpolate to out_size
    Cout = params["wt3"].shape[1]
    m3, H3 = _deconv_as_dense(params["wt3"], H2, 2, 1, 1, in_chan_major=False)
    idx = (np.arange(out_size) * H3) // out_size               # PyTorch 'nearest'
    pos = (idx[:, None] * H3 + idx[None, :]).ravel()           # selected (oy,ox)
    sel = (pos[:, None] * Cout + np.arange(Cout)[None, :]).ravel()
    m3 = m3[:, sel]                                            # lane-dense (., 576*Cout/.. )
    s3 = jnp.tile(params["cb3"], out_size * out_size)

    bf16 = jnp.bfloat16
    return dict(w1=params["w1"].astype(jnp.float32), b1=params["b1"].astype(jnp.float32),
                w2=params["w2"].astype(bf16), b2=params["b2"].astype(jnp.float32),
                m1=m1.astype(bf16), s1=s1.astype(jnp.float32),
                m2=m2.astype(bf16), s2=s2.astype(jnp.float32),
                m3=m3.astype(bf16), s3=s3.astype(jnp.float32),
                out_channels=Cout)


# ------------------------- fused forward -------------------------

def decoder_forward(x, fused, out_size=24):
    # x: (B, latent_dim, H, W) NCHW float32
    B, C = x.shape[0], x.shape[1]
    Cout = int(fused["out_channels"])
    xs = x.reshape(B, C, -1).astype(jnp.float32)
    n_out = out_size * out_size * Cout

    args = [xs,
            fused["w1"], fused["b1"].reshape(1, -1),
            fused["w2"], fused["b2"].reshape(1, -1),
            fused["m1"], fused["s1"].reshape(1, -1),
            fused["m2"], fused["s2"].reshape(1, -1),
            fused["m3"], fused["s3"].reshape(1, -1)]

    # Grid-less pallas_call: every operand is mapped whole into VMEM exactly once
    # (single-buffered — nothing to pipeline), and the kernel body runs once.
    y = pl.pallas_call(
        _decoder_kernel,
        out_shape=jax.ShapeDtypeStruct((B, n_out), jnp.float32),
        compiler_params=pltpu.CompilerParams(
            vmem_limit_bytes=16 * 1024 * 1024),
    )(*args)
    # (B, oy, ox, co) NHWC-flat -> NCHW
    return jnp.transpose(y.reshape(B, out_size, out_size, Cout), (0, 3, 1, 2))


# ------------------------- pure-JAX reference (high precision) -------------------------

def reference_forward(x, params, out_size=24):
    B = x.shape[0]
    eps = 1e-5
    pooled = jnp.mean(x, axis=(2, 3))
    h = jax.nn.relu(jnp.dot(pooled, params["w1"], precision=REF_PREC) + params["b1"])
    feat = jax.nn.relu(jnp.dot(h, params["w2"], precision=REF_PREC) + params["b2"])
    z = feat.reshape(B, 32, 3, 3)

    def deconv(z, wt, b, stride, pad, op):
        w_conv = jnp.transpose(wt[:, :, ::-1, ::-1], (1, 0, 2, 3))
        lo = K - 1 - pad
        y = jax.lax.conv_general_dilated(
            z, w_conv, window_strides=(1, 1),
            padding=[(lo, lo + op), (lo, lo + op)],
            lhs_dilation=(stride, stride),
            dimension_numbers=("NCHW", "OIHW", "NCHW"), precision=REF_PREC)
        return y + b[None, :, None, None]

    def bn(z, g, be, m, v):
        return (g[None, :, None, None] * (z - m[None, :, None, None])
                / jnp.sqrt(v + eps)[None, :, None, None] + be[None, :, None, None])

    z = jax.nn.relu(bn(deconv(z, params["wt1"], params["cb1"], 2, 0, 0),
                       params["g1"], params["be1"], params["m1"], params["v1"]))
    z = jax.nn.relu(bn(deconv(z, params["wt2"], params["cb2"], 2, 1, 1),
                       params["g2"], params["be2"], params["m2"], params["v2"]))
    z = deconv(z, params["wt3"], params["cb3"], 2, 1, 1)
    Hin = z.shape[-1]
    idx = (np.arange(out_size) * Hin) // out_size
    z = z[:, :, idx, :][:, :, :, idx]
    return jax.nn.sigmoid(z)


# ------------------------- main -------------------------

if __name__ == "__main__":
    key = jax.random.PRNGKey(0)
    ks = jax.random.split(key, 20)
    latent_dim, hidden_dim = 4, 128
    nf = (8, 16, 32)
    out_channels, out_size = 1, 24
    unflat = nf[-1] * 3 * 3  # 288

    def rnd(k, shape, scale=0.1):
        return (scale * jax.random.normal(k, shape)).astype(jnp.float32)

    params = dict(
        w1=rnd(ks[0], (latent_dim, hidden_dim)),
        b1=rnd(ks[1], (hidden_dim,)),
        w2=rnd(ks[2], (hidden_dim, unflat)),
        b2=rnd(ks[3], (unflat,)),
        wt1=rnd(ks[4], (nf[2], nf[1], 3, 3)),
        cb1=rnd(ks[5], (nf[1],)),
        g1=(1.0 + rnd(ks[6], (nf[1],))).astype(jnp.float32),
        be1=rnd(ks[7], (nf[1],)),
        m1=rnd(ks[8], (nf[1],)),
        v1=jax.random.uniform(ks[9], (nf[1],), minval=0.5, maxval=1.5).astype(jnp.float32),
        wt2=rnd(ks[10], (nf[1], nf[0], 3, 3)),
        cb2=rnd(ks[11], (nf[0],)),
        g2=(1.0 + rnd(ks[12], (nf[0],))).astype(jnp.float32),
        be2=rnd(ks[13], (nf[0],)),
        m2=rnd(ks[14], (nf[0],)),
        v2=jax.random.uniform(ks[15], (nf[0],), minval=0.5, maxval=1.5).astype(jnp.float32),
        wt3=rnd(ks[16], (nf[0], out_channels, 3, 3)),
        cb3=rnd(ks[17], (out_channels,)),
    )

    # encoder-feature-like input: (batch, latent_dim, h, w)
    x = jax.random.normal(ks[18], (2, latent_dim, 3, 3), dtype=jnp.float32)

    # one-time weight prep (BN fold + conv-transpose -> dense matmul + interp fold, bf16)
    fused = prepare_decoder_params(params, out_size=out_size)

    fwd = jax.jit(lambda xx: decoder_forward(xx, fused, out_size))
    y = jax.block_until_ready(fwd(x))
    assert y.shape == (2, out_channels, out_size, out_size), y.shape

    y_ref = np.asarray(reference_forward(x, params, out_size))
    # bf16 weight storage + bf16 MXU operands (f32 accumulation): slightly looser
    # tolerance than the previous 3e-3 to cover explicit single-pass bf16 rounding.
    np.testing.assert_allclose(np.asarray(y), y_ref, atol=5e-3, rtol=5e-3)
    print("KERNEL_OK")
</pallas_src>

<mosaic_0001>
module attributes {stable_mosaic.version = 11 : i64} {
  func.func @_decoder_kernel(%arg0: memref<2x4x9xf32, #tpu.memory_space<vmem>>, %arg1: memref<4x128xf32, #tpu.memory_space<vmem>>, %arg2: memref<1x128xf32, #tpu.memory_space<vmem>>, %arg3: memref<128x288xbf16, #tpu.memory_space<vmem>>, %arg4: memref<1x288xf32, #tpu.memory_space<vmem>>, %arg5: memref<288x784xbf16, #tpu.memory_space<vmem>>, %arg6: memref<1x784xf32, #tpu.memory_space<vmem>>, %arg7: memref<784x1568xbf16, #tpu.memory_space<vmem>>, %arg8: memref<1x1568xf32, #tpu.memory_space<vmem>>, %arg9: memref<1568x576xbf16, #tpu.memory_space<vmem>>, %arg10: memref<1x576xf32, #tpu.memory_space<vmem>>, %arg11: memref<2x576xf32, #tpu.memory_space<vmem>>) attributes {dimension_semantics = [], scalar_prefetch = 0 : i64, scratch_operands = 0 : i64, tpu.core_type = #tpu.core_type<tc>} {
    %c0 = arith.constant 0 : index
    %c0_0 = arith.constant 0 : index
    %c0_1 = arith.constant 0 : index
    %0 = vector.load %arg0[%c0, %c0_0, %c0_1] : memref<2x4x9xf32, #tpu.memory_space<vmem>>, vector<2x4x9xf32>
    %cst = arith.constant dense<0.000000e+00> : vector<2x4xf32>
    %1 = vector.multi_reduction <add>, %0, %cst [2] : vector<2x4x9xf32> to vector<2x4xf32>
    %cst_2 = arith.constant 9.000000e+00 : f32
    %2 = vector.broadcast %cst_2 : f32 to vector<2x4xf32>
    %3 = arith.divf %1, %2 : vector<2x4xf32>
    %c0_3 = arith.constant 0 : index
    %c0_4 = arith.constant 0 : index
    %4 = vector.load %arg1[%c0_3, %c0_4] : memref<4x128xf32, #tpu.memory_space<vmem>>, vector<4x128xf32>
    %cst_5 = arith.constant dense<0.000000e+00> : vector<2x128xf32>
    %5 = tpu.matmul %3, %4, %cst_5 {dimension_numbers = #tpu.dot_dimension_numbers<[1], [0], [0], [1], [0, 0, 1, 1], [], []>} : vector<2x4xf32>, vector<4x128xf32>, vector<2x128xf32> -> vector<2x128xf32>
    %c0_6 = arith.constant 0 : index
    %c0_7 = arith.constant 0 : index
    %6 = vector.load %arg2[%c0_6, %c0_7] : memref<1x128xf32, #tpu.memory_space<vmem>>, vector<1x128xf32>
    %7 = vector.broadcast %6 : vector<1x128xf32> to vector<2x128xf32>
    %8 = arith.addf %5, %7 : vector<2x128xf32>
    %cst_8 = arith.constant 0.000000e+00 : f32
    %9 = vector.broadcast %cst_8 : f32 to vector<2x128xf32>
    %10 = arith.maximumf %8, %9 : vector<2x128xf32>
    %11 = arith.truncf %10 : vector<2x128xf32> to vector<2x128xbf16>
    %c0_9 = arith.constant 0 : index
    %c0_10 = arith.constant 0 : index
    %12 = vector.load %arg3[%c0_9, %c0_10] : memref<128x288xbf16, #tpu.memory_space<vmem>>, vector<128x288xbf16>
    %cst_11 = arith.constant dense<0.000000e+00> : vector<2x288xf32>
    %13 = tpu.matmul %11, %12, %cst_11 {dimension_numbers = #tpu.dot_dimension_numbers<[1], [0], [0], [1], [0, 0, 1, 1], [], []>} : vector<2x128xbf16>, vector<128x288xbf16>, vector<2x288xf32> -> vector<2x288xf32>
    %c0_12 = arith.constant 0 : index
    %c0_13 = arith.constant 0 : index
    %14 = vector.load %arg4[%c0_12, %c0_13] : memref<1x288xf32, #tpu.memory_space<vmem>>, vector<1x288xf32>
    %15 = vector.broadcast %14 : vector<1x288xf32> to vector<2x288xf32>
    %16 = arith.addf %13, %15 : vector<2x288xf32>
    %cst_14 = arith.constant 0.000000e+00 : f32
    %17 = vector.broadcast %cst_14 : f32 to vector<2x288xf32>
    %18 = arith.maximumf %16, %17 : vector<2x288xf32>
    %19 = arith.truncf %18 : vector<2x288xf32> to vector<2x288xbf16>
    %c0_15 = arith.constant 0 : index
    %c0_16 = arith.constant 0 : index
    %20 = vector.load %arg5[%c0_15, %c0_16] : memref<288x784xbf16, #tpu.memory_space<vmem>>, vector<288x784xbf16>
    %cst_17 = arith.constant dense<0.000000e+00> : vector<2x784xf32>
    %21 = tpu.matmul %19, %20, %cst_17 {dimension_numbers = #tpu.dot_dimension_numbers<[1], [0], [0], [1], [0, 0, 1, 1], [], []>} : vector<2x288xbf16>, vector<288x784xbf16>, vector<2x784xf32> -> vector<2x784xf32>
    %c0_18 = arith.constant 0 : index
    %c0_19 = arith.constant 0 : index
    %22 = vector.load %arg6[%c0_18, %c0_19] : memref<1x784xf32, #tpu.memory_space<vmem>>, vector<1x784xf32>
    %23 = vector.broadcast %22 : vector<1x784xf32> to vector<2x784xf32>
    %24 = arith.addf %21, %23 : vector<2x784xf32>
    %cst_20 = arith.constant 0.000000e+00 : f32
    %25 = vector.broadcast %cst_20 : f32 to vector<2x784xf32>
    %26 = arith.maximumf %24, %25 : vector<2x784xf32>
    %27 = arith.truncf %26 : vector<2x784xf32> to vector<2x784xbf16>
    %c0_21 = arith.constant 0 : index
    %c0_22 = arith.constant 0 : index
    %28 = vector.load %arg7[%c0_21, %c0_22] : memref<784x1568xbf16, #tpu.memory_space<vmem>>, vector<784x1568xbf16>
    %cst_23 = arith.constant dense<0.000000e+00> : vector<2x1568xf32>
    %29 = tpu.matmul %27, %28, %cst_23 {dimension_numbers = #tpu.dot_dimension_numbers<[1], [0], [0], [1], [0, 0, 1, 1], [], []>} : vector<2x784xbf16>, vector<784x1568xbf16>, vector<2x1568xf32> -> vector<2x1568xf32>
    %c0_24 = arith.constant 0 : index
    %c0_25 = arith.constant 0 : index
    %30 = vector.load %arg8[%c0_24, %c0_25] : memref<1x1568xf32, #tpu.memory_space<vmem>>, vector<1x1568xf32>
    %31 = vector.broadcast %30 : vector<1x1568xf32> to vector<2x1568xf32>
    %32 = arith.addf %29, %31 : vector<2x1568xf32>
    %cst_26 = arith.constant 0.000000e+00 : f32
    %33 = vector.broadcast %cst_26 : f32 to vector<2x1568xf32>
    %34 = arith.maximumf %32, %33 : vector<2x1568xf32>
    %35 = arith.truncf %34 : vector<2x1568xf32> to vector<2x1568xbf16>
    %c0_27 = arith.constant 0 : index
    %c0_28 = arith.constant 0 : index
    %36 = vector.load %arg9[%c0_27, %c0_28] : memref<1568x576xbf16, #tpu.memory_space<vmem>>, vector<1568x576xbf16>
    %cst_29 = arith.constant dense<0.000000e+00> : vector<2x576xf32>
    %37 = tpu.matmul %35, %36, %cst_29 {dimension_numbers = #tpu.dot_dimension_numbers<[1], [0], [0], [1], [0, 0, 1, 1], [], []>} : vector<2x1568xbf16>, vector<1568x576xbf16>, vector<2x576xf32> -> vector<2x576xf32>
    %c0_30 = arith.constant 0 : index
    %c0_31 = arith.constant 0 : index
    %38 = vector.load %arg10[%c0_30, %c0_31] : memref<1x576xf32, #tpu.memory_space<vmem>>, vector<1x576xf32>
    %39 = vector.broadcast %38 : vector<1x576xf32> to vector<2x576xf32>
    %40 = arith.addf %37, %39 : vector<2x576xf32>
    %41 = arith.negf %40 : vector<2x576xf32>
    %42 = math.exp %41 : vector<2x576xf32>
    %cst_32 = arith.constant 1.000000e+00 : f32
    %43 = vector.broadcast %cst_32 : f32 to vector<2x576xf32>
    %44 = arith.addf %43, %42 : vector<2x576xf32>
    %45 = arith.divf %43, %44 : vector<2x576xf32>
    %c0_33 = arith.constant 0 : index
    %c0_34 = arith.constant 0 : index
    %46 = vector.load %arg11[%c0_33, %c0_34] : memref<2x576xf32, #tpu.memory_space<vmem>>, vector<2x576xf32>
    tpu.vector_store %arg11[%c0_33, %c0_34], %45 {strides = array<i32>} : memref<2x576xf32, #tpu.memory_space<vmem>>, vector<2x576xf32>,
    return
  }
}

</mosaic_0001>

<bundles_post_ra>
// kernel: _lambda_.1
= control target key start
LH: loop header
LB: loop body
LE: loop exit
PB: predicated region body
PF: predicated region fallthrough
CT: control target
= control target key end

     0   :  { %vm41_vm0 = vcmask 68608   ;;  %vm76_vm1 = vcmask 1043456   ;;  %v14433_v4 = vmov 0.0   ;;  %vm14434_vm2 = vmmov 0   ;;  %s18696_s0 = inlined_call_operand.vmem [shape: f32[2,4,9], index: 0, kind: input, shape index: {}]   ;;  %s18697_s1 = inlined_call_operand.vmem [shape: f32[4,128], index: 1, kind: input, shape index: {}]   ;;  %s18698_s3 = inlined_call_operand.vmem [shape: bf16[128,288], index: 3, kind: input, shape index: {}]   ;;  %s18699_s5 = inlined_call_operand.vmem [shape: bf16[288,784], index: 5, kind: input, shape index: {}]   ;;  %s18700_s2 = inlined_call_operand.vmem [shape: f32[1,128], index: 2, kind: input, shape index: {}]   ;;  %s18701_s7 = inlined_call_operand.vmem [shape: bf16[784,1568], index: 7, kind: input, shape index: {}]   ;;  %s18702_s4 = inlined_call_operand.vmem [shape: f32[1,288], index: 4, kind: input, shape index: {}]   ;;  %s18703_s6 = inlined_call_operand.vmem [shape: f32[1,784], index: 6, kind: input, shape index: {}]   ;;  %s18704_s9 = inlined_call_operand.vmem [shape: bf16[1568,576], index: 9, kind: input, shape index: {}]   ;;  %s18705_s8 = inlined_call_operand.vmem [shape: f32[1,1568], index: 8, kind: input, shape index: {}]   ;;  %s18706_s10 = inlined_call_operand.vmem [shape: f32[1,576], index: 10, kind: input, shape index: {}]   ;;  %s18707_s11 = inlined_call_operand.vmem [shape: f32[2,576], index: 11, kind: output, shape index: {}]  }
   0x1   :  { %v39_v0 = vld [vmem:[%s18696_s0] sm:$0xf]  ;;  %v40_v1 = vld [vmem:[%s18696_s0 + $0x4] sm:$0xf]  ;;  %12378 = vmatprep.subr.mxu0 %v14433_v4  ;;  %12380 = vmatprep.mubr.msk.f32.mxu0 %vm14434_vm2, %v14433_v4  ;;  %v12587_v8 = vld [vmem:[%s18698_s3 + $0x1c] ss:$12 sps:$4 sm:$0xff]   ;;  %v61_v19 = vlaneseq }
   0x2   :  { %v42_v2 = vsel %vm41_vm0, %v39_v0, 0.0  ;;  %v45_v3 = vsel %vm41_vm0, %v40_v1, 0.0  ;;  %v51_v5 = vld [vmem:[%s18697_s1] sm:$0xf]  ;;  %v12583_v6 = vld [vmem:[%s18698_s3 + $0x4] ss:$12 sps:$4 sm:$0xff]  }
   0x3   :  { %43 = vadd.xlane.f32.xlu0 %v42_v2  ;;  %12379 = vmatpush3.msk.msra.mxu0 %vm76_vm1, %v51_v5  ;;  %v12585_v7 = vld [vmem:[%s18698_s3] ss:$12 sps:$4 sm:$0xff]   ;;  %v12589_v9 = vld [vmem:[%s18698_s3 + $0x18] ss:$12 sps:$4 sm:$0xff]   ;;  %v12593_v11 = vld [vmem:[%s18698_s3 + $0x30] ss:$12 sps:$4 sm:$0xff]  }
   0x4   :  { %12383 = vmatprep.subr.bf16.mxu0 %v14433_v4  ;;  %329 = vmatprep.subr.bf16.mxu1 %v12583_v6  ;;  %v12591_v10 = vld [vmem:[%s18698_s3 + $0x34] ss:$12 sps:$4 sm:$0xff]   ;;  %v12595_v12 = vld [vmem:[%s18698_s3 + $0x4c] ss:$12 sps:$4 sm:$0xff]   ;;  %v12599_v14 = vld [vmem:[%s18698_s3 + $0x64] ss:$12 sps:$4 sm:$0xff]  }
   0x5   :  { %330 = vmatpush1.bf16.msra.mxu1 %v12585_v7  ;;  %v12597_v13 = vld [vmem:[%s18698_s3 + $0x48] ss:$12 sps:$4 sm:$0xff]   ;;  %v12601_v15 = vld [vmem:[%s18698_s3 + $0x60] ss:$12 sps:$4 sm:$0xff]   ;;  %v12605_v17 = vld [vmem:[%s18698_s3 + $0x78] ss:$12 sps:$4 sm:$0xff]  }
   0x6   :  { %331 = vmatprep.subr.bf16.mxu1 %v12587_v8  ;;  %v12603_v16 = vld [vmem:[%s18698_s3 + $0x7c] ss:$12 sps:$4 sm:$0xff]   ;;  %v12607_v18 = vld [vmem:[%s18698_s3 + $0x94] ss:$12 sps:$4 sm:$0xff]   ;;  %v62_v20 = vand.u32 127, %v61_v19  ;;  %v14549_v21 = vshrl.u32 %v61_v19, 7 }
   0x7   :  { %46 = vadd.xlane.f32.xlu0 %v45_v3  ;;  %vm71_vm3 = vcmask 1041409   ;;  %vm73_vm4 = vcmask 31744   ;;  %v12586_v29 = vld [vmem:[%s18698_s3 + $0x8] ss:$12 sps:$4 sm:$0xff]   ;;  %v12590_v31 = vld [vmem:[%s18698_s3 + $0x20] ss:$12 sps:$4 sm:$0xff]  }
   0x8   :  { %v65_v23 = vsub.s32 %v62_v20, %v14549_v21  ;;  %v12594_v32 = vld [vmem:[%s18698_s3 + $0x38] ss:$12 sps:$4 sm:$0xff]   ;;  %v12598_v33 = vld [vmem:[%s18698_s3 + $0x50] ss:$12 sps:$4 sm:$0xff]   ;;  %v12602_v34 = vld [vmem:[%s18698_s3 + $0x68] ss:$12 sps:$4 sm:$0xff]  }
   0x9   :  { %332 = vmatpush1.bf16.msra.mxu1 %v12589_v9  ;;  %v12606_v35 = vld [vmem:[%s18698_s3 + $0x80] ss:$12 sps:$4 sm:$0xff]   ;;  %v12609_v36 = vld [vmem:[%s18698_s3 + $0x90] ss:$12 sps:$4 sm:$0xff]   ;;  %v12610_v37 = vld [vmem:[%s18698_s3 + $0x98] ss:$12 sps:$4 sm:$0xff]  }
   0xa   :  { %333 = vmatprep.subr.bf16.mxu1 %v12591_v10  ;;  %v12611_v38 = vld [vmem:[%s18698_s3 + $0xac] ss:$12 sps:$4 sm:$0xff]   ;;  %v12613_v39 = vld [vmem:[%s18698_s3 + $0xa8] ss:$12 sps:$4 sm:$0xff]   ;;  %v12614_v40 = vld [vmem:[%s18698_s3 + $0xb0] ss:$12 sps:$4 sm:$0xff]  }
   0xb   :  { %v14435_v41 = vmov 0   ;;  %v12617_v42 = vld [vmem:[%s18699_s5 + $0x4] ss:$28 sps:$4 sm:$0xff]   ;;  %v12620_v43 = vld [vmem:[%s18699_s5 + $0xc] ss:$28 sps:$4 sm:$0xff]   ;;  %vm1245_vm5 = vcmask 261120  }
   0xc   :  { %361 = vmatprep.mubr.bf16.mxu1 %v14435_v41  ;;  %v10840_v44 = vld [vmem:[%s18700_s2] ss:$0 sm:$0xff]  ;;  %v12618_v50 = vld [vmem:[%s18699_s5 + $0x8] ss:$28 sps:$4 sm:$0xff]   ;;  %v12623_v52 = vld [vmem:[%s18699_s5 + $0x3c] ss:$28 sps:$4 sm:$0xff]  }
   0xd   :  { %334 = vmatpush1.bf16.msra.mxu1 %v12593_v11  ;;  %v12615_v49 = vld [vmem:[%s18699_s5] ss:$28 sps:$4 sm:$0xff]   ;;  %v12621_v54 = vld [vmem:[%s18699_s5 + $0x38] ss:$28 sps:$4 sm:$0xff]   ;;  %v12627_v58 = vld [vmem:[%s18699_s5 + $0x70] ss:$28 sps:$4 sm:$0xff]  }
   0xe   :  { %335 = vmatprep.subr.bf16.mxu1 %v12595_v12  ;;  %v12626_v53 = vld [vmem:[%s18699_s5 + $0x44] ss:$28 sps:$4 sm:$0xff]   ;;  %v12629_v56 = vld [vmem:[%s18699_s5 + $0x74] ss:$28 sps:$4 sm:$0xff]   ;;  %v12632_v57 = vld [vmem:[%s18699_s5 + $0x7c] ss:$28 sps:$4 sm:$0xff]  }
   0xf   :  { %v12624_v55 = vld [vmem:[%s18699_s5 + $0x40] ss:$28 sps:$4 sm:$0xff]   ;;  %v12630_v59 = vld [vmem:[%s18699_s5 + $0x78] ss:$28 sps:$4 sm:$0xff]   ;;  %v12635_v60 = vld [vmem:[%s18699_s5 + $0xac] ss:$28 sps:$4 sm:$0xff]  }
  0x10   :  { %v12638_v61 = vld [vmem:[%s18699_s5 + $0xb4] ss:$28 sps:$4 sm:$0xff]   ;;  %v12633_v62 = vld [vmem:[%s18699_s5 + $0xa8] ss:$28 sps:$4 sm:$0xff]   ;;  %v12639_v2 = vld [vmem:[%s18699_s5 + $0xe0] ss:$28 sps:$4 sm:$0xff]  }
  0x11   :  { %336 = vmatpush1.bf16.msra.mxu1 %v12597_v13  ;;  %v12636_v63 = vld [vmem:[%s18699_s5 + $0xb0] ss:$28 sps:$4 sm:$0xff]   ;;  %v12641_v0 = vld [vmem:[%s18699_s5 + $0xe4] ss:$28 sps:$4 sm:$0xff]   ;;  %v12647_v5 = vld [vmem:[%s18699_s5 + $0x11c] ss:$28 sps:$4 sm:$0xff]  }
  0x12   :  { %337 = vmatprep.subr.bf16.mxu1 %v12599_v14  ;;  %v12644_v1 = vld [vmem:[%s18699_s5 + $0xec] ss:$28 sps:$4 sm:$0xff]   ;;  %v12650_v6 = vld [vmem:[%s18699_s5 + $0x124] ss:$28 sps:$4 sm:$0xff]   ;;  %v12645_v7 = vld [vmem:[%s18699_s5 + $0x118] ss:$28 sps:$4 sm:$0xff]  }
  0x13   :  { %v12642_v3 = vld [vmem:[%s18699_s5 + $0xe8] ss:$28 sps:$4 sm:$0xff]   ;;  %v12648_v8 = vld [vmem:[%s18699_s5 + $0x120] ss:$28 sps:$4 sm:$0xff]   ;;  %v12653_v9 = vld [vmem:[%s18699_s5 + $0x154] ss:$28 sps:$4 sm:$0xff]  }
  0x14   :  { %v12656_v10 = vld [vmem:[%s18699_s5 + $0x15c] ss:$28 sps:$4 sm:$0xff]   ;;  %v12651_v11 = vld [vmem:[%s18699_s5 + $0x150] ss:$28 sps:$4 sm:$0xff]   ;;  %v12666_v20 = vld [vmem:[%s18699_s5 + $0x1c8] ss:$28 sps:$4 sm:$0xff]  }
  0x15   :  { %338 = vmatpush1.bf16.msra.mxu1 %v12601_v15  ;;  %v12654_v12 = vld [vmem:[%s18699_s5 + $0x158] ss:$28 sps:$4 sm:$0xff]   ;;  %v12659_v13 = vld [vmem:[%s18699_s5 + $0x18c] ss:$28 sps:$4 sm:$0xff]   ;;  %v12663_v19 = vld [vmem:[%s18699_s5 + $0x1c0] ss:$28 sps:$4 sm:$0xff]  }
  0x16   :  { %339 = vmatprep.subr.bf16.mxu1 %v12603_v16  ;;  %v12662_v14 = vld [vmem:[%s18699_s5 + $0x194] ss:$28 sps:$4 sm:$0xff]   ;;  %v12657_v15 = vld [vmem:[%s18699_s5 + $0x188] ss:$28 sps:$4 sm:$0xff]   ;;  %vm5578_vm6 = vcmask 130048   ;;  %vm10834_vm7 = vcmask 517120  }
  0x17   :  { %v12660_v16 = vld [vmem:[%s18699_s5 + $0x190] ss:$28 sps:$4 sm:$0xff]  }
  0x19   :  { %340 = vmatpush1.bf16.msra.mxu1 %v12605_v17  ;;  %v12665_v17 = vld [vmem:[%s18699_s5 + $0x1c4] ss:$28 sps:$4 sm:$0xff]  }
  0x1a   :  { %341 = vmatprep.subr.bf16.mxu1 %v12607_v18  ;;  %v12668_v18 = vld [vmem:[%s18699_s5 + $0x1cc] ss:$28 sps:$4 sm:$0xff]  }
  0x1d   :  { %342 = vmatpush1.bf16.msra.mxu1 %v12609_v36  ;;  %v12687_v36 = vld [vmem:[%s18699_s5 + $0x2a0] ss:$28 sps:$4 sm:$0xff]  }
  0x1e   :  { %343 = vmatprep.subr.bf16.mxu1 %v12611_v38  ;;  %v12695_v38 = vld [vmem:[%s18699_s5 + $0x2dc] ss:$28 sps:$4 sm:$0xff]  }
  0x21   :  { %344 = vmatpush1.bf16.msra.mxu1 %v12613_v39  ;;  %v12698_v39 = vld [vmem:[%s18699_s5 + $0x2e4] ss:$28 sps:$4 sm:$0xff]  }
  0x22   :  { %1249 = vmatprep.subr.bf16.mxu1 %v12617_v42  ;;  %v12696_v42 = vld [vmem:[%s18699_s5 + $0x2e0] ss:$28 sps:$4 sm:$0xff]  }
  0x90   :  { %v44_v22 = vpop.xlane.xlu0 %43 }
  0x91   :  { %v49_v24 = vmul.f32 0.11111111, %v44_v22  ;;  %v12671_v22 = vld [vmem:[%s18699_s5 + $0x1fc] ss:$28 sps:$4 sm:$0xff]  }
  0x93   :  { %v66_v27 = vrot.slane %v49_v24, %v65_v23  ;;  %v12669_v24 = vld [vmem:[%s18699_s5 + $0x1f8] ss:$28 sps:$4 sm:$0xff]  }
  0x94   :  { %v47_v25 = vpop.xlane.xlu0 %46 }
  0x95   :  { %v50_v26 = vmul.f32 0.11111111, %v47_v25  ;;  %v12672_v25 = vld [vmem:[%s18699_s5 + $0x200] ss:$28 sps:$4 sm:$0xff]  }
  0x97   :  { %v70_v28 = vrot.slane %v50_v26, %v65_v23  ;;  %v12674_v23 = vld [vmem:[%s18699_s5 + $0x204] ss:$28 sps:$4 sm:$0xff]   ;;  %v12677_v26 = vld [vmem:[%s18699_s5 + $0x234] ss:$28 sps:$4 sm:$0xff]  }
  0x99   :  { %v72_v30 = vsel %vm71_vm3, %v70_v28, %v66_v27  ;;  %v12680_v27 = vld [vmem:[%s18699_s5 + $0x23c] ss:$28 sps:$4 sm:$0xff]   ;;  %v12675_v28 = vld [vmem:[%s18699_s5 + $0x230] ss:$28 sps:$4 sm:$0xff]  }
  0x9a   :  { %12381 = vmatmul.mubr.msk.f32.vlgmr.msra.gmra.mrb[0].mxu0 %vm73_vm4, %v72_v30  ;;  %v12683_v30 = vld [vmem:[%s18699_s5 + $0x26c] ss:$28 sps:$4 sm:$0xff]  }
  0x9b   :  { %12384 = vmatpush3.bf16.msra.mxu0 %v12586_v29  ;;  %12399 = vmatprep.mubr.msk.bf16.mxu0 %vm14434_vm2, %v14433_v4  ;;  %v12678_v29 = vld [vmem:[%s18699_s5 + $0x238] ss:$28 sps:$4 sm:$0xff]  }
  0x9c   :  { %12385 = vmatprep.subr.bf16.mxu0 %v14433_v4 }
  0x9f   :  { %12386 = vmatpush3.bf16.msra.mxu0 %v12590_v31  ;;  %v12686_v31 = vld [vmem:[%s18699_s5 + $0x274] ss:$28 sps:$4 sm:$0xff]  }
  0xa0   :  { %12387 = vmatprep.subr.bf16.mxu0 %v14433_v4 }
  0xa3   :  { %12388 = vmatpush3.bf16.msra.mxu0 %v12594_v32  ;;  %v12681_v32 = vld [vmem:[%s18699_s5 + $0x268] ss:$28 sps:$4 sm:$0xff]  }
  0xa4   :  { %12389 = vmatprep.subr.bf16.mxu0 %v14433_v4 }
  0xa7   :  { %12390 = vmatpush3.bf16.msra.mxu0 %v12598_v33  ;;  %v12684_v33 = vld [vmem:[%s18699_s5 + $0x270] ss:$28 sps:$4 sm:$0xff]  }
  0xa8   :  { %12391 = vmatprep.subr.bf16.mxu0 %v14433_v4 }
  0xab   :  { %12392 = vmatpush3.bf16.msra.mxu0 %v12602_v34  ;;  %v12689_v34 = vld [vmem:[%s18699_s5 + $0x2a4] ss:$28 sps:$4 sm:$0xff]  }
  0xac   :  { %12393 = vmatprep.subr.bf16.mxu0 %v14433_v4 }
  0xaf   :  { %12394 = vmatpush3.bf16.msra.mxu0 %v12606_v35  ;;  %v12692_v35 = vld [vmem:[%s18699_s5 + $0x2ac] ss:$28 sps:$4 sm:$0xff]  }
  0xb0   :  { %12395 = vmatprep.subr.bf16.mxu0 %v14433_v4 }
  0xb3   :  { %12396 = vmatpush3.bf16.msra.mxu0 %v12610_v37  ;;  %v12690_v37 = vld [vmem:[%s18699_s5 + $0x2a8] ss:$28 sps:$4 sm:$0xff]  }
  0xb4   :  { %12397 = vmatprep.subr.bf16.mxu0 %v14433_v4 }
  0xb7   :  { %12398 = vmatpush3.bf16.msra.mxu0 %v12614_v40  ;;  %v12693_v40 = vld [vmem:[%s18699_s5 + $0x2d8] ss:$28 sps:$4 sm:$0xff]  }
  0xb8   :  { %1331 = vmatprep.subr.bf16.mxu0 %v12620_v43  ;;  %v12701_v43 = vld [vmem:[%s18699_s5 + $0x314] ss:$28 sps:$4 sm:$0xff]  }
 0x16d   :  { %v146_v45 = vpop.f32.mrb[0].mxu0 }
 0x16e   :  { %v147_v46 = vadd.f32 %v10840_v44, %v146_v45  ;;  %v12382_v47 = vpop.f32.mrb[1].mxu0  ;;  %v12704_v44 = vld [vmem:[%s18699_s5 + $0x31c] ss:$28 sps:$4 sm:$0xff]   ;;  %v12699_v45 = vld [vmem:[%s18699_s5 + $0x310] ss:$28 sps:$4 sm:$0xff]  }
 0x16f   :  { %v12707_v47 = vld [vmem:[%s18699_s5 + $0x34c] ss:$28 sps:$4 sm:$0xff]  }
 0x170   :  { %v150_v48 = vmax.f32 %v147_v46, 0.0  ;;  %v12702_v46 = vld [vmem:[%s18699_s5 + $0x318] ss:$28 sps:$4 sm:$0xff]  }
 0x172   :  { %v151_v51 = vpack.c.bf16 %v150_v48, %v150_v48  ;;  %v12710_v48 = vld [vmem:[%s18699_s5 + $0x354] ss:$28 sps:$4 sm:$0xff]  }
 0x174   :  { %362 = vmatmul.mubr.bf16.vlgmr.msra.gmra.mrb[0].mxu1 %v151_v51  ;;  %12400 = vmatmul.mubr.bf16.vlgmr.msra.gmra.mrb[4].mxu0 %v151_v51  ;;  %v12713_v51 = vld [vmem:[%s18699_s5 + $0x384] ss:$28 sps:$4 sm:$0xff]  }
 0x175   :  { %1250 = vmatpush1.bf16.msra.mxu1 %v12615_v49  ;;  %1332 = vmatpush1.bf16.msra.mxu0 %v12618_v50  ;;  %v12705_v49 = vld [vmem:[%s18699_s5 + $0x348] ss:$28 sps:$4 sm:$0xff]   ;;  %v12708_v50 = vld [vmem:[%s18699_s5 + $0x350] ss:$28 sps:$4 sm:$0xff]  }
 0x176   :  { %1251 = vmatprep.subr.bf16.mxu1 %v12623_v52  ;;  %1333 = vmatprep.subr.bf16.mxu0 %v12626_v53  ;;  %v12716_v52 = vld [vmem:[%s18699_s5 + $0x38c] ss:$28 sps:$4 sm:$0xff]   ;;  %v14797_v53 = vsub.s32 0, %v14549_v21 }
 0x179   :  { %1252 = vmatpush1.bf16.msra.mxu1 %v12621_v54  ;;  %1334 = vmatpush1.bf16.msra.mxu0 %v12624_v55  ;;  %v184_v54 = vld [vmem:[%s18702_s4] sm:$0x7]  ;;  %v14803_v55 = vsub.s32 1, %v14549_v21 }
 0x17a   :  { %1253 = vmatprep.subr.bf16.mxu1 %v12629_v56  ;;  %1335 = vmatprep.subr.bf16.mxu0 %v12632_v57  ;;  %v189_v56 = vrot.slane %v184_v54, %v14797_v53 }
 0x17b   :  { %v193_v57 = vrot.slane %v184_v54, %v14803_v55 }
 0x17d   :  { %1254 = vmatpush1.bf16.msra.mxu1 %v12627_v58  ;;  %1336 = vmatpush1.bf16.msra.mxu0 %v12630_v59 }
 0x17e   :  { %1255 = vmatprep.subr.bf16.mxu1 %v12635_v60  ;;  %1337 = vmatprep.subr.bf16.mxu0 %v12638_v61 }
 0x181   :  { %1256 = vmatpush1.bf16.msra.mxu1 %v12633_v62  ;;  %1338 = vmatpush1.bf16.msra.mxu0 %v12636_v63 }
 0x182   :  { %1257 = vmatprep.subr.bf16.mxu1 %v12641_v0  ;;  %1339 = vmatprep.subr.bf16.mxu0 %v12644_v1 }
 0x185   :  { %1258 = vmatpush1.bf16.msra.mxu1 %v12639_v2  ;;  %1340 = vmatpush1.bf16.msra.mxu0 %v12642_v3  ;;  %v14808_v3 = vsub.s32 2, %v14549_v21 }
 0x186   :  { %1259 = vmatprep.subr.bf16.mxu1 %v12647_v5  ;;  %1341 = vmatprep.subr.bf16.mxu0 %v12650_v6 }
 0x189   :  { %1260 = vmatpush1.bf16.msra.mxu1 %v12645_v7  ;;  %1342 = vmatpush1.bf16.msra.mxu0 %v12648_v8 }
 0x18a   :  { %1261 = vmatprep.subr.bf16.mxu1 %v12653_v9  ;;  %1343 = vmatprep.subr.bf16.mxu0 %v12656_v10  ;;  %v12711_v9 = vld [vmem:[%s18699_s5 + $0x380] ss:$28 sps:$4 sm:$0xff]   ;;  %v12714_v10 = vld [vmem:[%s18699_s5 + $0x388] ss:$28 sps:$4 sm:$0xff]  }
 0x18d   :  { %1262 = vmatpush1.bf16.msra.mxu1 %v12651_v11  ;;  %1344 = vmatpush1.bf16.msra.mxu0 %v12654_v12  ;;  %v12719_v11 = vld [vmem:[%s18699_s5 + $0x3bc] ss:$28 sps:$4 sm:$0xff]  }
 0x18e   :  { %1263 = vmatprep.subr.bf16.mxu1 %v12659_v13  ;;  %1345 = vmatprep.subr.bf16.mxu0 %v12662_v14  ;;  %v197_v13 = vrot.slane %v184_v54, %v14808_v3  ;;  %v12722_v14 = vld [vmem:[%s18699_s5 + $0x3c4] ss:$28 sps:$4 sm:$0xff]  }
 0x18f   :  { %v12762_v54 = vld [vmem:[%s18699_s5 + $0x1a0] ss:$28 sps:$4 sm:$0xff]  }
 0x191   :  { %1264 = vmatpush1.bf16.msra.mxu1 %v12657_v15  ;;  %1346 = vmatpush1.bf16.msra.mxu0 %v12660_v16  ;;  %v12717_v15 = vld [vmem:[%s18699_s5 + $0x3b8] ss:$28 sps:$4 sm:$0xff]   ;;  %v12720_v16 = vld [vmem:[%s18699_s5 + $0x3c0] ss:$28 sps:$4 sm:$0xff]  }
 0x192   :  { %1265 = vmatprep.subr.bf16.mxu1 %v12665_v17  ;;  %1347 = vmatprep.subr.bf16.mxu0 %v12668_v18  ;;  %v12725_v17 = vld [vmem:[%s18699_s5 + $0x14] ss:$28 sps:$4 sm:$0xff]  }
 0x195   :  { %1266 = vmatpush1.bf16.msra.mxu1 %v12663_v19  ;;  %1348 = vmatpush1.bf16.msra.mxu0 %v12666_v20  ;;  %v12726_v19 = vld [vmem:[%s18699_s5 + $0x1d8] ss:$28 sps:$4 sm:$0xff]  }
 0x196   :  { %1267 = vmatprep.subr.bf16.mxu1 %v12671_v22  ;;  %1349 = vmatprep.subr.bf16.mxu0 %v12674_v23  ;;  %v12723_v22 = vld [vmem:[%s18699_s5 + $0x10] ss:$28 sps:$4 sm:$0xff]   ;;  %v12727_v23 = vld [vmem:[%s18699_s5 + $0x18] ss:$28 sps:$4 sm:$0xff]  }
 0x199   :  { %1268 = vmatpush1.bf16.msra.mxu1 %v12669_v24  ;;  %1350 = vmatpush1.bf16.msra.mxu0 %v12672_v25  ;;  %v12730_v24 = vld [vmem:[%s18699_s5 + $0x4c] ss:$28 sps:$4 sm:$0xff]  }
 0x19a   :  { %1269 = vmatprep.subr.bf16.mxu1 %v12677_v26  ;;  %1351 = vmatprep.subr.bf16.mxu0 %v12680_v27  ;;  %v12731_v26 = vld [vmem:[%s18699_s5 + $0x210] ss:$28 sps:$4 sm:$0xff]   ;;  %v12728_v27 = vld [vmem:[%s18699_s5 + $0x48] ss:$28 sps:$4 sm:$0xff]  }
 0x19d   :  { %1270 = vmatpush1.bf16.msra.mxu1 %v12675_v28  ;;  %1352 = vmatpush1.bf16.msra.mxu0 %v12678_v29  ;;  %v12732_v28 = vld [vmem:[%s18699_s5 + $0x50] ss:$28 sps:$4 sm:$0xff]   ;;  %v12735_v29 = vld [vmem:[%s18699_s5 + $0x84] ss:$28 sps:$4 sm:$0xff]  }
 0x19e   :  { %1271 = vmatprep.subr.bf16.mxu1 %v12683_v30  ;;  %1353 = vmatprep.subr.bf16.mxu0 %v12686_v31  ;;  %v12736_v30 = vld [vmem:[%s18699_s5 + $0x248] ss:$28 sps:$4 sm:$0xff]   ;;  %v12733_v31 = vld [vmem:[%s18699_s5 + $0x80] ss:$28 sps:$4 sm:$0xff]  }
 0x1a1   :  { %1272 = vmatpush1.bf16.msra.mxu1 %v12681_v32  ;;  %1354 = vmatpush1.bf16.msra.mxu0 %v12684_v33  ;;  %v12737_v32 = vld [vmem:[%s18699_s5 + $0x88] ss:$28 sps:$4 sm:$0xff]   ;;  %v12740_v33 = vld [vmem:[%s18699_s5 + $0xbc] ss:$28 sps:$4 sm:$0xff]  }
 0x1a2   :  { %1273 = vmatprep.subr.bf16.mxu1 %v12689_v34  ;;  %1355 = vmatprep.subr.bf16.mxu0 %v12692_v35  ;;  %v12741_v34 = vld [vmem:[%s18699_s5 + $0x280] ss:$28 sps:$4 sm:$0xff]   ;;  %v12738_v35 = vld [vmem:[%s18699_s5 + $0xb8] ss:$28 sps:$4 sm:$0xff]  }
 0x1a5   :  { %1274 = vmatpush1.bf16.msra.mxu1 %v12687_v36  ;;  %1356 = vmatpush1.bf16.msra.mxu0 %v12690_v37  ;;  %v12742_v36 = vld [vmem:[%s18699_s5 + $0xc0] ss:$28 sps:$4 sm:$0xff]   ;;  %v12745_v37 = vld [vmem:[%s18699_s5 + $0xf4] ss:$28 sps:$4 sm:$0xff]  }
 0x1a6   :  { %1275 = vmatprep.subr.bf16.mxu1 %v12695_v38  ;;  %1357 = vmatprep.subr.bf16.mxu0 %v12698_v39  ;;  %v12746_v38 = vld [vmem:[%s18699_s5 + $0x2b8] ss:$28 sps:$4 sm:$0xff]   ;;  %v12743_v39 = vld [vmem:[%s18699_s5 + $0xf0] ss:$28 sps:$4 sm:$0xff]  }
 0x1a9   :  { %1276 = vmatpush1.bf16.msra.mxu1 %v12693_v40  ;;  %1358 = vmatpush1.bf16.msra.mxu0 %v12696_v42  ;;  %v12747_v40 = vld [vmem:[%s18699_s5 + $0xf8] ss:$28 sps:$4 sm:$0xff]   ;;  %v12750_v42 = vld [vmem:[%s18699_s5 + $0x12c] ss:$28 sps:$4 sm:$0xff]  }
 0x1aa   :  { %1277 = vmatprep.subr.bf16.mxu1 %v12701_v43  ;;  %1359 = vmatprep.subr.bf16.mxu0 %v12704_v44  ;;  %v12751_v43 = vld [vmem:[%s18699_s5 + $0x2f0] ss:$28 sps:$4 sm:$0xff]   ;;  %v12748_v44 = vld [vmem:[%s18699_s5 + $0x128] ss:$28 sps:$4 sm:$0xff]  }
 0x1ad   :  { %1278 = vmatpush1.bf16.msra.mxu1 %v12699_v45  ;;  %1360 = vmatpush1.bf16.msra.mxu0 %v12702_v46  ;;  %v12752_v45 = vld [vmem:[%s18699_s5 + $0x130] ss:$28 sps:$4 sm:$0xff]   ;;  %v12755_v46 = vld [vmem:[%s18699_s5 + $0x164] ss:$28 sps:$4 sm:$0xff]  }
 0x1ae   :  { %1279 = vmatprep.subr.bf16.mxu1 %v12707_v47  ;;  %1361 = vmatprep.subr.bf16.mxu0 %v12710_v48  ;;  %v12756_v47 = vld [vmem:[%s18699_s5 + $0x328] ss:$28 sps:$4 sm:$0xff]   ;;  %v12753_v48 = vld [vmem:[%s18699_s5 + $0x160] ss:$28 sps:$4 sm:$0xff]  }
 0x1b1   :  { %1280 = vmatpush1.bf16.msra.mxu1 %v12705_v49  ;;  %1362 = vmatpush1.bf16.msra.mxu0 %v12708_v50  ;;  %v12757_v49 = vld [vmem:[%s18699_s5 + $0x168] ss:$28 sps:$4 sm:$0xff]   ;;  %v12760_v50 = vld [vmem:[%s18699_s5 + $0x19c] ss:$28 sps:$4 sm:$0xff]  }
 0x1b2   :  { %1290 = vmatprep.subr.bf16.mxu1 %v12713_v51  ;;  %1372 = vmatprep.subr.bf16.mxu0 %v12716_v52  ;;  %v12761_v51 = vld [vmem:[%s18699_s5 + $0x360] ss:$28 sps:$4 sm:$0xff]   ;;  %v12758_v52 = vld [vmem:[%s18699_s5 + $0x198] ss:$28 sps:$4 sm:$0xff]  }
 0x247   :  { %v363_v58 = vpop.f32.mrb[0].mxu1  ;;  %v404_v59 = vpop.f32.mrb[4].mxu0 }
 0x248   :  { %v364_v60 = vadd.f32 %v363_v58, %v189_v56  ;;  %v365_v61 = vpop.f32.mrb[1].mxu1  ;;  %v12401_v62 = vpop.f32.mrb[5].mxu0  ;;  %v405_v18 = vadd.f32 %v404_v59, %v197_v13  ;;  %v12765_v56 = vld [vmem:[%s18699_s5 + $0x1d4] ss:$28 sps:$4 sm:$0xff]   ;;  %v12769_v59 = vld [vmem:[%s18699_s5 + $0x20c] ss:$28 sps:$4 sm:$0xff]  }
 0x249   :  { %v366_v63 = vadd.f32 %v365_v61, %v193_v57  ;;  %v367_v0 = vpop.f32.mrb[2].mxu1  ;;  %v407_v1 = vpop.f32.mrb[6].mxu0  ;;  %v12763_v57 = vld [vmem:[%s18699_s5 + $0x1d0] ss:$28 sps:$4 sm:$0xff]   ;;  %v12766_v58 = vld [vmem:[%s18699_s5 + $0x398] ss:$28 sps:$4 sm:$0xff]  }
 0x24a   :  { %v410_v2 = vmax.f32 %v364_v60, 0.0  ;;  %v368_v5 = vpop.f32.mrb[3].mxu1  ;;  %v12402_v6 = vpop.f32.mrb[7].mxu0  ;;  %v412_v20 = vmax.f32 %v405_v18, 0.0  ;;  %v12767_v60 = vld [vmem:[%s18699_s5 + $0x208] ss:$28 sps:$4 sm:$0xff]  }
 0x24b   :  { %v411_v7 = vmax.f32 %v366_v63, 0.0  ;;  %v12770_v61 = vld [vmem:[%s18699_s5 + $0x3d0] ss:$28 sps:$4 sm:$0xff]   ;;  %v12773_v62 = vld [vmem:[%s18699_s5 + $0x244] ss:$28 sps:$4 sm:$0xff]  }
 0x24c   :  { %v14819_v12 = vpack.c.bf16 %v410_v2, %v410_v2  ;;  %v14850_v25 = vpack.c.bf16 %v412_v20, %v412_v20  ;;  %v12797_v63 = vld [vmem:[%s18701_s7 + $0x4] ss:$52 sps:$4 sm:$0xff]   ;;  %v12771_v0 = vld [vmem:[%s18699_s5 + $0x240] ss:$28 sps:$4 sm:$0xff]   ;;  %v12782_v13 = vld [vmem:[%s18699_s5 + $0x2ec] ss:$28 sps:$4 sm:$0xff]  }
 0x24d   :  { %v414_v8 = vpack.c.bf16 %v411_v7, %v411_v7  ;;  %v12795_v1 = vld [vmem:[%s18701_s7] ss:$52 sps:$4 sm:$0xff]   ;;  %v12776_v2 = vld [vmem:[%s18699_s5 + $0x27c] ss:$28 sps:$4 sm:$0xff]  }
 0x24e   :  { %v12803_v5 = vld [vmem:[%s18701_s7 + $0x6c] ss:$52 sps:$4 sm:$0xff]   ;;  %v12774_v6 = vld [vmem:[%s18699_s5 + $0x278] ss:$28 sps:$4 sm:$0xff]   ;;  %v12801_v7 = vld [vmem:[%s18701_s7 + $0x68] ss:$52 sps:$4 sm:$0xff]  }
 0x24f   :  { %1281 = vmatprep.mubr.bf16.mxu1 %v414_v8  ;;  %1363 = vmatprep.mubr.bf16.mxu0 %v414_v8  ;;  %v12821_v18 = vld [vmem:[%s18701_s7 + $0x1a4] ss:$52 sps:$4 sm:$0xff]   ;;  %v12819_v20 = vld [vmem:[%s18701_s7 + $0x1a0] ss:$52 sps:$4 sm:$0xff]  }
 0x250   :  { %1282 = vmatmul.mubr.bf16.vlgmr.msra.gmra.mrb[4].mxu1 %v14819_v12  ;;  %1364 = vmatmul.mubr.bf16.vlgmr.msra.gmra.mrb[8].mxu0 %v14819_v12 }
 0x251   :  { %1291 = vmatpush1.bf16.msra.mxu1 %v12711_v9  ;;  %1373 = vmatpush1.bf16.msra.mxu0 %v12714_v10  ;;  %v12809_v9 = vld [vmem:[%s18701_s7 + $0xd4] ss:$52 sps:$4 sm:$0xff]   ;;  %v12777_v10 = vld [vmem:[%s18699_s5 + $0x2b0] ss:$28 sps:$4 sm:$0xff]  }
 0x252   :  { %1292 = vmatprep.subr.bf16.mxu1 %v12719_v11  ;;  %1374 = vmatprep.subr.bf16.mxu0 %v12722_v14  ;;  %v12807_v11 = vld [vmem:[%s18701_s7 + $0xd0] ss:$52 sps:$4 sm:$0xff]  }
 0x253   :  { %1322 = vmatprep.mubr.bf16.mxu1 %v14435_v41  ;;  %1404 = vmatprep.mubr.bf16.mxu0 %v14435_v41  ;;  %v12815_v14 = vld [vmem:[%s18701_s7 + $0x13c] ss:$52 sps:$4 sm:$0xff]  }
 0x255   :  { %1293 = vmatpush1.bf16.msra.mxu1 %v12717_v15  ;;  %1375 = vmatpush1.bf16.msra.mxu0 %v12720_v16  ;;  %v12780_v15 = vld [vmem:[%s18699_s5 + $0x2e8] ss:$28 sps:$4 sm:$0xff]   ;;  %v12813_v16 = vld [vmem:[%s18701_s7 + $0x138] ss:$52 sps:$4 sm:$0xff]  }
 0x256   :  { %1413 = vmatprep.subr.bf16.mxu1 %v12725_v17  ;;  %12150 = vmatprep.subr.bf16.mxu0 %v12726_v19  ;;  %v12785_v17 = vld [vmem:[%s18699_s5 + $0x324] ss:$28 sps:$4 sm:$0xff]  }
 0x257   :  { %v12783_v19 = vld [vmem:[%s18699_s5 + $0x320] ss:$28 sps:$4 sm:$0xff]  }
 0x25c   :  { %10993 = vmatmul.mubr.msk.bf16.vlgmr.msra.gmra.mrb[4].mxu1 %vm1245_vm5, %v14850_v25  ;;  %10994 = vmatmul.mubr.msk.bf16.vlgmr.msra.gmra.mrb[8].mxu0 %vm1245_vm5, %v14850_v25 }
 0x25d   :  { %1414 = vmatpush1.bf16.msra.mxu1 %v12723_v22  ;;  %12151 = vmatpush3.bf16.msra.mxu0 %v12727_v23  ;;  %v12788_v22 = vld [vmem:[%s18699_s5 + $0x35c] ss:$28 sps:$4 sm:$0xff]   ;;  %v12827_v23 = vld [vmem:[%s18701_s7 + $0x20c] ss:$52 sps:$4 sm:$0xff]  }
 0x25e   :  { %1445 = vmatprep.mubr.bf16.mxu1 %v414_v8  ;;  %1527 = vmatprep.mubr.bf16.mxu0 %v414_v8  ;;  %v12779_v8 = vld [vmem:[%s18699_s5 + $0x2b4] ss:$28 sps:$4 sm:$0xff]  }
 0x25f   :  { %1415 = vmatprep.subr.bf16.mxu1 %v12730_v24  ;;  %12152 = vmatprep.subr.bf16.mxu0 %v12731_v26  ;;  %v12786_v24 = vld [vmem:[%s18699_s5 + $0x358] ss:$28 sps:$4 sm:$0xff]   ;;  %v12825_v26 = vld [vmem:[%s18701_s7 + $0x208] ss:$52 sps:$4 sm:$0xff]  }
 0x261   :  { %1416 = vmatpush1.bf16.msra.mxu1 %v12728_v27  ;;  %12153 = vmatpush3.bf16.msra.mxu0 %v12732_v28  ;;  %v12791_v27 = vld [vmem:[%s18699_s5 + $0x394] ss:$28 sps:$4 sm:$0xff]  }
 0x262   :  { %1417 = vmatprep.subr.bf16.mxu1 %v12735_v29  ;;  %12154 = vmatprep.subr.bf16.mxu0 %v12736_v30  ;;  %v12833_v28 = vld [vmem:[%s18701_s7 + $0x274] ss:$52 sps:$4 sm:$0xff]   ;;  %v12789_v29 = vld [vmem:[%s18699_s5 + $0x390] ss:$28 sps:$4 sm:$0xff]  }
 0x263   :  { %v12794_v30 = vld [vmem:[%s18699_s5 + $0x3cc] ss:$28 sps:$4 sm:$0xff]  }
 0x265   :  { %1418 = vmatpush1.bf16.msra.mxu1 %v12733_v31  ;;  %12155 = vmatpush3.bf16.msra.mxu0 %v12737_v32  ;;  %v12831_v31 = vld [vmem:[%s18701_s7 + $0x270] ss:$52 sps:$4 sm:$0xff]  }
 0x266   :  { %1419 = vmatprep.subr.bf16.mxu1 %v12740_v33  ;;  %12156 = vmatprep.subr.bf16.mxu0 %v12741_v34  ;;  %v12839_v32 = vld [vmem:[%s18701_s7 + $0x2dc] ss:$52 sps:$4 sm:$0xff]   ;;  %v12792_v33 = vld [vmem:[%s18699_s5 + $0x3c8] ss:$28 sps:$4 sm:$0xff]   ;;  %v12800_v34 = vld [vmem:[%s18701_s7 + $0xc] ss:$52 sps:$4 sm:$0xff]  }
 0x269   :  { %1420 = vmatpush1.bf16.msra.mxu1 %v12738_v35  ;;  %12157 = vmatpush3.bf16.msra.mxu0 %v12742_v36  ;;  %v12837_v35 = vld [vmem:[%s18701_s7 + $0x2d8] ss:$52 sps:$4 sm:$0xff]  }
 0x26a   :  { %1421 = vmatprep.subr.bf16.mxu1 %v12745_v37  ;;  %12158 = vmatprep.subr.bf16.mxu0 %v12746_v38  ;;  %v12845_v36 = vld [vmem:[%s18701_s7 + $0x344] ss:$52 sps:$4 sm:$0xff]   ;;  %v12851_v37 = vld [vmem:[%s18701_s7 + $0x3ac] ss:$52 sps:$4 sm:$0xff]   ;;  %v12798_v38 = vld [vmem:[%s18701_s7 + $0x8] ss:$52 sps:$4 sm:$0xff]  }
 0x26d   :  { %1422 = vmatpush1.bf16.msra.mxu1 %v12743_v39  ;;  %12159 = vmatpush3.bf16.msra.mxu0 %v12747_v40  ;;  %v12806_v39 = vld [vmem:[%s18701_s7 + $0x74] ss:$52 sps:$4 sm:$0xff]  }
 0x26e   :  { %1423 = vmatprep.subr.bf16.mxu1 %v12750_v42  ;;  %12160 = vmatprep.subr.bf16.mxu0 %v12751_v43  ;;  %v12849_v40 = vld [vmem:[%s18701_s7 + $0x3a8] ss:$52 sps:$4 sm:$0xff]   ;;  %v12804_v43 = vld [vmem:[%s18701_s7 + $0x70] ss:$52 sps:$4 sm:$0xff]  }
 0x26f   :  { %v12857_v42 = vld [vmem:[%s18701_s7 + $0x414] ss:$52 sps:$4 sm:$0xff]  }
 0x271   :  { %1424 = vmatpush1.bf16.msra.mxu1 %v12748_v44  ;;  %12161 = vmatpush3.bf16.msra.mxu0 %v12752_v45  ;;  %v12812_v44 = vld [vmem:[%s18701_s7 + $0xdc] ss:$52 sps:$4 sm:$0xff]  }
 0x272   :  { %1425 = vmatprep.subr.bf16.mxu1 %v12755_v46  ;;  %12162 = vmatprep.subr.bf16.mxu0 %v12756_v47  ;;  %v12855_v45 = vld [vmem:[%s18701_s7 + $0x410] ss:$52 sps:$4 sm:$0xff]   ;;  %v12810_v47 = vld [vmem:[%s18701_s7 + $0xd8] ss:$52 sps:$4 sm:$0xff]  }
 0x273   :  { %v12863_v46 = vld [vmem:[%s18701_s7 + $0x47c] ss:$52 sps:$4 sm:$0xff]  }
 0x275   :  { %1426 = vmatpush1.bf16.msra.mxu1 %v12753_v48  ;;  %12163 = vmatpush3.bf16.msra.mxu0 %v12757_v49  ;;  %v12861_v48 = vld [vmem:[%s18701_s7 + $0x478] ss:$52 sps:$4 sm:$0xff]   ;;  %v12816_v49 = vld [vmem:[%s18701_s7 + $0x140] ss:$52 sps:$4 sm:$0xff]  }
 0x276   :  { %1427 = vmatprep.subr.bf16.mxu1 %v12760_v50  ;;  %12164 = vmatprep.subr.bf16.mxu0 %v12761_v51  ;;  %v12869_v50 = vld [vmem:[%s18701_s7 + $0x4e4] ss:$52 sps:$4 sm:$0xff]   ;;  %v12824_v51 = vld [vmem:[%s18701_s7 + $0x1ac] ss:$52 sps:$4 sm:$0xff]  }
 0x279   :  { %1428 = vmatpush1.bf16.msra.mxu1 %v12758_v52  ;;  %12165 = vmatpush3.bf16.msra.mxu0 %v12762_v54  ;;  %v12867_v52 = vld [vmem:[%s18701_s7 + $0x4e0] ss:$52 sps:$4 sm:$0xff]   ;;  %v12822_v54 = vld [vmem:[%s18701_s7 + $0x1a8] ss:$52 sps:$4 sm:$0xff]  }
 0x27a   :  { %1429 = vmatprep.subr.bf16.mxu1 %v12765_v56  ;;  %12403 = vmatprep.subr.bf16.mxu0 %v14433_v4  ;;  %v12875_v56 = vld [vmem:[%s18701_s7 + $0x54c] ss:$52 sps:$4 sm:$0xff]  }
 0x27c   :  { %1528 = vmatmul.mubr.bf16.vlgmr.msra.gmra.mrb[12].mxu0 %v14819_v12 }
 0x27d   :  { %1430 = vmatpush1.bf16.msra.mxu1 %v12763_v57  ;;  %12404 = vmatpush3.bf16.msra.mxu0 %v12766_v58  ;;  %v12830_v57 = vld [vmem:[%s18701_s7 + $0x214] ss:$52 sps:$4 sm:$0xff]  }
 0x27e   :  { %1431 = vmatprep.subr.bf16.mxu1 %v12769_v59  ;;  %12405 = vmatprep.subr.bf16.mxu0 %v14433_v4  ;;  %v12873_v58 = vld [vmem:[%s18701_s7 + $0x548] ss:$52 sps:$4 sm:$0xff]   ;;  %v12828_v59 = vld [vmem:[%s18701_s7 + $0x210] ss:$52 sps:$4 sm:$0xff]  }
 0x27f   :  { %12407 = vmatprep.mubr.msk.bf16.mxu0 %vm14434_vm2, %v14433_v4 }
 0x281   :  { %1432 = vmatpush1.bf16.msra.mxu1 %v12767_v60  ;;  %12406 = vmatpush3.bf16.msra.mxu0 %v12770_v61  ;;  %v12881_v60 = vld [vmem:[%s18701_s7 + $0x5b4] ss:$52 sps:$4 sm:$0xff]   ;;  %v12836_v61 = vld [vmem:[%s18701_s7 + $0x27c] ss:$52 sps:$4 sm:$0xff]  }
 0x282   :  { %1433 = vmatprep.subr.bf16.mxu1 %v12773_v62  ;;  %5582 = vmatprep.subr.bf16.mxu0 %v12797_v63  ;;  %v12879_v62 = vld [vmem:[%s18701_s7 + $0x5b0] ss:$52 sps:$4 sm:$0xff]  }
 0x283   :  { %v12887_v63 = vld [vmem:[%s18701_s7 + $0x61c] ss:$52 sps:$4 sm:$0xff]  }
 0x284   :  { %12408 = vmatmul.mubr.msk.bf16.vlgmr.msra.gmra.mrb[16].mxu0 %vm1245_vm5, %v14850_v25 }
 0x285   :  { %1434 = vmatpush1.bf16.msra.mxu1 %v12771_v0  ;;  %5583 = vmatpush1.bf16.msra.mxu0 %v12795_v1  ;;  %v12834_v0 = vld [vmem:[%s18701_s7 + $0x278] ss:$52 sps:$4 sm:$0xff]  }
 0x286   :  { %1435 = vmatprep.subr.bf16.mxu1 %v12776_v2  ;;  %5584 = vmatprep.subr.bf16.mxu0 %v12803_v5  ;;  %v12842_v1 = vld [vmem:[%s18701_s7 + $0x2e4] ss:$52 sps:$4 sm:$0xff]  }
 0x287   :  { %v12885_v2 = vld [vmem:[%s18701_s7 + $0x618] ss:$52 sps:$4 sm:$0xff]  }
 0x288   :  { %v12893_v5 = vld [vmem:[%s18701_s7 + $0x684] ss:$52 sps:$4 sm:$0xff]  }
 0x289   :  { %1436 = vmatpush1.bf16.msra.mxu1 %v12774_v6  ;;  %5585 = vmatpush1.bf16.msra.mxu0 %v12801_v7  ;;  %v12840_v6 = vld [vmem:[%s18701_s7 + $0x2e0] ss:$52 sps:$4 sm:$0xff]  }
 0x28a   :  { %1437 = vmatprep.subr.bf16.mxu1 %v12779_v8  ;;  %5586 = vmatprep.subr.bf16.mxu0 %v12809_v9  ;;  %v12848_v7 = vld [vmem:[%s18701_s7 + $0x34c] ss:$52 sps:$4 sm:$0xff]   ;;  %v12846_v8 = vld [vmem:[%s18701_s7 + $0x348] ss:$52 sps:$4 sm:$0xff]  }
 0x28b   :  { %v12854_v9 = vld [vmem:[%s18701_s7 + $0x3b4] ss:$52 sps:$4 sm:$0xff]  }
 0x28d   :  { %1438 = vmatpush1.bf16.msra.mxu1 %v12777_v10  ;;  %5587 = vmatpush1.bf16.msra.mxu0 %v12807_v11  ;;  %v12852_v10 = vld [vmem:[%s18701_s7 + $0x3b0] ss:$52 sps:$4 sm:$0xff]  }
 0x28e   :  { %1439 = vmatprep.subr.bf16.mxu1 %v12782_v13  ;;  %5588 = vmatprep.subr.bf16.mxu0 %v12815_v14  ;;  %v12860_v11 = vld [vmem:[%s18701_s7 + $0x41c] ss:$52 sps:$4 sm:$0xff]   ;;  %v12858_v13 = vld [vmem:[%s18701_s7 + $0x418] ss:$52 sps:$4 sm:$0xff]  }
 0x28f   :  { %v12866_v14 = vld [vmem:[%s18701_s7 + $0x484] ss:$52 sps:$4 sm:$0xff]  }
 0x291   :  { %1440 = vmatpush1.bf16.msra.mxu1 %v12780_v15  ;;  %5589 = vmatpush1.bf16.msra.mxu0 %v12813_v16  ;;  %v12864_v15 = vld [vmem:[%s18701_s7 + $0x480] ss:$52 sps:$4 sm:$0xff]  }
 0x292   :  { %1441 = vmatprep.subr.bf16.mxu1 %v12785_v17  ;;  %5590 = vmatprep.subr.bf16.mxu0 %v12821_v18  ;;  %v12872_v16 = vld [vmem:[%s18701_s7 + $0x4ec] ss:$52 sps:$4 sm:$0xff]   ;;  %v12870_v17 = vld [vmem:[%s18701_s7 + $0x4e8] ss:$52 sps:$4 sm:$0xff]  }
 0x293   :  { %v12878_v18 = vld [vmem:[%s18701_s7 + $0x554] ss:$52 sps:$4 sm:$0xff]  }
 0x295   :  { %1442 = vmatpush1.bf16.msra.mxu1 %v12783_v19  ;;  %5591 = vmatpush1.bf16.msra.mxu0 %v12819_v20  ;;  %v12876_v19 = vld [vmem:[%s18701_s7 + $0x550] ss:$52 sps:$4 sm:$0xff]  }
 0x296   :  { %1443 = vmatprep.subr.bf16.mxu1 %v12788_v22  ;;  %5592 = vmatprep.subr.bf16.mxu0 %v12827_v23  ;;  %v12884_v20 = vld [vmem:[%s18701_s7 + $0x5bc] ss:$52 sps:$4 sm:$0xff]   ;;  %v12882_v22 = vld [vmem:[%s18701_s7 + $0x5b8] ss:$52 sps:$4 sm:$0xff]  }
 0x297   :  { %v12890_v23 = vld [vmem:[%s18701_s7 + $0x624] ss:$52 sps:$4 sm:$0xff]  }
 0x299   :  { %1444 = vmatpush1.bf16.msra.mxu1 %v12786_v24  ;;  %5593 = vmatpush1.bf16.msra.mxu0 %v12825_v26  ;;  %v12888_v24 = vld [vmem:[%s18701_s7 + $0x620] ss:$52 sps:$4 sm:$0xff]  }
 0x29a   :  { %1454 = vmatprep.subr.bf16.mxu1 %v12791_v27  ;;  %5594 = vmatprep.subr.bf16.mxu0 %v12833_v28  ;;  %v12896_v26 = vld [vmem:[%s18701_s7 + $0x68c] ss:$52 sps:$4 sm:$0xff]   ;;  %v15218_v28 = vsub.s32 3, %v14549_v21 }
 0x29b   :  { %v15215_v27 = vld [vmem:[%s18703_s6] sm:$0x7f] }
 0x29c   :  { %1446 = vmatmul.mubr.bf16.vlgmr.msra.gmra.mrb[8].mxu1 %v14819_v12  ;;  %v12843_v12 = vld [vmem:[%s18701_s7 + $0x340] ss:$52 sps:$4 sm:$0xff]  }
 0x29d   :  { %1455 = vmatpush1.bf16.msra.mxu1 %v12789_v29  ;;  %1486 = vmatprep.mubr.bf16.mxu1 %v14435_v41  ;;  %v565_v29 = vrot.slane %v15215_v27, %v14797_v53 }
 0x29e   :  { %1456 = vmatprep.subr.bf16.mxu1 %v12794_v30  ;;  %5595 = vmatpush1.bf16.msra.mxu0 %v12831_v31  ;;  %v569_v30 = vrot.slane %v15215_v27, %v14803_v55  ;;  %v577_v31 = vrot.slane %v15215_v27, %v15218_v28 }
 0x29f   :  { %5596 = vmatprep.subr.bf16.mxu0 %v12839_v32 }
 0x2a1   :  { %1457 = vmatpush1.bf16.msra.mxu1 %v12792_v33 }
 0x2a2   :  { %5746 = vmatprep.subr.bf16.mxu1 %v12800_v34  ;;  %5597 = vmatpush1.bf16.msra.mxu0 %v12837_v35 }
 0x2a3   :  { %5598 = vmatprep.subr.bf16.mxu0 %v12845_v36 }
 0x2a6   :  { %5599 = vmatpush1.bf16.msra.mxu0 %v12843_v12 }
 0x2a7   :  { %5600 = vmatprep.subr.bf16.mxu0 %v12851_v37 }
 0x2a8   :  { %10995 = vmatmul.mubr.msk.bf16.vlgmr.msra.gmra.mrb[8].mxu1 %vm1245_vm5, %v14850_v25  ;;  %v12818_v25 = vld [vmem:[%s18701_s7 + $0x144] ss:$52 sps:$4 sm:$0xff]  }
 0x2a9   :  { %5747 = vmatpush1.bf16.msra.mxu1 %v12798_v38 }
 0x2aa   :  { %5748 = vmatprep.subr.bf16.mxu1 %v12806_v39  ;;  %5601 = vmatpush1.bf16.msra.mxu0 %v12849_v40 }
 0x2ab   :  { %5602 = vmatprep.subr.bf16.mxu0 %v12857_v42 }
 0x2ad   :  { %5749 = vmatpush1.bf16.msra.mxu1 %v12804_v43 }
 0x2ae   :  { %5750 = vmatprep.subr.bf16.mxu1 %v12812_v44  ;;  %5603 = vmatpush1.bf16.msra.mxu0 %v12855_v45 }
 0x2af   :  { %5604 = vmatprep.subr.bf16.mxu0 %v12863_v46  ;;  %v12891_v46 = vld [vmem:[%s18701_s7 + $0x680] ss:$52 sps:$4 sm:$0xff]  }
 0x2b1   :  { %5751 = vmatpush1.bf16.msra.mxu1 %v12810_v47  ;;  %v12894_v47 = vld [vmem:[%s18701_s7 + $0x688] ss:$52 sps:$4 sm:$0xff]  }
 0x2b2   :  { %5752 = vmatprep.subr.bf16.mxu1 %v12818_v25  ;;  %5605 = vmatpush1.bf16.msra.mxu0 %v12861_v48  ;;  %v12899_v48 = vld [vmem:[%s18701_s7 + $0x6ec] ss:$52 sps:$4 sm:$0xff]  }
 0x2b3   :  { %5606 = vmatprep.subr.bf16.mxu0 %v12869_v50 }
 0x2b5   :  { %5753 = vmatpush1.bf16.msra.mxu1 %v12816_v49  ;;  %v12902_v49 = vld [vmem:[%s18701_s7 + $0x6f4] ss:$52 sps:$4 sm:$0xff]  }
 0x2b6   :  { %5754 = vmatprep.subr.bf16.mxu1 %v12824_v51  ;;  %5607 = vmatpush1.bf16.msra.mxu0 %v12867_v52  ;;  %v12897_v52 = vld [vmem:[%s18701_s7 + $0x6e8] ss:$52 sps:$4 sm:$0xff]  }
 0x2b7   :  { %5608 = vmatprep.subr.bf16.mxu0 %v12875_v56  ;;  %v12905_v56 = vld [vmem:[%s18701_s7 + $0x754] ss:$52 sps:$4 sm:$0xff]  }
 0x2b9   :  { %5755 = vmatpush1.bf16.msra.mxu1 %v12822_v54  ;;  %v12900_v54 = vld [vmem:[%s18701_s7 + $0x6f0] ss:$52 sps:$4 sm:$0xff]  }
 0x2ba   :  { %5756 = vmatprep.subr.bf16.mxu1 %v12830_v57  ;;  %5609 = vmatpush1.bf16.msra.mxu0 %v12873_v58  ;;  %v12908_v57 = vld [vmem:[%s18701_s7 + $0x75c] ss:$52 sps:$4 sm:$0xff]  }
 0x2bb   :  { %5610 = vmatprep.subr.bf16.mxu0 %v12881_v60  ;;  %v12903_v58 = vld [vmem:[%s18701_s7 + $0x750] ss:$52 sps:$4 sm:$0xff]  }
 0x2bc   :  { %v12911_v60 = vld [vmem:[%s18701_s7 + $0x7bc] ss:$52 sps:$4 sm:$0xff]  }
 0x2bd   :  { %5757 = vmatpush1.bf16.msra.mxu1 %v12828_v59  ;;  %v12906_v59 = vld [vmem:[%s18701_s7 + $0x758] ss:$52 sps:$4 sm:$0xff]  }
 0x2be   :  { %5758 = vmatprep.subr.bf16.mxu1 %v12836_v61  ;;  %5611 = vmatpush1.bf16.msra.mxu0 %v12879_v62  ;;  %v12914_v61 = vld [vmem:[%s18701_s7 + $0x7c4] ss:$52 sps:$4 sm:$0xff]  }
 0x2bf   :  { %5612 = vmatprep.subr.bf16.mxu0 %v12887_v63  ;;  %v12909_v62 = vld [vmem:[%s18701_s7 + $0x7b8] ss:$52 sps:$4 sm:$0xff]   ;;  %v12912_v63 = vld [vmem:[%s18701_s7 + $0x7c0] ss:$52 sps:$4 sm:$0xff]  }
 0x2c1   :  { %5759 = vmatpush1.bf16.msra.mxu1 %v12834_v0  ;;  %v12917_v0 = vld [vmem:[%s18701_s7 + $0x824] ss:$52 sps:$4 sm:$0xff]  }
 0x2c2   :  { %5760 = vmatprep.subr.bf16.mxu1 %v12842_v1  ;;  %5613 = vmatpush1.bf16.msra.mxu0 %v12885_v2  ;;  %v12920_v1 = vld [vmem:[%s18701_s7 + $0x82c] ss:$52 sps:$4 sm:$0xff]  }
 0x2c3   :  { %5623 = vmatprep.subr.bf16.mxu0 %v12893_v5  ;;  %v12915_v2 = vld [vmem:[%s18701_s7 + $0x820] ss:$52 sps:$4 sm:$0xff]   ;;  %v12918_v5 = vld [vmem:[%s18701_s7 + $0x828] ss:$52 sps:$4 sm:$0xff]  }
 0x2c5   :  { %5761 = vmatpush1.bf16.msra.mxu1 %v12840_v6  ;;  %v12923_v6 = vld [vmem:[%s18701_s7 + $0x88c] ss:$52 sps:$4 sm:$0xff]  }
 0x2c6   :  { %5762 = vmatprep.subr.bf16.mxu1 %v12848_v7  ;;  %v12926_v7 = vld [vmem:[%s18701_s7 + $0x894] ss:$52 sps:$4 sm:$0xff]  }
 0x2c9   :  { %5763 = vmatpush1.bf16.msra.mxu1 %v12846_v8  ;;  %v12921_v8 = vld [vmem:[%s18701_s7 + $0x888] ss:$52 sps:$4 sm:$0xff]  }
 0x2ca   :  { %5764 = vmatprep.subr.bf16.mxu1 %v12854_v9  ;;  %v12924_v9 = vld [vmem:[%s18701_s7 + $0x890] ss:$52 sps:$4 sm:$0xff]  }
 0x2cd   :  { %5765 = vmatpush1.bf16.msra.mxu1 %v12852_v10  ;;  %v12929_v10 = vld [vmem:[%s18701_s7 + $0x8f4] ss:$52 sps:$4 sm:$0xff]  }
 0x2ce   :  { %5766 = vmatprep.subr.bf16.mxu1 %v12860_v11  ;;  %v12932_v11 = vld [vmem:[%s18701_s7 + $0x8fc] ss:$52 sps:$4 sm:$0xff]  }
 0x2d1   :  { %5767 = vmatpush1.bf16.msra.mxu1 %v12858_v13  ;;  %v12927_v13 = vld [vmem:[%s18701_s7 + $0x8f0] ss:$52 sps:$4 sm:$0xff]  }
 0x2d2   :  { %5768 = vmatprep.subr.bf16.mxu1 %v12866_v14  ;;  %v12930_v14 = vld [vmem:[%s18701_s7 + $0x8f8] ss:$52 sps:$4 sm:$0xff]  }
 0x2d5   :  { %5769 = vmatpush1.bf16.msra.mxu1 %v12864_v15  ;;  %v588_v15 = vsub.s32 6, %v14549_v21 }
 0x2d6   :  { %5770 = vmatprep.subr.bf16.mxu1 %v12872_v16  ;;  %v12935_v16 = vld [vmem:[%s18701_s7 + $0x95c] ss:$52 sps:$4 sm:$0xff]  }
 0x2d9   :  { %5771 = vmatpush1.bf16.msra.mxu1 %v12870_v17  ;;  %v12938_v17 = vld [vmem:[%s18701_s7 + $0x964] ss:$52 sps:$4 sm:$0xff]  }
 0x2da   :  { %5772 = vmatprep.subr.bf16.mxu1 %v12878_v18 }
 0x2dd   :  { %5773 = vmatpush1.bf16.msra.mxu1 %v12876_v19 }
 0x2de   :  { %5774 = vmatprep.subr.bf16.mxu1 %v12884_v20 }
 0x2e1   :  { %5775 = vmatpush1.bf16.msra.mxu1 %v12882_v22 }
 0x2e2   :  { %5776 = vmatprep.subr.bf16.mxu1 %v12890_v23  ;;  %v12933_v23 = vld [vmem:[%s18701_s7 + $0x958] ss:$52 sps:$4 sm:$0xff]  }
 0x2e5   :  { %5777 = vmatpush1.bf16.msra.mxu1 %v12888_v24  ;;  %v12936_v24 = vld [vmem:[%s18701_s7 + $0x960] ss:$52 sps:$4 sm:$0xff]  }
 0x2e6   :  { %5787 = vmatprep.subr.bf16.mxu1 %v12896_v26 }
 0x32f   :  { %v1324_v32 = vpop.f32.mrb[4].mxu1  ;;  %v15226_v33 = vpop.f32.mrb[8].mxu0 }
 0x330   :  { %v12425_v34 = vadd.f32 %v1324_v32, %v565_v29  ;;  %v1326_v35 = vpop.f32.mrb[5].mxu1  ;;  %v1408_v36 = vpop.f32.mrb[9].mxu0  ;;  %v589_v29 = vrot.slane %v15215_v27, %v588_v15  ;;  %v12939_v32 = vld [vmem:[%s18701_s7 + $0x9c0] ss:$52 sps:$4 sm:$0xff]  }
 0x331   :  { %v12426_v12 = vadd.f32 %v1326_v35, %v569_v30  ;;  %v12428_v37 = vadd.f32 %v1408_v36, %v577_v31  ;;  %v1328_v38 = vpop.f32.mrb[6].mxu1  ;;  %v1410_v39 = vpop.f32.mrb[10].mxu0  ;;  %v12941_v30 = vld [vmem:[%s18701_s7 + $0x9c4] ss:$52 sps:$4 sm:$0xff]   ;;  %v12944_v31 = vld [vmem:[%s18701_s7 + $0x9cc] ss:$52 sps:$4 sm:$0xff]  }
 0x332   :  { %v1575_v40 = vmax.f32 %v12425_v34, 0.0  ;;  %v1329_v42 = vpop.f32.mrb[7].mxu1  ;;  %v1411_v43 = vpop.f32.mrb[11].mxu0  ;;  %v12942_v34 = vld [vmem:[%s18701_s7 + $0x9c8] ss:$52 sps:$4 sm:$0xff]  }
 0x333   :  { %v1576_v44 = vmax.f32 %v12426_v12, 0.0  ;;  %v1578_v45 = vmax.f32 %v12428_v37, 0.0  ;;  %v12947_v36 = vld [vmem:[%s18701_s7 + $0xa2c] ss:$52 sps:$4 sm:$0xff]   ;;  %v12950_v12 = vld [vmem:[%s18701_s7 + $0xa34] ss:$52 sps:$4 sm:$0xff]  }
 0x334   :  { %v15242_v50 = vpack.c.bf16 %v1575_v40, %v1575_v40  ;;  %v12945_v42 = vld [vmem:[%s18701_s7 + $0xa28] ss:$52 sps:$4 sm:$0xff]   ;;  %v12948_v43 = vld [vmem:[%s18701_s7 + $0xa30] ss:$52 sps:$4 sm:$0xff]  }
 0x335   :  { %v15234_v25 = vpack.c.bf16 %v1576_v44, %v1576_v44  ;;  %v15246_v51 = vpack.c.bf16 %v1578_v45, %v1578_v45  ;;  %v12953_v45 = vld [vmem:[%s18701_s7 + $0xa94] ss:$52 sps:$4 sm:$0xff]  }
 0x337   :  { %5614 = vmatprep.mubr.bf16.mxu0 %v15234_v25  ;;  %5778 = vmatprep.mubr.bf16.mxu1 %v15234_v25 }
 0x338   :  { %5615 = vmatmul.mubr.bf16.vlgmr.msra.gmra.mrb[20].mxu0 %v15242_v50  ;;  %5779 = vmatmul.mubr.bf16.vlgmr.msra.gmra.mrb[12].mxu1 %v15242_v50 }
 0x339   :  { %5624 = vmatpush1.bf16.msra.mxu0 %v12891_v46  ;;  %5788 = vmatpush1.bf16.msra.mxu1 %v12894_v47  ;;  %v12956_v46 = vld [vmem:[%s18701_s7 + $0xa9c] ss:$52 sps:$4 sm:$0xff]  }
 0x33a   :  { %5655 = vmatprep.mubr.bf16.mxu0 %v15246_v51  ;;  %5819 = vmatprep.mubr.bf16.mxu1 %v15246_v51  ;;  %v12951_v47 = vld [vmem:[%s18701_s7 + $0xa90] ss:$52 sps:$4 sm:$0xff]  }
 0x33b   :  { %5625 = vmatprep.subr.bf16.mxu0 %v12899_v48  ;;  %5789 = vmatprep.subr.bf16.mxu1 %v12902_v49  ;;  %v12954_v48 = vld [vmem:[%s18701_s7 + $0xa98] ss:$52 sps:$4 sm:$0xff]   ;;  %v12959_v49 = vld [vmem:[%s18701_s7 + $0xafc] ss:$52 sps:$4 sm:$0xff]  }
 0x33d   :  { %5626 = vmatpush1.bf16.msra.mxu0 %v12897_v52  ;;  %5790 = vmatpush1.bf16.msra.mxu1 %v12900_v54  ;;  %v12962_v52 = vld [vmem:[%s18701_s7 + $0xb04] ss:$52 sps:$4 sm:$0xff]  }
 0x33e   :  { %5627 = vmatprep.subr.bf16.mxu0 %v12905_v56  ;;  %5791 = vmatprep.subr.bf16.mxu1 %v12908_v57  ;;  %v12957_v54 = vld [vmem:[%s18701_s7 + $0xaf8] ss:$52 sps:$4 sm:$0xff]   ;;  %v12960_v56 = vld [vmem:[%s18701_s7 + $0xb00] ss:$52 sps:$4 sm:$0xff]  }
 0x33f   :  { %v12965_v57 = vld [vmem:[%s18701_s7 + $0xb64] ss:$52 sps:$4 sm:$0xff]  }
 0x341   :  { %5628 = vmatpush1.bf16.msra.mxu0 %v12903_v58  ;;  %5792 = vmatpush1.bf16.msra.mxu1 %v12906_v59  ;;  %v12968_v58 = vld [vmem:[%s18701_s7 + $0xb6c] ss:$52 sps:$4 sm:$0xff]  }
 0x342   :  { %5629 = vmatprep.subr.bf16.mxu0 %v12911_v60  ;;  %5793 = vmatprep.subr.bf16.mxu1 %v12914_v61  ;;  %v12963_v59 = vld [vmem:[%s18701_s7 + $0xb60] ss:$52 sps:$4 sm:$0xff]   ;;  %v12966_v60 = vld [vmem:[%s18701_s7 + $0xb68] ss:$52 sps:$4 sm:$0xff]  }
 0x343   :  { %v12971_v61 = vld [vmem:[%s18701_s7 + $0xbcc] ss:$52 sps:$4 sm:$0xff]  }
 0x345   :  { %5630 = vmatpush1.bf16.msra.mxu0 %v12909_v62  ;;  %5794 = vmatpush1.bf16.msra.mxu1 %v12912_v63  ;;  %v12974_v62 = vld [vmem:[%s18701_s7 + $0xbd4] ss:$52 sps:$4 sm:$0xff]  }
 0x346   :  { %5631 = vmatprep.subr.bf16.mxu0 %v12917_v0  ;;  %5795 = vmatprep.subr.bf16.mxu1 %v12920_v1  ;;  %v12969_v63 = vld [vmem:[%s18701_s7 + $0xbc8] ss:$52 sps:$4 sm:$0xff]   ;;  %v12972_v0 = vld [vmem:[%s18701_s7 + $0xbd0] ss:$52 sps:$4 sm:$0xff]   ;;  %v573_v1 = vrot.slane %v15215_v27, %v14808_v3 }
 0x349   :  { %5632 = vmatpush1.bf16.msra.mxu0 %v12915_v2  ;;  %5796 = vmatpush1.bf16.msra.mxu1 %v12918_v5  ;;  %v12977_v2 = vld [vmem:[%s18701_s7 + $0xc34] ss:$52 sps:$4 sm:$0xff]   ;;  %v12980_v5 = vld [vmem:[%s18701_s7 + $0xc3c] ss:$52 sps:$4 sm:$0xff]  }
 0x34a   :  { %5633 = vmatprep.subr.bf16.mxu0 %v12923_v6  ;;  %5797 = vmatprep.subr.bf16.mxu1 %v12926_v7  ;;  %v12975_v6 = vld [vmem:[%s18701_s7 + $0xc30] ss:$52 sps:$4 sm:$0xff]   ;;  %v12978_v7 = vld [vmem:[%s18701_s7 + $0xc38] ss:$52 sps:$4 sm:$0xff]  }
 0x34d   :  { %5634 = vmatpush1.bf16.msra.mxu0 %v12921_v8  ;;  %5798 = vmatpush1.bf16.msra.mxu1 %v12924_v9  ;;  %v12427_v8 = vadd.f32 %v15226_v33, %v573_v1  ;;  %v12983_v9 = vld [vmem:[%s18701_s7 + $0xc9c] ss:$52 sps:$4 sm:$0xff]   ;;  %v12984_v33 = vld [vmem:[%s18701_s7 + $0xca0] ss:$52 sps:$4 sm:$0xff]   ;;  %v13029_v1 = vld [vmem:[%s18701_s7 + $0xfd8] ss:$52 sps:$4 sm:$0xff]  }
 0x34e   :  { %5635 = vmatprep.subr.bf16.mxu0 %v12929_v10  ;;  %5799 = vmatprep.subr.bf16.mxu1 %v12932_v11  ;;  %v12986_v10 = vld [vmem:[%s18701_s7 + $0xca4] ss:$52 sps:$4 sm:$0xff]  }
 0x34f   :  { %v12166_v18 = vpop.f32.mrb[12].mxu0  ;;  %v12981_v11 = vld [vmem:[%s18701_s7 + $0xc98] ss:$52 sps:$4 sm:$0xff]  }
 0x350   :  { %v12167_v19 = vpop.f32.mrb[13].mxu0 }
 0x351   :  { %v12168_v20 = vadd.f32 %v12167_v19, %v12166_v18  ;;  %v12169_v22 = vpop.f32.mrb[14].mxu0  ;;  %5636 = vmatpush1.bf16.msra.mxu0 %v12927_v13  ;;  %5800 = vmatpush1.bf16.msra.mxu1 %v12930_v14  ;;  %v1577_v13 = vmax.f32 %v12427_v8, 0.0  ;;  %v12989_v14 = vld [vmem:[%s18701_s7 + $0xd04] ss:$52 sps:$4 sm:$0xff]   ;;  %v12990_v18 = vld [vmem:[%s18701_s7 + $0xd08] ss:$52 sps:$4 sm:$0xff]  }
 0x352   :  { %v12170_v26 = vpop.f32.mrb[15].mxu0  ;;  %5637 = vmatprep.subr.bf16.mxu0 %v12935_v16  ;;  %5801 = vmatprep.subr.bf16.mxu1 %v12938_v17  ;;  %v12992_v16 = vld [vmem:[%s18701_s7 + $0xd0c] ss:$52 sps:$4 sm:$0xff]   ;;  %v584_v19 = vsub.s32 5, %v14549_v21  ;;  %v13038_v8 = vld [vmem:[%s18701_s7 + $0x1048] ss:$52 sps:$4 sm:$0xff]  }
 0x353   :  { %v1530_v35 = vadd.f32 %v12168_v20, %v589_v29  ;;  %v12987_v17 = vld [vmem:[%s18701_s7 + $0xd00] ss:$52 sps:$4 sm:$0xff]   ;;  %v15448_v20 = vpack.c.bf16 %v1577_v13, %v1577_v13  ;;  %v12993_v26 = vld [vmem:[%s18701_s7 + $0xd68] ss:$52 sps:$4 sm:$0xff]   ;;  %v12996_v29 = vld [vmem:[%s18701_s7 + $0xd70] ss:$52 sps:$4 sm:$0xff]  }
 0x354   :  { %v12995_v22 = vld [vmem:[%s18701_s7 + $0xd6c] ss:$52 sps:$4 sm:$0xff]   ;;  %v13049_v13 = vld [vmem:[%s18701_s7 + $0x1114] ss:$52 sps:$4 sm:$0xff]  }
 0x355   :  { %5638 = vmatpush1.bf16.msra.mxu0 %v12933_v23  ;;  %5802 = vmatpush1.bf16.msra.mxu1 %v12936_v24  ;;  %v12998_v23 = vld [vmem:[%s18701_s7 + $0xd74] ss:$52 sps:$4 sm:$0xff]   ;;  %v585_v24 = vrot.slane %v15215_v27, %v584_v19 }
 0x356   :  { %5639 = vmatprep.subr.bf16.mxu0 %v12941_v30  ;;  %5803 = vmatprep.subr.bf16.mxu1 %v12944_v31  ;;  %v13001_v30 = vld [vmem:[%s18701_s7 + $0xdd4] ss:$52 sps:$4 sm:$0xff]   ;;  %v13004_v31 = vld [vmem:[%s18701_s7 + $0xddc] ss:$52 sps:$4 sm:$0xff]  }
 0x357   :  { %v1569_v37 = vpop.f32.mrb[16].mxu0 }
 0x358   :  { %v15352_v38 = vadd.f32 %v1569_v37, %v1530_v35  ;;  %v12409_v39 = vpop.f32.mrb[17].mxu0  ;;  %v13002_v37 = vld [vmem:[%s18701_s7 + $0xdd8] ss:$52 sps:$4 sm:$0xff]  }
 0x359   :  { %v1572_v40 = vpop.f32.mrb[18].mxu0  ;;  %5640 = vmatpush1.bf16.msra.mxu0 %v12939_v32  ;;  %5804 = vmatpush1.bf16.msra.mxu1 %v12942_v34 }
 0x35a   :  { %v12410_v44 = vpop.f32.mrb[19].mxu0  ;;  %5641 = vmatprep.subr.bf16.mxu0 %v12947_v36  ;;  %5805 = vmatprep.subr.bf16.mxu1 %v12950_v12  ;;  %v12999_v12 = vld [vmem:[%s18701_s7 + $0xdd0] ss:$52 sps:$4 sm:$0xff]  }
 0x35b   :  { %v13007_v40 = vld [vmem:[%s18701_s7 + $0xe3c] ss:$52 sps:$4 sm:$0xff]  }
 0x35d   :  { %5642 = vmatpush1.bf16.msra.mxu0 %v12945_v42  ;;  %5806 = vmatpush1.bf16.msra.mxu1 %v12948_v43  ;;  %v13010_v42 = vld [vmem:[%s18701_s7 + $0xe44] ss:$52 sps:$4 sm:$0xff]  }
 0x35e   :  { %5643 = vmatprep.subr.bf16.mxu0 %v12953_v45  ;;  %5807 = vmatprep.subr.bf16.mxu1 %v12956_v46  ;;  %v13005_v45 = vld [vmem:[%s18701_s7 + $0xe38] ss:$52 sps:$4 sm:$0xff]   ;;  %v13008_v46 = vld [vmem:[%s18701_s7 + $0xe40] ss:$52 sps:$4 sm:$0xff]  }
 0x361   :  { %5644 = vmatpush1.bf16.msra.mxu0 %v12951_v47  ;;  %5808 = vmatpush1.bf16.msra.mxu1 %v12954_v48  ;;  %v13013_v47 = vld [vmem:[%s18701_s7 + $0xea4] ss:$52 sps:$4 sm:$0xff]   ;;  %v13016_v48 = vld [vmem:[%s18701_s7 + $0xeac] ss:$52 sps:$4 sm:$0xff]  }
 0x362   :  { %5645 = vmatprep.subr.bf16.mxu0 %v12959_v49  ;;  %5809 = vmatprep.subr.bf16.mxu1 %v12962_v52  ;;  %v13011_v49 = vld [vmem:[%s18701_s7 + $0xea0] ss:$52 sps:$4 sm:$0xff]   ;;  %v13014_v52 = vld [vmem:[%s18701_s7 + $0xea8] ss:$52 sps:$4 sm:$0xff]  }
 0x365   :  { %5646 = vmatpush1.bf16.msra.mxu0 %v12957_v54  ;;  %5810 = vmatpush1.bf16.msra.mxu1 %v12960_v56  ;;  %v13019_v54 = vld [vmem:[%s18701_s7 + $0xf0c] ss:$52 sps:$4 sm:$0xff]   ;;  %v13022_v56 = vld [vmem:[%s18701_s7 + $0xf14] ss:$52 sps:$4 sm:$0xff]  }
 0x366   :  { %5647 = vmatprep.subr.bf16.mxu0 %v12965_v57  ;;  %5811 = vmatprep.subr.bf16.mxu1 %v12968_v58  ;;  %v13017_v57 = vld [vmem:[%s18701_s7 + $0xf08] ss:$52 sps:$4 sm:$0xff]   ;;  %v13020_v58 = vld [vmem:[%s18701_s7 + $0xf10] ss:$52 sps:$4 sm:$0xff]  }
 0x369   :  { %5648 = vmatpush1.bf16.msra.mxu0 %v12963_v59  ;;  %5812 = vmatpush1.bf16.msra.mxu1 %v12966_v60  ;;  %v13025_v59 = vld [vmem:[%s18701_s7 + $0xf74] ss:$52 sps:$4 sm:$0xff]   ;;  %v13028_v60 = vld [vmem:[%s18701_s7 + $0xf7c] ss:$52 sps:$4 sm:$0xff]  }
 0x36a   :  { %5649 = vmatprep.subr.bf16.mxu0 %v12971_v61  ;;  %5813 = vmatprep.subr.bf16.mxu1 %v12974_v62  ;;  %v13023_v61 = vld [vmem:[%s18701_s7 + $0xf70] ss:$52 sps:$4 sm:$0xff]   ;;  %v13026_v62 = vld [vmem:[%s18701_s7 + $0xf78] ss:$52 sps:$4 sm:$0xff]  }
 0x36d   :  { %5650 = vmatpush1.bf16.msra.mxu0 %v12969_v63  ;;  %5814 = vmatpush1.bf16.msra.mxu1 %v12972_v0  ;;  %v13031_v63 = vld [vmem:[%s18701_s7 + $0xfdc] ss:$52 sps:$4 sm:$0xff]   ;;  %v13034_v0 = vld [vmem:[%s18701_s7 + $0xfe4] ss:$52 sps:$4 sm:$0xff]  }
 0x36e   :  { %5651 = vmatprep.subr.bf16.mxu0 %v12977_v2  ;;  %5815 = vmatprep.subr.bf16.mxu1 %v12980_v5  ;;  %v13032_v2 = vld [vmem:[%s18701_s7 + $0xfe0] ss:$52 sps:$4 sm:$0xff]   ;;  %v13037_v5 = vld [vmem:[%s18701_s7 + $0x1044] ss:$52 sps:$4 sm:$0xff]  }
 0x371   :  { %5652 = vmatpush1.bf16.msra.mxu0 %v12975_v6  ;;  %5816 = vmatpush1.bf16.msra.mxu1 %v12978_v7  ;;  %v13040_v6 = vld [vmem:[%s18701_s7 + $0x104c] ss:$52 sps:$4 sm:$0xff]  }
 0x372   :  { %5653 = vmatprep.subr.bf16.mxu0 %v12983_v9  ;;  %5817 = vmatprep.subr.bf16.mxu1 %v12986_v10  ;;  %v13035_v7 = vld [vmem:[%s18701_s7 + $0x1040] ss:$52 sps:$4 sm:$0xff]  }
 0x373   :  { %v13043_v9 = vld [vmem:[%s18701_s7 + $0x10ac] ss:$52 sps:$4 sm:$0xff]   ;;  %v13046_v10 = vld [vmem:[%s18701_s7 + $0x10b4] ss:$52 sps:$4 sm:$0xff]  }
 0x375   :  { %5654 = vmatpush1.bf16.msra.mxu0 %v12981_v11  ;;  %5818 = vmatpush1.bf16.msra.mxu1 %v12984_v33  ;;  %v13041_v11 = vld [vmem:[%s18701_s7 + $0x10a8] ss:$52 sps:$4 sm:$0xff]   ;;  %v13044_v33 = vld [vmem:[%s18701_s7 + $0x10b0] ss:$52 sps:$4 sm:$0xff]  }
 0x376   :  { %5664 = vmatprep.subr.bf16.mxu0 %v12989_v14  ;;  %5828 = vmatprep.subr.bf16.mxu1 %v12992_v16  ;;  %v13052_v14 = vld [vmem:[%s18701_s7 + $0x111c] ss:$52 sps:$4 sm:$0xff]  }
 0x377   :  { %v13047_v16 = vld [vmem:[%s18701_s7 + $0x1110] ss:$52 sps:$4 sm:$0xff]  }
 0x378   :  { %5656 = vmatmul.mubr.bf16.vlgmr.msra.gmra.mrb[20].mxu0 %v15448_v20  ;;  %5820 = vmatmul.mubr.bf16.vlgmr.msra.gmra.mrb[12].mxu1 %v15448_v20 }
 0x379   :  { %5665 = vmatpush1.bf16.msra.mxu0 %v12987_v17  ;;  %5829 = vmatpush1.bf16.msra.mxu1 %v12990_v18  ;;  %v13050_v17 = vld [vmem:[%s18701_s7 + $0x1118] ss:$52 sps:$4 sm:$0xff]   ;;  %v13055_v18 = vld [vmem:[%s18701_s7 + $0x117c] ss:$52 sps:$4 sm:$0xff]  }
 0x37a   :  { %5666 = vmatprep.subr.bf16.mxu0 %v12995_v22  ;;  %5830 = vmatprep.subr.bf16.mxu1 %v12998_v23  ;;  %v13058_v22 = vld [vmem:[%s18701_s7 + $0x1184] ss:$52 sps:$4 sm:$0xff]  }
 0x37b   :  { %v15473_v32 = vpop.f32.mrb[8].mxu1  ;;  %v13053_v23 = vld [vmem:[%s18701_s7 + $0x1178] ss:$52 sps:$4 sm:$0xff]  }
 0x37c   :  { %v1490_v34 = vpop.f32.mrb[9].mxu1 }
 0x37d   :  { %v12430_v35 = vadd.f32 %v1490_v34, %v585_v24  ;;  %v1492_v36 = vpop.f32.mrb[10].mxu1  ;;  %5667 = vmatpush1.bf16.msra.mxu0 %v12993_v26  ;;  %5831 = vmatpush1.bf16.msra.mxu1 %v12996_v29  ;;  %v13056_v24 = vld [vmem:[%s18701_s7 + $0x1180] ss:$52 sps:$4 sm:$0xff]   ;;  %v13061_v26 = vld [vmem:[%s18701_s7 + $0x11e4] ss:$52 sps:$4 sm:$0xff]   ;;  %v15606_v34 = vsub.s32 4, %v14549_v21 }
 0x37e   :  { %v1493_v39 = vpop.f32.mrb[11].mxu1  ;;  %5668 = vmatprep.subr.bf16.mxu0 %v13001_v30  ;;  %5832 = vmatprep.subr.bf16.mxu1 %v13004_v31  ;;  %v13064_v29 = vld [vmem:[%s18701_s7 + $0x11ec] ss:$52 sps:$4 sm:$0xff]   ;;  %v13062_v31 = vld [vmem:[%s18701_s7 + $0x11e8] ss:$52 sps:$4 sm:$0xff]  }
 0x37f   :  { %v1580_v43 = vmax.f32 %v12430_v35, 0.0  ;;  %v13059_v30 = vld [vmem:[%s18701_s7 + $0x11e0] ss:$52 sps:$4 sm:$0xff]   ;;  %v581_v39 = vrot.slane %v15215_v27, %v15606_v34  ;;  %v13074_v27 = vld [vmem:[%s18701_s7 + $0x12b8] ss:$52 sps:$4 sm:$0xff]  }
 0x380   :  { %v13067_v35 = vld [vmem:[%s18701_s7 + $0x124c] ss:$52 sps:$4 sm:$0xff]   ;;  %v13070_v36 = vld [vmem:[%s18701_s7 + $0x1254] ss:$52 sps:$4 sm:$0xff]  }
 0x381   :  { %v15487_v44 = vpack.c.bf16 %v1580_v43, %v1580_v43  ;;  %5669 = vmatpush1.bf16.msra.mxu0 %v12999_v12  ;;  %5833 = vmatpush1.bf16.msra.mxu1 %v13002_v37  ;;  %v13065_v12 = vld [vmem:[%s18701_s7 + $0x1248] ss:$52 sps:$4 sm:$0xff]   ;;  %v13068_v37 = vld [vmem:[%s18701_s7 + $0x1250] ss:$52 sps:$4 sm:$0xff]  }
 0x382   :  { %5670 = vmatprep.subr.bf16.mxu0 %v13007_v40  ;;  %5834 = vmatprep.subr.bf16.mxu1 %v13010_v42  ;;  %v13073_v40 = vld [vmem:[%s18701_s7 + $0x12b4] ss:$52 sps:$4 sm:$0xff]   ;;  %v13076_v42 = vld [vmem:[%s18701_s7 + $0x12bc] ss:$52 sps:$4 sm:$0xff]  }
 0x383   :  { %5696 = vmatprep.mubr.bf16.mxu0 %v15487_v44  ;;  %5860 = vmatprep.mubr.bf16.mxu1 %v15487_v44  ;;  %v13071_v43 = vld [vmem:[%s18701_s7 + $0x12b0] ss:$52 sps:$4 sm:$0xff]  }
 0x385   :  { %5671 = vmatpush1.bf16.msra.mxu0 %v13005_v45  ;;  %5835 = vmatpush1.bf16.msra.mxu1 %v13008_v46  ;;  %v12429_v45 = vadd.f32 %v15473_v32, %v581_v39  ;;  %v13079_v46 = vld [vmem:[%s18701_s7 + $0x131c] ss:$52 sps:$4 sm:$0xff]   ;;  %v13080_v32 = vld [vmem:[%s18701_s7 + $0x1320] ss:$52 sps:$4 sm:$0xff]  }
 0x386   :  { %5672 = vmatprep.subr.bf16.mxu0 %v13013_v47  ;;  %5836 = vmatprep.subr.bf16.mxu1 %v13016_v48  ;;  %v13082_v47 = vld [vmem:[%s18701_s7 + $0x1324] ss:$52 sps:$4 sm:$0xff]  }
 0x387   :  { %v13077_v48 = vld [vmem:[%s18701_s7 + $0x1318] ss:$52 sps:$4 sm:$0xff]   ;;  %v13134_v39 = vld [vmem:[%s18701_s7 + $0x2f0] ss:$52 sps:$4 sm:$0xff]  }
 0x389   :  { %5673 = vmatpush1.bf16.msra.mxu0 %v13011_v49  ;;  %5837 = vmatpush1.bf16.msra.mxu1 %v13014_v52  ;;  %v1579_v49 = vmax.f32 %v12429_v45, 0.0  ;;  %v13085_v52 = vld [vmem:[%s18701_s7 + $0x1384] ss:$52 sps:$4 sm:$0xff]   ;;  %v13145_v45 = vld [vmem:[%s18701_s7 + $0x3bc] ss:$52 sps:$4 sm:$0xff]  }
 0x38a   :  { %5674 = vmatprep.subr.bf16.mxu0 %v13019_v54  ;;  %5838 = vmatprep.subr.bf16.mxu1 %v13022_v56  ;;  %v13088_v54 = vld [vmem:[%s18701_s7 + $0x138c] ss:$52 sps:$4 sm:$0xff]  }
 0x38b   :  { %v13083_v56 = vld [vmem:[%s18701_s7 + $0x1380] ss:$52 sps:$4 sm:$0xff]  }
 0x38d   :  { %5675 = vmatpush1.bf16.msra.mxu0 %v13017_v57  ;;  %5839 = vmatpush1.bf16.msra.mxu1 %v13020_v58  ;;  %v13086_v57 = vld [vmem:[%s18701_s7 + $0x1388] ss:$52 sps:$4 sm:$0xff]   ;;  %v15659_v58 = vpack.c.bf16 %v1579_v49, %v1579_v49  ;;  %v13154_v49 = vld [vmem:[%s18701_s7 + $0x42c] ss:$52 sps:$4 sm:$0xff]  }
 0x38e   :  { %5676 = vmatprep.subr.bf16.mxu0 %v13025_v59  ;;  %5840 = vmatprep.subr.bf16.mxu1 %v13028_v60  ;;  %v13091_v59 = vld [vmem:[%s18701_s7 + $0x14] ss:$52 sps:$4 sm:$0xff]   ;;  %v13094_v60 = vld [vmem:[%s18701_s7 + $0x1c] ss:$52 sps:$4 sm:$0xff]  }
 0x391   :  { %5677 = vmatpush1.bf16.msra.mxu0 %v13023_v61  ;;  %5841 = vmatpush1.bf16.msra.mxu1 %v13026_v62  ;;  %v1581_v61 = vmax.f32 %v15352_v38, 0.0  ;;  %v13089_v62 = vld [vmem:[%s18701_s7 + $0x10] ss:$52 sps:$4 sm:$0xff]   ;;  %v13095_v38 = vld [vmem:[%s18701_s7 + $0x78] ss:$52 sps:$4 sm:$0xff]  }
 0x392   :  { %5678 = vmatprep.subr.bf16.mxu0 %v13031_v63  ;;  %5842 = vmatprep.subr.bf16.mxu1 %v13034_v0  ;;  %v13092_v63 = vld [vmem:[%s18701_s7 + $0x18] ss:$52 sps:$4 sm:$0xff]  }
 0x393   :  { %v15678_v0 = vpack.c.bf16 %v1581_v61, %v1581_v61  ;;  %v13163_v61 = vld [vmem:[%s18701_s7 + $0x4f4] ss:$52 sps:$4 sm:$0xff]  }
 0x395   :  { %5679 = vmatpush1.bf16.msra.mxu0 %v13029_v1  ;;  %5843 = vmatpush1.bf16.msra.mxu1 %v13032_v2  ;;  %v13097_v1 = vld [vmem:[%s18701_s7 + $0x7c] ss:$52 sps:$4 sm:$0xff]   ;;  %v13100_v2 = vld [vmem:[%s18701_s7 + $0x84] ss:$52 sps:$4 sm:$0xff]  }
 0x396   :  { %5680 = vmatprep.subr.bf16.mxu0 %v13037_v5  ;;  %5844 = vmatprep.subr.bf16.mxu1 %v13040_v6  ;;  %v13098_v5 = vld [vmem:[%s18701_s7 + $0x80] ss:$52 sps:$4 sm:$0xff]   ;;  %v13103_v6 = vld [vmem:[%s18701_s7 + $0xe4] ss:$52 sps:$4 sm:$0xff]  }
 0x399   :  { %5681 = vmatpush1.bf16.msra.mxu0 %v13035_v7  ;;  %5845 = vmatpush1.bf16.msra.mxu1 %v13038_v8  ;;  %v13106_v7 = vld [vmem:[%s18701_s7 + $0xec] ss:$52 sps:$4 sm:$0xff]  }
 0x39a   :  { %5682 = vmatprep.subr.bf16.mxu0 %v13043_v9  ;;  %5846 = vmatprep.subr.bf16.mxu1 %v13046_v10  ;;  %v13101_v8 = vld [vmem:[%s18701_s7 + $0xe0] ss:$52 sps:$4 sm:$0xff]   ;;  %v13104_v9 = vld [vmem:[%s18701_s7 + $0xe8] ss:$52 sps:$4 sm:$0xff]  }
 0x39b   :  { %v13109_v10 = vld [vmem:[%s18701_s7 + $0x14c] ss:$52 sps:$4 sm:$0xff]  }
 0x39d   :  { %5683 = vmatpush1.bf16.msra.mxu0 %v13041_v11  ;;  %5847 = vmatpush1.bf16.msra.mxu1 %v13044_v33  ;;  %v13112_v11 = vld [vmem:[%s18701_s7 + $0x154] ss:$52 sps:$4 sm:$0xff]  }
 0x39e   :  { %5684 = vmatprep.subr.bf16.mxu0 %v13049_v13  ;;  %5848 = vmatprep.subr.bf16.mxu1 %v13052_v14  ;;  %v13107_v33 = vld [vmem:[%s18701_s7 + $0x148] ss:$52 sps:$4 sm:$0xff]   ;;  %v13110_v13 = vld [vmem:[%s18701_s7 + $0x150] ss:$52 sps:$4 sm:$0xff]  }
 0x39f   :  { %v13115_v14 = vld [vmem:[%s18701_s7 + $0x1b4] ss:$52 sps:$4 sm:$0xff]  }
 0x3a1   :  { %5685 = vmatpush1.bf16.msra.mxu0 %v13047_v16  ;;  %5849 = vmatpush1.bf16.msra.mxu1 %v13050_v17  ;;  %v13118_v16 = vld [vmem:[%s18701_s7 + $0x1bc] ss:$52 sps:$4 sm:$0xff]  }
 0x3a2   :  { %5686 = vmatprep.subr.bf16.mxu0 %v13055_v18  ;;  %5850 = vmatprep.subr.bf16.mxu1 %v13058_v22  ;;  %v13113_v17 = vld [vmem:[%s18701_s7 + $0x1b0] ss:$52 sps:$4 sm:$0xff]   ;;  %v13116_v18 = vld [vmem:[%s18701_s7 + $0x1b8] ss:$52 sps:$4 sm:$0xff]  }
 0x3a3   :  { %v13121_v22 = vld [vmem:[%s18701_s7 + $0x21c] ss:$52 sps:$4 sm:$0xff]  }
 0x3a5   :  { %5687 = vmatpush1.bf16.msra.mxu0 %v13053_v23  ;;  %5851 = vmatpush1.bf16.msra.mxu1 %v13056_v24  ;;  %v13124_v23 = vld [vmem:[%s18701_s7 + $0x224] ss:$52 sps:$4 sm:$0xff]  }
 0x3a6   :  { %5688 = vmatprep.subr.bf16.mxu0 %v13061_v26  ;;  %5852 = vmatprep.subr.bf16.mxu1 %v13064_v29  ;;  %v13119_v24 = vld [vmem:[%s18701_s7 + $0x218] ss:$52 sps:$4 sm:$0xff]   ;;  %v13122_v26 = vld [vmem:[%s18701_s7 + $0x220] ss:$52 sps:$4 sm:$0xff]  }
 0x3a7   :  { %v13127_v29 = vld [vmem:[%s18701_s7 + $0x284] ss:$52 sps:$4 sm:$0xff]  }
 0x3a9   :  { %5689 = vmatpush1.bf16.msra.mxu0 %v13059_v30  ;;  %5853 = vmatpush1.bf16.msra.mxu1 %v13062_v31  ;;  %v13130_v30 = vld [vmem:[%s18701_s7 + $0x28c] ss:$52 sps:$4 sm:$0xff]  }
 0x3aa   :  { %5690 = vmatprep.subr.bf16.mxu0 %v13067_v35  ;;  %5854 = vmatprep.subr.bf16.mxu1 %v13070_v36  ;;  %v13125_v31 = vld [vmem:[%s18701_s7 + $0x280] ss:$52 sps:$4 sm:$0xff]   ;;  %v13128_v35 = vld [vmem:[%s18701_s7 + $0x288] ss:$52 sps:$4 sm:$0xff]  }
 0x3ab   :  { %v13133_v36 = vld [vmem:[%s18701_s7 + $0x2ec] ss:$52 sps:$4 sm:$0xff]  }
 0x3ad   :  { %5691 = vmatpush1.bf16.msra.mxu0 %v13065_v12  ;;  %5855 = vmatpush1.bf16.msra.mxu1 %v13068_v37  ;;  %v13136_v12 = vld [vmem:[%s18701_s7 + $0x2f4] ss:$52 sps:$4 sm:$0xff]  }
 0x3ae   :  { %5692 = vmatprep.subr.bf16.mxu0 %v13073_v40  ;;  %5856 = vmatprep.subr.bf16.mxu1 %v13076_v42  ;;  %v13131_v37 = vld [vmem:[%s18701_s7 + $0x2e8] ss:$52 sps:$4 sm:$0xff]  }
 0x3af   :  { %v13139_v40 = vld [vmem:[%s18701_s7 + $0x354] ss:$52 sps:$4 sm:$0xff]   ;;  %v13142_v42 = vld [vmem:[%s18701_s7 + $0x35c] ss:$52 sps:$4 sm:$0xff]  }
 0x3b1   :  { %5693 = vmatpush1.bf16.msra.mxu0 %v13071_v43  ;;  %5857 = vmatpush1.bf16.msra.mxu1 %v13074_v27  ;;  %v13137_v43 = vld [vmem:[%s18701_s7 + $0x350] ss:$52 sps:$4 sm:$0xff]   ;;  %v13140_v27 = vld [vmem:[%s18701_s7 + $0x358] ss:$52 sps:$4 sm:$0xff]  }
 0x3b2   :  { %5694 = vmatprep.subr.bf16.mxu0 %v13079_v46  ;;  %5858 = vmatprep.subr.bf16.mxu1 %v13082_v47  ;;  %v13148_v46 = vld [vmem:[%s18701_s7 + $0x3c4] ss:$52 sps:$4 sm:$0xff]  }
 0x3b3   :  { %v13143_v47 = vld [vmem:[%s18701_s7 + $0x3b8] ss:$52 sps:$4 sm:$0xff]  }
 0x3b5   :  { %5695 = vmatpush1.bf16.msra.mxu0 %v13077_v48  ;;  %5859 = vmatpush1.bf16.msra.mxu1 %v13080_v32  ;;  %v13146_v48 = vld [vmem:[%s18701_s7 + $0x3c0] ss:$52 sps:$4 sm:$0xff]   ;;  %v13151_v32 = vld [vmem:[%s18701_s7 + $0x424] ss:$52 sps:$4 sm:$0xff]  }
 0x3b6   :  { %5705 = vmatprep.subr.bf16.mxu0 %v13085_v52  ;;  %5869 = vmatprep.subr.bf16.mxu1 %v13088_v54  ;;  %v13149_v52 = vld [vmem:[%s18701_s7 + $0x420] ss:$52 sps:$4 sm:$0xff]   ;;  %v13152_v54 = vld [vmem:[%s18701_s7 + $0x428] ss:$52 sps:$4 sm:$0xff]  }
 0x3b8   :  { %5697 = vmatmul.mubr.bf16.vlgmr.msra.gmra.mrb[20].mxu0 %v15659_v58  ;;  %5861 = vmatmul.mubr.bf16.vlgmr.msra.gmra.mrb[12].mxu1 %v15659_v58 }
 0x3b9   :  { %5706 = vmatpush1.bf16.msra.mxu0 %v13083_v56  ;;  %5870 = vmatpush1.bf16.msra.mxu1 %v13086_v57  ;;  %v13157_v56 = vld [vmem:[%s18701_s7 + $0x48c] ss:$52 sps:$4 sm:$0xff]   ;;  %v13160_v57 = vld [vmem:[%s18701_s7 + $0x494] ss:$52 sps:$4 sm:$0xff]  }
 0x3ba   :  { %5737 = vmatprep.mubr.bf16.mxu0 %v14435_v41  ;;  %5901 = vmatprep.mubr.bf16.mxu1 %v14435_v41 }
 0x3bb   :  { %5910 = vmatprep.subr.bf16.mxu0 %v13091_v59  ;;  %6074 = vmatprep.subr.bf16.mxu1 %v13094_v60  ;;  %v13155_v59 = vld [vmem:[%s18701_s7 + $0x488] ss:$52 sps:$4 sm:$0xff]   ;;  %v13158_v60 = vld [vmem:[%s18701_s7 + $0x490] ss:$52 sps:$4 sm:$0xff]  }
 0x3c4   :  { %11634 = vmatmul.mubr.msk.bf16.vlgmr.msra.gmra.mrb[20].mxu0 %vm5578_vm6, %v15678_v0  ;;  %11635 = vmatmul.mubr.msk.bf16.vlgmr.msra.gmra.mrb[12].mxu1 %vm5578_vm6, %v15678_v0 }
 0x3c5   :  { %5911 = vmatpush1.bf16.msra.mxu0 %v13089_v62  ;;  %6075 = vmatpush1.bf16.msra.mxu1 %v13092_v63  ;;  %v13166_v62 = vld [vmem:[%s18701_s7 + $0x4fc] ss:$52 sps:$4 sm:$0xff]  }
 0x3c6   :  { %5942 = vmatprep.mubr.bf16.mxu0 %v15234_v25  ;;  %6106 = vmatprep.mubr.bf16.mxu1 %v15234_v25  ;;  %v13161_v63 = vld [vmem:[%s18701_s7 + $0x4f0] ss:$52 sps:$4 sm:$0xff]  }
 0x3c7   :  { %5912 = vmatprep.subr.bf16.mxu0 %v13097_v1  ;;  %6076 = vmatprep.subr.bf16.mxu1 %v13100_v2  ;;  %v13164_v1 = vld [vmem:[%s18701_s7 + $0x4f8] ss:$52 sps:$4 sm:$0xff]   ;;  %v13169_v2 = vld [vmem:[%s18701_s7 + $0x55c] ss:$52 sps:$4 sm:$0xff]  }
 0x3c9   :  { %5913 = vmatpush1.bf16.msra.mxu0 %v13095_v38  ;;  %6077 = vmatpush1.bf16.msra.mxu1 %v13098_v5  ;;  %v13172_v38 = vld [vmem:[%s18701_s7 + $0x564] ss:$52 sps:$4 sm:$0xff]  }
 0x3ca   :  { %5914 = vmatprep.subr.bf16.mxu0 %v13103_v6  ;;  %6078 = vmatprep.subr.bf16.mxu1 %v13106_v7  ;;  %v13167_v5 = vld [vmem:[%s18701_s7 + $0x558] ss:$52 sps:$4 sm:$0xff]   ;;  %v13170_v6 = vld [vmem:[%s18701_s7 + $0x560] ss:$52 sps:$4 sm:$0xff]  }
 0x3cb   :  { %v13175_v7 = vld [vmem:[%s18701_s7 + $0x5c4] ss:$52 sps:$4 sm:$0xff]  }
 0x3cd   :  { %5915 = vmatpush1.bf16.msra.mxu0 %v13101_v8  ;;  %6079 = vmatpush1.bf16.msra.mxu1 %v13104_v9  ;;  %v13178_v8 = vld [vmem:[%s18701_s7 + $0x5cc] ss:$52 sps:$4 sm:$0xff]  }
 0x3ce   :  { %5916 = vmatprep.subr.bf16.mxu0 %v13109_v10  ;;  %6080 = vmatprep.subr.bf16.mxu1 %v13112_v11  ;;  %v13173_v9 = vld [vmem:[%s18701_s7 + $0x5c0] ss:$52 sps:$4 sm:$0xff]   ;;  %v13176_v10 = vld [vmem:[%s18701_s7 + $0x5c8] ss:$52 sps:$4 sm:$0xff]  }
 0x3cf   :  { %v13181_v11 = vld [vmem:[%s18701_s7 + $0x62c] ss:$52 sps:$4 sm:$0xff]  }
 0x3d1   :  { %5917 = vmatpush1.bf16.msra.mxu0 %v13107_v33  ;;  %6081 = vmatpush1.bf16.msra.mxu1 %v13110_v13  ;;  %v13184_v33 = vld [vmem:[%s18701_s7 + $0x634] ss:$52 sps:$4 sm:$0xff]  }
 0x3d2   :  { %5918 = vmatprep.subr.bf16.mxu0 %v13115_v14  ;;  %6082 = vmatprep.subr.bf16.mxu1 %v13118_v16  ;;  %v13179_v13 = vld [vmem:[%s18701_s7 + $0x628] ss:$52 sps:$4 sm:$0xff]   ;;  %v13182_v14 = vld [vmem:[%s18701_s7 + $0x630] ss:$52 sps:$4 sm:$0xff]  }
 0x3d3   :  { %v13187_v16 = vld [vmem:[%s18701_s7 + $0x694] ss:$52 sps:$4 sm:$0xff]  }
 0x3d5   :  { %5919 = vmatpush1.bf16.msra.mxu0 %v13113_v17  ;;  %6083 = vmatpush1.bf16.msra.mxu1 %v13116_v18  ;;  %v13190_v17 = vld [vmem:[%s18701_s7 + $0x69c] ss:$52 sps:$4 sm:$0xff]  }
 0x3d6   :  { %5920 = vmatprep.subr.bf16.mxu0 %v13121_v22  ;;  %6084 = vmatprep.subr.bf16.mxu1 %v13124_v23  ;;  %v13185_v18 = vld [vmem:[%s18701_s7 + $0x690] ss:$52 sps:$4 sm:$0xff]   ;;  %v13188_v22 = vld [vmem:[%s18701_s7 + $0x698] ss:$52 sps:$4 sm:$0xff]  }
 0x3d7   :  { %v13193_v23 = vld [vmem:[%s18701_s7 + $0x6fc] ss:$52 sps:$4 sm:$0xff]  }
 0x3d9   :  { %5921 = vmatpush1.bf16.msra.mxu0 %v13119_v24  ;;  %6085 = vmatpush1.bf16.msra.mxu1 %v13122_v26  ;;  %v13196_v24 = vld [vmem:[%s18701_s7 + $0x704] ss:$52 sps:$4 sm:$0xff]  }
 0x3da   :  { %5922 = vmatprep.subr.bf16.mxu0 %v13127_v29  ;;  %6086 = vmatprep.subr.bf16.mxu1 %v13130_v30  ;;  %v13191_v26 = vld [vmem:[%s18701_s7 + $0x6f8] ss:$52 sps:$4 sm:$0xff]   ;;  %v13194_v29 = vld [vmem:[%s18701_s7 + $0x700] ss:$52 sps:$4 sm:$0xff]  }
 0x3db   :  { %v13199_v30 = vld [vmem:[%s18701_s7 + $0x764] ss:$52 sps:$4 sm:$0xff]  }
 0x3dd   :  { %5923 = vmatpush1.bf16.msra.mxu0 %v13125_v31  ;;  %6087 = vmatpush1.bf16.msra.mxu1 %v13128_v35  ;;  %v13202_v31 = vld [vmem:[%s18701_s7 + $0x76c] ss:$52 sps:$4 sm:$0xff]  }
 0x3de   :  { %5924 = vmatprep.subr.bf16.mxu0 %v13133_v36  ;;  %6088 = vmatprep.subr.bf16.mxu1 %v13136_v12  ;;  %v13197_v35 = vld [vmem:[%s18701_s7 + $0x760] ss:$52 sps:$4 sm:$0xff]   ;;  %v13200_v36 = vld [vmem:[%s18701_s7 + $0x768] ss:$52 sps:$4 sm:$0xff]  }
 0x3df   :  { %v13205_v12 = vld [vmem:[%s18701_s7 + $0x7cc] ss:$52 sps:$4 sm:$0xff]  }
 0x3e1   :  { %5925 = vmatpush1.bf16.msra.mxu0 %v13131_v37  ;;  %6089 = vmatpush1.bf16.msra.mxu1 %v13134_v39  ;;  %v13208_v37 = vld [vmem:[%s18701_s7 + $0x7d4] ss:$52 sps:$4 sm:$0xff]  }
 0x3e2   :  { %5926 = vmatprep.subr.bf16.mxu0 %v13139_v40  ;;  %6090 = vmatprep.subr.bf16.mxu1 %v13142_v42  ;;  %v13203_v39 = vld [vmem:[%s18701_s7 + $0x7c8] ss:$52 sps:$4 sm:$0xff]   ;;  %v13206_v40 = vld [vmem:[%s18701_s7 + $0x7d0] ss:$52 sps:$4 sm:$0xff]  }
 0x3e3   :  { %v13211_v42 = vld [vmem:[%s18701_s7 + $0x834] ss:$52 sps:$4 sm:$0xff]  }
 0x3e5   :  { %5927 = vmatpush1.bf16.msra.mxu0 %v13137_v43  ;;  %6091 = vmatpush1.bf16.msra.mxu1 %v13140_v27  ;;  %v13214_v43 = vld [vmem:[%s18701_s7 + $0x83c] ss:$52 sps:$4 sm:$0xff]  }
 0x3e6   :  { %5928 = vmatprep.subr.bf16.mxu0 %v13145_v45  ;;  %6092 = vmatprep.subr.bf16.mxu1 %v13148_v46  ;;  %v13209_v27 = vld [vmem:[%s18701_s7 + $0x830] ss:$52 sps:$4 sm:$0xff]   ;;  %v13212_v45 = vld [vmem:[%s18701_s7 + $0x838] ss:$52 sps:$4 sm:$0xff]  }
 0x3e7   :  { %v13217_v46 = vld [vmem:[%s18701_s7 + $0x89c] ss:$52 sps:$4 sm:$0xff]  }
 0x3e9   :  { %5929 = vmatpush1.bf16.msra.mxu0 %v13143_v47  ;;  %6093 = vmatpush1.bf16.msra.mxu1 %v13146_v48  ;;  %v13220_v47 = vld [vmem:[%s18701_s7 + $0x8a4] ss:$52 sps:$4 sm:$0xff]  }
 0x3ea   :  { %5930 = vmatprep.subr.bf16.mxu0 %v13151_v32  ;;  %6094 = vmatprep.subr.bf16.mxu1 %v13154_v49  ;;  %v13215_v48 = vld [vmem:[%s18701_s7 + $0x898] ss:$52 sps:$4 sm:$0xff]   ;;  %v13218_v32 = vld [vmem:[%s18701_s7 + $0x8a0] ss:$52 sps:$4 sm:$0xff]  }
 0x3eb   :  { %v13223_v49 = vld [vmem:[%s18701_s7 + $0x904] ss:$52 sps:$4 sm:$0xff]  }
 0x3ed   :  { %5931 = vmatpush1.bf16.msra.mxu0 %v13149_v52  ;;  %6095 = vmatpush1.bf16.msra.mxu1 %v13152_v54  ;;  %v13226_v52 = vld [vmem:[%s18701_s7 + $0x90c] ss:$52 sps:$4 sm:$0xff]  }
 0x3ee   :  { %5932 = vmatprep.subr.bf16.mxu0 %v13157_v56  ;;  %6096 = vmatprep.subr.bf16.mxu1 %v13160_v57  ;;  %v13221_v54 = vld [vmem:[%s18701_s7 + $0x900] ss:$52 sps:$4 sm:$0xff]   ;;  %v13224_v56 = vld [vmem:[%s18701_s7 + $0x908] ss:$52 sps:$4 sm:$0xff]  }
 0x3ef   :  { %v13229_v57 = vld [vmem:[%s18701_s7 + $0x96c] ss:$52 sps:$4 sm:$0xff]  }
 0x3f1   :  { %5933 = vmatpush1.bf16.msra.mxu0 %v13155_v59  ;;  %6097 = vmatpush1.bf16.msra.mxu1 %v13158_v60  ;;  %v13232_v59 = vld [vmem:[%s18701_s7 + $0x974] ss:$52 sps:$4 sm:$0xff]  }
 0x3f2   :  { %5934 = vmatprep.subr.bf16.mxu0 %v13163_v61  ;;  %6098 = vmatprep.subr.bf16.mxu1 %v13166_v62  ;;  %v13227_v60 = vld [vmem:[%s18701_s7 + $0x968] ss:$52 sps:$4 sm:$0xff]   ;;  %v13230_v61 = vld [vmem:[%s18701_s7 + $0x970] ss:$52 sps:$4 sm:$0xff]  }
 0x3f3   :  { %v13235_v62 = vld [vmem:[%s18701_s7 + $0x9d4] ss:$52 sps:$4 sm:$0xff]  }
 0x3f5   :  { %5935 = vmatpush1.bf16.msra.mxu0 %v13161_v63  ;;  %6099 = vmatpush1.bf16.msra.mxu1 %v13164_v1  ;;  %v13238_v63 = vld [vmem:[%s18701_s7 + $0x9dc] ss:$52 sps:$4 sm:$0xff]  }
 0x3f6   :  { %5936 = vmatprep.subr.bf16.mxu0 %v13169_v2  ;;  %6100 = vmatprep.subr.bf16.mxu1 %v13172_v38  ;;  %v13233_v1 = vld [vmem:[%s18701_s7 + $0x9d0] ss:$52 sps:$4 sm:$0xff]   ;;  %v13236_v2 = vld [vmem:[%s18701_s7 + $0x9d8] ss:$52 sps:$4 sm:$0xff]  }
 0x3f7   :  { %v13241_v38 = vld [vmem:[%s18701_s7 + $0xa3c] ss:$52 sps:$4 sm:$0xff]  }
 0x3f9   :  { %5937 = vmatpush1.bf16.msra.mxu0 %v13167_v5  ;;  %6101 = vmatpush1.bf16.msra.mxu1 %v13170_v6  ;;  %v13244_v5 = vld [vmem:[%s18701_s7 + $0xa44] ss:$52 sps:$4 sm:$0xff]  }
 0x3fa   :  { %5938 = vmatprep.subr.bf16.mxu0 %v13175_v7  ;;  %6102 = vmatprep.subr.bf16.mxu1 %v13178_v8  ;;  %v13239_v6 = vld [vmem:[%s18701_s7 + $0xa38] ss:$52 sps:$4 sm:$0xff]   ;;  %v13242_v7 = vld [vmem:[%s18701_s7 + $0xa40] ss:$52 sps:$4 sm:$0xff]  }
 0x3fb   :  { %v13247_v8 = vld [vmem:[%s18701_s7 + $0xaa4] ss:$52 sps:$4 sm:$0xff]  }
 0x3fd   :  { %5939 = vmatpush1.bf16.msra.mxu0 %v13173_v9  ;;  %6103 = vmatpush1.bf16.msra.mxu1 %v13176_v10  ;;  %v13250_v9 = vld [vmem:[%s18701_s7 + $0xaac] ss:$52 sps:$4 sm:$0xff]  }
 0x3fe   :  { %5940 = vmatprep.subr.bf16.mxu0 %v13181_v11  ;;  %6104 = vmatprep.subr.bf16.mxu1 %v13184_v33  ;;  %v13245_v10 = vld [vmem:[%s18701_s7 + $0xaa0] ss:$52 sps:$4 sm:$0xff]   ;;  %v13248_v11 = vld [vmem:[%s18701_s7 + $0xaa8] ss:$52 sps:$4 sm:$0xff]  }
 0x3ff   :  { %v13253_v33 = vld [vmem:[%s18701_s7 + $0xb0c] ss:$52 sps:$4 sm:$0xff]  }
 0x401   :  { %5941 = vmatpush1.bf16.msra.mxu0 %v13179_v13  ;;  %6105 = vmatpush1.bf16.msra.mxu1 %v13182_v14  ;;  %v13256_v13 = vld [vmem:[%s18701_s7 + $0xb14] ss:$52 sps:$4 sm:$0xff]  }
 0x402   :  { %5951 = vmatprep.subr.bf16.mxu0 %v13187_v16  ;;  %6115 = vmatprep.subr.bf16.mxu1 %v13190_v17  ;;  %v13251_v14 = vld [vmem:[%s18701_s7 + $0xb08] ss:$52 sps:$4 sm:$0xff]   ;;  %v13254_v16 = vld [vmem:[%s18701_s7 + $0xb10] ss:$52 sps:$4 sm:$0xff]  }
 0x403   :  { %v13259_v17 = vld [vmem:[%s18701_s7 + $0xb74] ss:$52 sps:$4 sm:$0xff]  }
 0x404   :  { %5943 = vmatmul.mubr.bf16.vlgmr.msra.gmra.mrb[24].mxu0 %v15242_v50  ;;  %6107 = vmatmul.mubr.bf16.vlgmr.msra.gmra.mrb[16].mxu1 %v15242_v50 }
 0x405   :  { %5952 = vmatpush1.bf16.msra.mxu0 %v13185_v18  ;;  %5983 = vmatprep.mubr.bf16.mxu0 %v15246_v51  ;;  %v13262_v18 = vld [vmem:[%s18701_s7 + $0xb7c] ss:$52 sps:$4 sm:$0xff]  }
 0x406   :  { %6116 = vmatpush1.bf16.msra.mxu1 %v13188_v22  ;;  %6147 = vmatprep.mubr.bf16.mxu1 %v15246_v51  ;;  %v13257_v22 = vld [vmem:[%s18701_s7 + $0xb70] ss:$52 sps:$4 sm:$0xff]  }
 0x407   :  { %5953 = vmatprep.subr.bf16.mxu0 %v13193_v23  ;;  %6117 = vmatprep.subr.bf16.mxu1 %v13196_v24  ;;  %v13260_v23 = vld [vmem:[%s18701_s7 + $0xb78] ss:$52 sps:$4 sm:$0xff]   ;;  %v13265_v24 = vld [vmem:[%s18701_s7 + $0xbdc] ss:$52 sps:$4 sm:$0xff]  }
 0x409   :  { %5954 = vmatpush1.bf16.msra.mxu0 %v13191_v26  ;;  %v13268_v26 = vld [vmem:[%s18701_s7 + $0xbe4] ss:$52 sps:$4 sm:$0xff]  }
 0x40a   :  { %6118 = vmatpush1.bf16.msra.mxu1 %v13194_v29  ;;  %5955 = vmatprep.subr.bf16.mxu0 %v13199_v30  ;;  %v13263_v29 = vld [vmem:[%s18701_s7 + $0xbd8] ss:$52 sps:$4 sm:$0xff]   ;;  %v13266_v30 = vld [vmem:[%s18701_s7 + $0xbe0] ss:$52 sps:$4 sm:$0xff]  }
 0x40b   :  { %6119 = vmatprep.subr.bf16.mxu1 %v13202_v31  ;;  %v13271_v31 = vld [vmem:[%s18701_s7 + $0xc44] ss:$52 sps:$4 sm:$0xff]  }
 0x40d   :  { %5956 = vmatpush1.bf16.msra.mxu0 %v13197_v35  ;;  %v13274_v35 = vld [vmem:[%s18701_s7 + $0xc4c] ss:$52 sps:$4 sm:$0xff]  }
 0x40e   :  { %6120 = vmatpush1.bf16.msra.mxu1 %v13200_v36  ;;  %5957 = vmatprep.subr.bf16.mxu0 %v13205_v12  ;;  %v13269_v36 = vld [vmem:[%s18701_s7 + $0xc40] ss:$52 sps:$4 sm:$0xff]   ;;  %v13272_v12 = vld [vmem:[%s18701_s7 + $0xc48] ss:$52 sps:$4 sm:$0xff]  }
 0x40f   :  { %6121 = vmatprep.subr.bf16.mxu1 %v13208_v37  ;;  %v13277_v37 = vld [vmem:[%s18701_s7 + $0xcac] ss:$52 sps:$4 sm:$0xff]  }
 0x411   :  { %5958 = vmatpush1.bf16.msra.mxu0 %v13203_v39  ;;  %v13280_v39 = vld [vmem:[%s18701_s7 + $0xcb4] ss:$52 sps:$4 sm:$0xff]  }
 0x412   :  { %6122 = vmatpush1.bf16.msra.mxu1 %v13206_v40  ;;  %5959 = vmatprep.subr.bf16.mxu0 %v13211_v42  ;;  %v13275_v40 = vld [vmem:[%s18701_s7 + $0xca8] ss:$52 sps:$4 sm:$0xff]   ;;  %v13278_v42 = vld [vmem:[%s18701_s7 + $0xcb0] ss:$52 sps:$4 sm:$0xff]  }
 0x413   :  { %6123 = vmatprep.subr.bf16.mxu1 %v13214_v43  ;;  %v13283_v43 = vld [vmem:[%s18701_s7 + $0xd14] ss:$52 sps:$4 sm:$0xff]  }
 0x415   :  { %5960 = vmatpush1.bf16.msra.mxu0 %v13209_v27  ;;  %v13286_v27 = vld [vmem:[%s18701_s7 + $0xd1c] ss:$52 sps:$4 sm:$0xff]  }
 0x416   :  { %6124 = vmatpush1.bf16.msra.mxu1 %v13212_v45  ;;  %5961 = vmatprep.subr.bf16.mxu0 %v13217_v46  ;;  %v13281_v45 = vld [vmem:[%s18701_s7 + $0xd10] ss:$52 sps:$4 sm:$0xff]   ;;  %v13284_v46 = vld [vmem:[%s18701_s7 + $0xd18] ss:$52 sps:$4 sm:$0xff]  }
 0x417   :  { %6125 = vmatprep.subr.bf16.mxu1 %v13220_v47  ;;  %v13289_v47 = vld [vmem:[%s18701_s7 + $0xd7c] ss:$52 sps:$4 sm:$0xff]  }
 0x419   :  { %5962 = vmatpush1.bf16.msra.mxu0 %v13215_v48  ;;  %v13292_v48 = vld [vmem:[%s18701_s7 + $0xd84] ss:$52 sps:$4 sm:$0xff]  }
 0x41a   :  { %6126 = vmatpush1.bf16.msra.mxu1 %v13218_v32  ;;  %5963 = vmatprep.subr.bf16.mxu0 %v13223_v49  ;;  %v13287_v32 = vld [vmem:[%s18701_s7 + $0xd78] ss:$52 sps:$4 sm:$0xff]   ;;  %v13290_v49 = vld [vmem:[%s18701_s7 + $0xd80] ss:$52 sps:$4 sm:$0xff]  }
 0x41b   :  { %6127 = vmatprep.subr.bf16.mxu1 %v13226_v52  ;;  %v13295_v52 = vld [vmem:[%s18701_s7 + $0xde4] ss:$52 sps:$4 sm:$0xff]  }
 0x41d   :  { %5964 = vmatpush1.bf16.msra.mxu0 %v13221_v54  ;;  %v13298_v54 = vld [vmem:[%s18701_s7 + $0xdec] ss:$52 sps:$4 sm:$0xff]  }
 0x41e   :  { %6128 = vmatpush1.bf16.msra.mxu1 %v13224_v56  ;;  %5965 = vmatprep.subr.bf16.mxu0 %v13229_v57  ;;  %v13293_v56 = vld [vmem:[%s18701_s7 + $0xde0] ss:$52 sps:$4 sm:$0xff]   ;;  %v13296_v57 = vld [vmem:[%s18701_s7 + $0xde8] ss:$52 sps:$4 sm:$0xff]  }
 0x41f   :  { %6129 = vmatprep.subr.bf16.mxu1 %v13232_v59  ;;  %v13301_v59 = vld [vmem:[%s18701_s7 + $0xe4c] ss:$52 sps:$4 sm:$0xff]  }
 0x421   :  { %5966 = vmatpush1.bf16.msra.mxu0 %v13227_v60  ;;  %v13304_v60 = vld [vmem:[%s18701_s7 + $0xe54] ss:$52 sps:$4 sm:$0xff]  }
 0x422   :  { %6130 = vmatpush1.bf16.msra.mxu1 %v13230_v61  ;;  %5967 = vmatprep.subr.bf16.mxu0 %v13235_v62  ;;  %v13299_v61 = vld [vmem:[%s18701_s7 + $0xe48] ss:$52 sps:$4 sm:$0xff]   ;;  %v13302_v62 = vld [vmem:[%s18701_s7 + $0xe50] ss:$52 sps:$4 sm:$0xff]  }
 0x423   :  { %6131 = vmatprep.subr.bf16.mxu1 %v13238_v63  ;;  %v13307_v63 = vld [vmem:[%s18701_s7 + $0xeb4] ss:$52 sps:$4 sm:$0xff]  }
 0x425   :  { %5968 = vmatpush1.bf16.msra.mxu0 %v13233_v1  ;;  %v13310_v1 = vld [vmem:[%s18701_s7 + $0xebc] ss:$52 sps:$4 sm:$0xff]  }
 0x426   :  { %6132 = vmatpush1.bf16.msra.mxu1 %v13236_v2  ;;  %5969 = vmatprep.subr.bf16.mxu0 %v13241_v38  ;;  %v13305_v2 = vld [vmem:[%s18701_s7 + $0xeb0] ss:$52 sps:$4 sm:$0xff]   ;;  %v13308_v38 = vld [vmem:[%s18701_s7 + $0xeb8] ss:$52 sps:$4 sm:$0xff]  }
 0x427   :  { %6133 = vmatprep.subr.bf16.mxu1 %v13244_v5  ;;  %v13313_v5 = vld [vmem:[%s18701_s7 + $0xf1c] ss:$52 sps:$4 sm:$0xff]  }
 0x429   :  { %5970 = vmatpush1.bf16.msra.mxu0 %v13239_v6  ;;  %v13316_v6 = vld [vmem:[%s18701_s7 + $0xf24] ss:$52 sps:$4 sm:$0xff]  }
 0x42a   :  { %6134 = vmatpush1.bf16.msra.mxu1 %v13242_v7  ;;  %5971 = vmatprep.subr.bf16.mxu0 %v13247_v8  ;;  %v13311_v7 = vld [vmem:[%s18701_s7 + $0xf18] ss:$52 sps:$4 sm:$0xff]   ;;  %v13314_v8 = vld [vmem:[%s18701_s7 + $0xf20] ss:$52 sps:$4 sm:$0xff]  }
 0x42b   :  { %6135 = vmatprep.subr.bf16.mxu1 %v13250_v9  ;;  %v13319_v9 = vld [vmem:[%s18701_s7 + $0xf84] ss:$52 sps:$4 sm:$0xff]  }
 0x42d   :  { %5972 = vmatpush1.bf16.msra.mxu0 %v13245_v10  ;;  %v13322_v10 = vld [vmem:[%s18701_s7 + $0xf8c] ss:$52 sps:$4 sm:$0xff]  }
 0x42e   :  { %6136 = vmatpush1.bf16.msra.mxu1 %v13248_v11  ;;  %5973 = vmatprep.subr.bf16.mxu0 %v13253_v33  ;;  %v13317_v11 = vld [vmem:[%s18701_s7 + $0xf80] ss:$52 sps:$4 sm:$0xff]   ;;  %v13320_v33 = vld [vmem:[%s18701_s7 + $0xf88] ss:$52 sps:$4 sm:$0xff]  }
 0x42f   :  { %6137 = vmatprep.subr.bf16.mxu1 %v13256_v13  ;;  %v13325_v13 = vld [vmem:[%s18701_s7 + $0xfec] ss:$52 sps:$4 sm:$0xff]  }
 0x431   :  { %5974 = vmatpush1.bf16.msra.mxu0 %v13251_v14  ;;  %v13328_v14 = vld [vmem:[%s18701_s7 + $0xff4] ss:$52 sps:$4 sm:$0xff]  }
 0x432   :  { %6138 = vmatpush1.bf16.msra.mxu1 %v13254_v16  ;;  %5975 = vmatprep.subr.bf16.mxu0 %v13259_v17  ;;  %v13323_v16 = vld [vmem:[%s18701_s7 + $0xfe8] ss:$52 sps:$4 sm:$0xff]   ;;  %v13326_v17 = vld [vmem:[%s18701_s7 + $0xff0] ss:$52 sps:$4 sm:$0xff]  }
 0x433   :  { %6139 = vmatprep.subr.bf16.mxu1 %v13262_v18  ;;  %v13331_v18 = vld [vmem:[%s18701_s7 + $0x1054] ss:$52 sps:$4 sm:$0xff]  }
 0x435   :  { %5976 = vmatpush1.bf16.msra.mxu0 %v13257_v22  ;;  %v13334_v22 = vld [vmem:[%s18701_s7 + $0x105c] ss:$52 sps:$4 sm:$0xff]  }
 0x436   :  { %6140 = vmatpush1.bf16.msra.mxu1 %v13260_v23  ;;  %5977 = vmatprep.subr.bf16.mxu0 %v13265_v24  ;;  %v13329_v23 = vld [vmem:[%s18701_s7 + $0x1050] ss:$52 sps:$4 sm:$0xff]   ;;  %v13332_v24 = vld [vmem:[%s18701_s7 + $0x1058] ss:$52 sps:$4 sm:$0xff]  }
 0x437   :  { %6141 = vmatprep.subr.bf16.mxu1 %v13268_v26  ;;  %v13337_v26 = vld [vmem:[%s18701_s7 + $0x10bc] ss:$52 sps:$4 sm:$0xff]  }
 0x439   :  { %5978 = vmatpush1.bf16.msra.mxu0 %v13263_v29  ;;  %v13340_v29 = vld [vmem:[%s18701_s7 + $0x10c4] ss:$52 sps:$4 sm:$0xff]  }
 0x43a   :  { %6142 = vmatpush1.bf16.msra.mxu1 %v13266_v30  ;;  %5979 = vmatprep.subr.bf16.mxu0 %v13271_v31  ;;  %v13335_v30 = vld [vmem:[%s18701_s7 + $0x10b8] ss:$52 sps:$4 sm:$0xff]   ;;  %v13338_v31 = vld [vmem:[%s18701_s7 + $0x10c0] ss:$52 sps:$4 sm:$0xff]  }
 0x43b   :  { %6143 = vmatprep.subr.bf16.mxu1 %v13274_v35  ;;  %v13343_v35 = vld [vmem:[%s18701_s7 + $0x1124] ss:$52 sps:$4 sm:$0xff]  }
 0x43d   :  { %5980 = vmatpush1.bf16.msra.mxu0 %v13269_v36  ;;  %v13346_v36 = vld [vmem:[%s18701_s7 + $0x112c] ss:$52 sps:$4 sm:$0xff]  }
 0x43e   :  { %6144 = vmatpush1.bf16.msra.mxu1 %v13272_v12  ;;  %5981 = vmatprep.subr.bf16.mxu0 %v13277_v37  ;;  %v13341_v12 = vld [vmem:[%s18701_s7 + $0x1120] ss:$52 sps:$4 sm:$0xff]   ;;  %v13344_v37 = vld [vmem:[%s18701_s7 + $0x1128] ss:$52 sps:$4 sm:$0xff]  }
 0x43f   :  { %6145 = vmatprep.subr.bf16.mxu1 %v13280_v39  ;;  %v13349_v39 = vld [vmem:[%s18701_s7 + $0x118c] ss:$52 sps:$4 sm:$0xff]  }
 0x441   :  { %5982 = vmatpush1.bf16.msra.mxu0 %v13275_v40  ;;  %v13352_v40 = vld [vmem:[%s18701_s7 + $0x1194] ss:$52 sps:$4 sm:$0xff]  }
 0x442   :  { %6146 = vmatpush1.bf16.msra.mxu1 %v13278_v42  ;;  %5992 = vmatprep.subr.bf16.mxu0 %v13283_v43  ;;  %v13347_v42 = vld [vmem:[%s18701_s7 + $0x1188] ss:$52 sps:$4 sm:$0xff]   ;;  %v13350_v43 = vld [vmem:[%s18701_s7 + $0x1190] ss:$52 sps:$4 sm:$0xff]  }
 0x443   :  { %6156 = vmatprep.subr.bf16.mxu1 %v13286_v27  ;;  %v13355_v27 = vld [vmem:[%s18701_s7 + $0x11f4] ss:$52 sps:$4 sm:$0xff]  }
 0x444   :  { %5984 = vmatmul.mubr.bf16.vlgmr.msra.gmra.mrb[24].mxu0 %v15448_v20 }
 0x445   :  { %6148 = vmatmul.mubr.bf16.vlgmr.msra.gmra.mrb[16].mxu1 %v15448_v20  ;;  %5993 = vmatpush1.bf16.msra.mxu0 %v13281_v45  ;;  %v13358_v45 = vld [vmem:[%s18701_s7 + $0x11fc] ss:$52 sps:$4 sm:$0xff]  }
 0x446   :  { %6024 = vmatprep.mubr.bf16.mxu0 %v15487_v44  ;;  %6157 = vmatpush1.bf16.msra.mxu1 %v13284_v46  ;;  %v13353_v46 = vld [vmem:[%s18701_s7 + $0x11f0] ss:$52 sps:$4 sm:$0xff]  }
 0x447   :  { %6188 = vmatprep.mubr.bf16.mxu1 %v15487_v44  ;;  %5994 = vmatprep.subr.bf16.mxu0 %v13289_v47  ;;  %v13356_v47 = vld [vmem:[%s18701_s7 + $0x11f8] ss:$52 sps:$4 sm:$0xff]  }
 0x448   :  { %6158 = vmatprep.subr.bf16.mxu1 %v13292_v48  ;;  %v13361_v48 = vld [vmem:[%s18701_s7 + $0x125c] ss:$52 sps:$4 sm:$0xff]  }
 0x449   :  { %5995 = vmatpush1.bf16.msra.mxu0 %v13287_v32  ;;  %v13364_v32 = vld [vmem:[%s18701_s7 + $0x1264] ss:$52 sps:$4 sm:$0xff]  }
 0x44a   :  { %6159 = vmatpush1.bf16.msra.mxu1 %v13290_v49  ;;  %5996 = vmatprep.subr.bf16.mxu0 %v13295_v52  ;;  %v13359_v49 = vld [vmem:[%s18701_s7 + $0x1258] ss:$52 sps:$4 sm:$0xff]   ;;  %v13362_v52 = vld [vmem:[%s18701_s7 + $0x1260] ss:$52 sps:$4 sm:$0xff]  }
 0x44b   :  { %6160 = vmatprep.subr.bf16.mxu1 %v13298_v54  ;;  %v13367_v54 = vld [vmem:[%s18701_s7 + $0x12c4] ss:$52 sps:$4 sm:$0xff]  }
 0x44d   :  { %5997 = vmatpush1.bf16.msra.mxu0 %v13293_v56  ;;  %v13370_v56 = vld [vmem:[%s18701_s7 + $0x12cc] ss:$52 sps:$4 sm:$0xff]  }
 0x44e   :  { %6161 = vmatpush1.bf16.msra.mxu1 %v13296_v57  ;;  %5998 = vmatprep.subr.bf16.mxu0 %v13301_v59  ;;  %v13365_v57 = vld [vmem:[%s18701_s7 + $0x12c0] ss:$52 sps:$4 sm:$0xff]   ;;  %v13368_v59 = vld [vmem:[%s18701_s7 + $0x12c8] ss:$52 sps:$4 sm:$0xff]  }
 0x44f   :  { %6162 = vmatprep.subr.bf16.mxu1 %v13304_v60  ;;  %v13373_v60 = vld [vmem:[%s18701_s7 + $0x132c] ss:$52 sps:$4 sm:$0xff]  }
 0x451   :  { %5999 = vmatpush1.bf16.msra.mxu0 %v13299_v61  ;;  %v13376_v61 = vld [vmem:[%s18701_s7 + $0x1334] ss:$52 sps:$4 sm:$0xff]  }
 0x452   :  { %6163 = vmatpush1.bf16.msra.mxu1 %v13302_v62  ;;  %6000 = vmatprep.subr.bf16.mxu0 %v13307_v63  ;;  %v13371_v62 = vld [vmem:[%s18701_s7 + $0x1328] ss:$52 sps:$4 sm:$0xff]   ;;  %v13374_v63 = vld [vmem:[%s18701_s7 + $0x1330] ss:$52 sps:$4 sm:$0xff]  }
 0x453   :  { %6164 = vmatprep.subr.bf16.mxu1 %v13310_v1  ;;  %v13379_v1 = vld [vmem:[%s18701_s7 + $0x1394] ss:$52 sps:$4 sm:$0xff]  }
 0x455   :  { %6001 = vmatpush1.bf16.msra.mxu0 %v13305_v2  ;;  %v13382_v2 = vld [vmem:[%s18701_s7 + $0x139c] ss:$52 sps:$4 sm:$0xff]  }
 0x456   :  { %6165 = vmatpush1.bf16.msra.mxu1 %v13308_v38  ;;  %6002 = vmatprep.subr.bf16.mxu0 %v13313_v5  ;;  %v13377_v38 = vld [vmem:[%s18701_s7 + $0x1390] ss:$52 sps:$4 sm:$0xff]   ;;  %v13380_v5 = vld [vmem:[%s18701_s7 + $0x1398] ss:$52 sps:$4 sm:$0xff]  }
 0x457   :  { %6166 = vmatprep.subr.bf16.mxu1 %v13316_v6  ;;  %v13385_v6 = vld [vmem:[%s18701_s7 + $0x24] ss:$52 sps:$4 sm:$0xff]  }
 0x459   :  { %6003 = vmatpush1.bf16.msra.mxu0 %v13311_v7  ;;  %v13388_v7 = vld [vmem:[%s18701_s7 + $0x2c] ss:$52 sps:$4 sm:$0xff]  }
 0x45a   :  { %6167 = vmatpush1.bf16.msra.mxu1 %v13314_v8  ;;  %6004 = vmatprep.subr.bf16.mxu0 %v13319_v9  ;;  %v13383_v8 = vld [vmem:[%s18701_s7 + $0x20] ss:$52 sps:$4 sm:$0xff]   ;;  %v13386_v9 = vld [vmem:[%s18701_s7 + $0x28] ss:$52 sps:$4 sm:$0xff]  }
 0x45b   :  { %6168 = vmatprep.subr.bf16.mxu1 %v13322_v10  ;;  %v13391_v10 = vld [vmem:[%s18701_s7 + $0x8c] ss:$52 sps:$4 sm:$0xff]  }
 0x45d   :  { %6005 = vmatpush1.bf16.msra.mxu0 %v13317_v11  ;;  %v13394_v11 = vld [vmem:[%s18701_s7 + $0x94] ss:$52 sps:$4 sm:$0xff]  }
 0x45e   :  { %6169 = vmatpush1.bf16.msra.mxu1 %v13320_v33  ;;  %6006 = vmatprep.subr.bf16.mxu0 %v13325_v13  ;;  %v13389_v33 = vld [vmem:[%s18701_s7 + $0x88] ss:$52 sps:$4 sm:$0xff]   ;;  %v13392_v13 = vld [vmem:[%s18701_s7 + $0x90] ss:$52 sps:$4 sm:$0xff]  }
 0x45f   :  { %6170 = vmatprep.subr.bf16.mxu1 %v13328_v14  ;;  %v13397_v14 = vld [vmem:[%s18701_s7 + $0xf4] ss:$52 sps:$4 sm:$0xff]  }
 0x461   :  { %6007 = vmatpush1.bf16.msra.mxu0 %v13323_v16  ;;  %v13400_v16 = vld [vmem:[%s18701_s7 + $0xfc] ss:$52 sps:$4 sm:$0xff]  }
 0x462   :  { %6171 = vmatpush1.bf16.msra.mxu1 %v13326_v17  ;;  %6008 = vmatprep.subr.bf16.mxu0 %v13331_v18  ;;  %v13395_v17 = vld [vmem:[%s18701_s7 + $0xf0] ss:$52 sps:$4 sm:$0xff]   ;;  %v13398_v18 = vld [vmem:[%s18701_s7 + $0xf8] ss:$52 sps:$4 sm:$0xff]  }
 0x463   :  { %6172 = vmatprep.subr.bf16.mxu1 %v13334_v22  ;;  %v13403_v22 = vld [vmem:[%s18701_s7 + $0x15c] ss:$52 sps:$4 sm:$0xff]  }
 0x465   :  { %6009 = vmatpush1.bf16.msra.mxu0 %v13329_v23 }
 0x466   :  { %6173 = vmatpush1.bf16.msra.mxu1 %v13332_v24  ;;  %6010 = vmatprep.subr.bf16.mxu0 %v13337_v26  ;;  %v13406_v26 = vld [vmem:[%s18701_s7 + $0x164] ss:$52 sps:$4 sm:$0xff]  }
 0x467   :  { %6174 = vmatprep.subr.bf16.mxu1 %v13340_v29 }
 0x469   :  { %6011 = vmatpush1.bf16.msra.mxu0 %v13335_v30 }
 0x46a   :  { %6175 = vmatpush1.bf16.msra.mxu1 %v13338_v31  ;;  %6012 = vmatprep.subr.bf16.mxu0 %v13343_v35 }
 0x46b   :  { %6176 = vmatprep.subr.bf16.mxu1 %v13346_v36  ;;  %v13401_v36 = vld [vmem:[%s18701_s7 + $0x158] ss:$52 sps:$4 sm:$0xff]  }
 0x46d   :  { %6013 = vmatpush1.bf16.msra.mxu0 %v13341_v12 }
 0x46e   :  { %6177 = vmatpush1.bf16.msra.mxu1 %v13344_v37  ;;  %6014 = vmatprep.subr.bf16.mxu0 %v13349_v39  ;;  %v13404_v39 = vld [vmem:[%s18701_s7 + $0x160] ss:$52 sps:$4 sm:$0xff]  }
 0x46f   :  { %6178 = vmatprep.subr.bf16.mxu1 %v13352_v40  ;;  %v13409_v40 = vld [vmem:[%s18701_s7 + $0x1c4] ss:$52 sps:$4 sm:$0xff]  }
 0x471   :  { %6015 = vmatpush1.bf16.msra.mxu0 %v13347_v42  ;;  %v13412_v42 = vld [vmem:[%s18701_s7 + $0x1cc] ss:$52 sps:$4 sm:$0xff]  }
 0x472   :  { %6179 = vmatpush1.bf16.msra.mxu1 %v13350_v43  ;;  %6016 = vmatprep.subr.bf16.mxu0 %v13355_v27  ;;  %v13407_v43 = vld [vmem:[%s18701_s7 + $0x1c0] ss:$52 sps:$4 sm:$0xff]   ;;  %v13410_v27 = vld [vmem:[%s18701_s7 + $0x1c8] ss:$52 sps:$4 sm:$0xff]  }
 0x473   :  { %6180 = vmatprep.subr.bf16.mxu1 %v13358_v45  ;;  %v13415_v45 = vld [vmem:[%s18701_s7 + $0x22c] ss:$52 sps:$4 sm:$0xff]  }
 0x475   :  { %6017 = vmatpush1.bf16.msra.mxu0 %v13353_v46  ;;  %v13418_v46 = vld [vmem:[%s18701_s7 + $0x234] ss:$52 sps:$4 sm:$0xff]  }
 0x476   :  { %6181 = vmatpush1.bf16.msra.mxu1 %v13356_v47  ;;  %6018 = vmatprep.subr.bf16.mxu0 %v13361_v48  ;;  %v13413_v47 = vld [vmem:[%s18701_s7 + $0x228] ss:$52 sps:$4 sm:$0xff]   ;;  %v13416_v48 = vld [vmem:[%s18701_s7 + $0x230] ss:$52 sps:$4 sm:$0xff]  }
 0x477   :  { %6182 = vmatprep.subr.bf16.mxu1 %v13364_v32  ;;  %v13421_v32 = vld [vmem:[%s18701_s7 + $0x294] ss:$52 sps:$4 sm:$0xff]  }
 0x479   :  { %6019 = vmatpush1.bf16.msra.mxu0 %v13359_v49  ;;  %v13424_v49 = vld [vmem:[%s18701_s7 + $0x29c] ss:$52 sps:$4 sm:$0xff]  }
 0x47a   :  { %6183 = vmatpush1.bf16.msra.mxu1 %v13362_v52  ;;  %6020 = vmatprep.subr.bf16.mxu0 %v13367_v54  ;;  %v13419_v52 = vld [vmem:[%s18701_s7 + $0x290] ss:$52 sps:$4 sm:$0xff]   ;;  %v13422_v54 = vld [vmem:[%s18701_s7 + $0x298] ss:$52 sps:$4 sm:$0xff]  }
 0x47b   :  { %6184 = vmatprep.subr.bf16.mxu1 %v13370_v56  ;;  %v13427_v56 = vld [vmem:[%s18701_s7 + $0x2fc] ss:$52 sps:$4 sm:$0xff]  }
 0x47d   :  { %6021 = vmatpush1.bf16.msra.mxu0 %v13365_v57  ;;  %v13430_v57 = vld [vmem:[%s18701_s7 + $0x304] ss:$52 sps:$4 sm:$0xff]  }
 0x47e   :  { %6185 = vmatpush1.bf16.msra.mxu1 %v13368_v59  ;;  %6022 = vmatprep.subr.bf16.mxu0 %v13373_v60  ;;  %v13425_v59 = vld [vmem:[%s18701_s7 + $0x2f8] ss:$52 sps:$4 sm:$0xff]   ;;  %v13428_v60 = vld [vmem:[%s18701_s7 + $0x300] ss:$52 sps:$4 sm:$0xff]  }
 0x47f   :  { %6186 = vmatprep.subr.bf16.mxu1 %v13376_v61  ;;  %v13433_v61 = vld [vmem:[%s18701_s7 + $0x364] ss:$52 sps:$4 sm:$0xff]  }
 0x481   :  { %6023 = vmatpush1.bf16.msra.mxu0 %v13371_v62  ;;  %v13436_v62 = vld [vmem:[%s18701_s7 + $0x36c] ss:$52 sps:$4 sm:$0xff]  }
 0x482   :  { %6187 = vmatpush1.bf16.msra.mxu1 %v13374_v63  ;;  %6033 = vmatprep.subr.bf16.mxu0 %v13379_v1  ;;  %v13431_v63 = vld [vmem:[%s18701_s7 + $0x360] ss:$52 sps:$4 sm:$0xff]   ;;  %v13434_v1 = vld [vmem:[%s18701_s7 + $0x368] ss:$52 sps:$4 sm:$0xff]  }
 0x483   :  { %6197 = vmatprep.subr.bf16.mxu1 %v13382_v2  ;;  %v13439_v2 = vld [vmem:[%s18701_s7 + $0x3cc] ss:$52 sps:$4 sm:$0xff]  }
 0x484   :  { %6025 = vmatmul.mubr.bf16.vlgmr.msra.gmra.mrb[24].mxu0 %v15659_v58 }
 0x485   :  { %6189 = vmatmul.mubr.bf16.vlgmr.msra.gmra.mrb[16].mxu1 %v15659_v58  ;;  %6034 = vmatpush1.bf16.msra.mxu0 %v13377_v38  ;;  %v13442_v38 = vld [vmem:[%s18701_s7 + $0x3d4] ss:$52 sps:$4 sm:$0xff]  }
 0x486   :  { %6198 = vmatpush1.bf16.msra.mxu1 %v13380_v5  ;;  %6065 = vmatprep.mubr.bf16.mxu0 %v14435_v41  ;;  %v13437_v5 = vld [vmem:[%s18701_s7 + $0x3c8] ss:$52 sps:$4 sm:$0xff]  }
 0x487   :  { %6229 = vmatprep.mubr.bf16.mxu1 %v14435_v41  ;;  %6238 = vmatprep.subr.bf16.mxu0 %v13385_v6  ;;  %v13440_v6 = vld [vmem:[%s18701_s7 + $0x3d0] ss:$52 sps:$4 sm:$0xff]  }
 0x488   :  { %6402 = vmatprep.subr.bf16.mxu1 %v13388_v7  ;;  %v13445_v7 = vld [vmem:[%s18701_s7 + $0x434] ss:$52 sps:$4 sm:$0xff]  }
 0x490   :  { %11636 = vmatmul.mubr.msk.bf16.vlgmr.msra.gmra.mrb[24].mxu0 %vm5578_vm6, %v15678_v0 }
 0x491   :  { %11637 = vmatmul.mubr.msk.bf16.vlgmr.msra.gmra.mrb[16].mxu1 %vm5578_vm6, %v15678_v0  ;;  %6239 = vmatpush1.bf16.msra.mxu0 %v13383_v8  ;;  %v13448_v8 = vld [vmem:[%s18701_s7 + $0x43c] ss:$52 sps:$4 sm:$0xff]  }
 0x492   :  { %6403 = vmatpush1.bf16.msra.mxu1 %v13386_v9  ;;  %6270 = vmatprep.mubr.bf16.mxu0 %v15234_v25  ;;  %v13443_v9 = vld [vmem:[%s18701_s7 + $0x430] ss:$52 sps:$4 sm:$0xff]  }
 0x493   :  { %6434 = vmatprep.mubr.bf16.mxu1 %v15234_v25  ;;  %6240 = vmatprep.subr.bf16.mxu0 %v13391_v10  ;;  %v13446_v10 = vld [vmem:[%s18701_s7 + $0x438] ss:$52 sps:$4 sm:$0xff]  }
 0x494   :  { %6404 = vmatprep.subr.bf16.mxu1 %v13394_v11  ;;  %v13451_v11 = vld [vmem:[%s18701_s7 + $0x49c] ss:$52 sps:$4 sm:$0xff]  }
 0x495   :  { %6241 = vmatpush1.bf16.msra.mxu0 %v13389_v33  ;;  %v13454_v33 = vld [vmem:[%s18701_s7 + $0x4a4] ss:$52 sps:$4 sm:$0xff]  }
 0x496   :  { %6405 = vmatpush1.bf16.msra.mxu1 %v13392_v13  ;;  %6242 = vmatprep.subr.bf16.mxu0 %v13397_v14  ;;  %v13449_v13 = vld [vmem:[%s18701_s7 + $0x498] ss:$52 sps:$4 sm:$0xff]   ;;  %v13452_v14 = vld [vmem:[%s18701_s7 + $0x4a0] ss:$52 sps:$4 sm:$0xff]  }
 0x497   :  { %6406 = vmatprep.subr.bf16.mxu1 %v13400_v16  ;;  %v16319_v23 = vpop.f32.mrb[20].mxu0  ;;  %v16321_v24 = vpop.f32.mrb[12].mxu1  ;;  %v13457_v16 = vld [vmem:[%s18701_s7 + $0x504] ss:$52 sps:$4 sm:$0xff]  }
 0x498   :  { %v16326_v29 = vpop.f32.mrb[21].mxu0  ;;  %v16328_v30 = vpop.f32.mrb[13].mxu1 }
 0x499   :  { %6243 = vmatpush1.bf16.msra.mxu0 %v13395_v17  ;;  %v5743_v31 = vpop.f32.mrb[22].mxu0  ;;  %v5907_v35 = vpop.f32.mrb[14].mxu1  ;;  %v13460_v17 = vld [vmem:[%s18701_s7 + $0x50c] ss:$52 sps:$4 sm:$0xff]  }
 0x49a   :  { %6407 = vmatpush1.bf16.msra.mxu1 %v13398_v18  ;;  %v5744_v12 = vpop.f32.mrb[23].mxu0  ;;  %v5908_v37 = vpop.f32.mrb[15].mxu1  ;;  %6244 = vmatprep.subr.bf16.mxu0 %v13403_v22  ;;  %v13455_v18 = vld [vmem:[%s18701_s7 + $0x500] ss:$52 sps:$4 sm:$0xff]   ;;  %v13458_v22 = vld [vmem:[%s18701_s7 + $0x508] ss:$52 sps:$4 sm:$0xff]  }
 0x49b   :  { %6408 = vmatprep.subr.bf16.mxu1 %v13406_v26  ;;  %v13463_v26 = vld [vmem:[%s18701_s7 + $0x56c] ss:$52 sps:$4 sm:$0xff]   ;;  %v13466_v31 = vld [vmem:[%s18701_s7 + $0x574] ss:$52 sps:$4 sm:$0xff]   ;;  %v13472_v37 = vld [vmem:[%s18701_s7 + $0x5dc] ss:$52 sps:$4 sm:$0xff]  }
 0x49c   :  { %v13461_v35 = vld [vmem:[%s18701_s7 + $0x568] ss:$52 sps:$4 sm:$0xff]  }
 0x49d   :  { %6245 = vmatpush1.bf16.msra.mxu0 %v13401_v36  ;;  %v13464_v36 = vld [vmem:[%s18701_s7 + $0x570] ss:$52 sps:$4 sm:$0xff]   ;;  %v13469_v12 = vld [vmem:[%s18701_s7 + $0x5d4] ss:$52 sps:$4 sm:$0xff]  }
 0x49e   :  { %6409 = vmatpush1.bf16.msra.mxu1 %v13404_v39  ;;  %6246 = vmatprep.subr.bf16.mxu0 %v13409_v40  ;;  %v13467_v39 = vld [vmem:[%s18701_s7 + $0x5d0] ss:$52 sps:$4 sm:$0xff]   ;;  %v13470_v40 = vld [vmem:[%s18701_s7 + $0x5d8] ss:$52 sps:$4 sm:$0xff]  }
 0x49f   :  { %6410 = vmatprep.subr.bf16.mxu1 %v13412_v42  ;;  %v13475_v42 = vld [vmem:[%s18701_s7 + $0x63c] ss:$52 sps:$4 sm:$0xff]  }
 0x4a1   :  { %6247 = vmatpush1.bf16.msra.mxu0 %v13407_v43  ;;  %v13478_v43 = vld [vmem:[%s18701_s7 + $0x644] ss:$52 sps:$4 sm:$0xff]  }
 0x4a2   :  { %6411 = vmatpush1.bf16.msra.mxu1 %v13410_v27  ;;  %6248 = vmatprep.subr.bf16.mxu0 %v13415_v45  ;;  %v13473_v27 = vld [vmem:[%s18701_s7 + $0x638] ss:$52 sps:$4 sm:$0xff]   ;;  %v13476_v45 = vld [vmem:[%s18701_s7 + $0x640] ss:$52 sps:$4 sm:$0xff]  }
 0x4a3   :  { %6412 = vmatprep.subr.bf16.mxu1 %v13418_v46  ;;  %v13481_v46 = vld [vmem:[%s18701_s7 + $0x6a4] ss:$52 sps:$4 sm:$0xff]  }
 0x4a5   :  { %6249 = vmatpush1.bf16.msra.mxu0 %v13413_v47  ;;  %v13484_v47 = vld [vmem:[%s18701_s7 + $0x6ac] ss:$52 sps:$4 sm:$0xff]  }
 0x4a6   :  { %6413 = vmatpush1.bf16.msra.mxu1 %v13416_v48  ;;  %6250 = vmatprep.subr.bf16.mxu0 %v13421_v32  ;;  %v13479_v48 = vld [vmem:[%s18701_s7 + $0x6a0] ss:$52 sps:$4 sm:$0xff]   ;;  %v13482_v32 = vld [vmem:[%s18701_s7 + $0x6a8] ss:$52 sps:$4 sm:$0xff]  }
 0x4a7   :  { %6414 = vmatprep.subr.bf16.mxu1 %v13424_v49  ;;  %v13487_v49 = vld [vmem:[%s18701_s7 + $0x70c] ss:$52 sps:$4 sm:$0xff]  }
 0x4a9   :  { %6251 = vmatpush1.bf16.msra.mxu0 %v13419_v52  ;;  %v13490_v52 = vld [vmem:[%s18701_s7 + $0x714] ss:$52 sps:$4 sm:$0xff]  }
 0x4aa   :  { %6415 = vmatpush1.bf16.msra.mxu1 %v13422_v54  ;;  %6252 = vmatprep.subr.bf16.mxu0 %v13427_v56  ;;  %v13485_v54 = vld [vmem:[%s18701_s7 + $0x708] ss:$52 sps:$4 sm:$0xff]   ;;  %v13488_v56 = vld [vmem:[%s18701_s7 + $0x710] ss:$52 sps:$4 sm:$0xff]  }
 0x4ab   :  { %6416 = vmatprep.subr.bf16.mxu1 %v13430_v57  ;;  %v13493_v57 = vld [vmem:[%s18701_s7 + $0x774] ss:$52 sps:$4 sm:$0xff]  }
 0x4ad   :  { %6253 = vmatpush1.bf16.msra.mxu0 %v13425_v59  ;;  %v13496_v59 = vld [vmem:[%s18701_s7 + $0x77c] ss:$52 sps:$4 sm:$0xff]  }
 0x4ae   :  { %6417 = vmatpush1.bf16.msra.mxu1 %v13428_v60  ;;  %6254 = vmatprep.subr.bf16.mxu0 %v13433_v61  ;;  %v13491_v60 = vld [vmem:[%s18701_s7 + $0x770] ss:$52 sps:$4 sm:$0xff]   ;;  %v13494_v61 = vld [vmem:[%s18701_s7 + $0x778] ss:$52 sps:$4 sm:$0xff]  }
 0x4af   :  { %6418 = vmatprep.subr.bf16.mxu1 %v13436_v62  ;;  %v13499_v62 = vld [vmem:[%s18701_s7 + $0x7dc] ss:$52 sps:$4 sm:$0xff]  }
 0x4b1   :  { %6255 = vmatpush1.bf16.msra.mxu0 %v13431_v63  ;;  %v13502_v63 = vld [vmem:[%s18701_s7 + $0x7e4] ss:$52 sps:$4 sm:$0xff]  }
 0x4b2   :  { %6419 = vmatpush1.bf16.msra.mxu1 %v13434_v1  ;;  %6256 = vmatprep.subr.bf16.mxu0 %v13439_v2  ;;  %v13497_v1 = vld [vmem:[%s18701_s7 + $0x7d8] ss:$52 sps:$4 sm:$0xff]   ;;  %v13500_v2 = vld [vmem:[%s18701_s7 + $0x7e0] ss:$52 sps:$4 sm:$0xff]  }
 0x4b3   :  { %6420 = vmatprep.subr.bf16.mxu1 %v13442_v38  ;;  %v13505_v38 = vld [vmem:[%s18701_s7 + $0x844] ss:$52 sps:$4 sm:$0xff]  }
 0x4b5   :  { %6257 = vmatpush1.bf16.msra.mxu0 %v13437_v5  ;;  %v13508_v5 = vld [vmem:[%s18701_s7 + $0x84c] ss:$52 sps:$4 sm:$0xff]  }
 0x4b6   :  { %6421 = vmatpush1.bf16.msra.mxu1 %v13440_v6  ;;  %6258 = vmatprep.subr.bf16.mxu0 %v13445_v7  ;;  %v13503_v6 = vld [vmem:[%s18701_s7 + $0x840] ss:$52 sps:$4 sm:$0xff]   ;;  %v13506_v7 = vld [vmem:[%s18701_s7 + $0x848] ss:$52 sps:$4 sm:$0xff]  }
 0x4b7   :  { %6422 = vmatprep.subr.bf16.mxu1 %v13448_v8  ;;  %v13511_v8 = vld [vmem:[%s18701_s7 + $0x8ac] ss:$52 sps:$4 sm:$0xff]  }
 0x4b9   :  { %6259 = vmatpush1.bf16.msra.mxu0 %v13443_v9  ;;  %v13514_v9 = vld [vmem:[%s18701_s7 + $0x8b4] ss:$52 sps:$4 sm:$0xff]  }
 0x4ba   :  { %6423 = vmatpush1.bf16.msra.mxu1 %v13446_v10  ;;  %6260 = vmatprep.subr.bf16.mxu0 %v13451_v11  ;;  %v13509_v10 = vld [vmem:[%s18701_s7 + $0x8a8] ss:$52 sps:$4 sm:$0xff]   ;;  %v13512_v11 = vld [vmem:[%s18701_s7 + $0x8b0] ss:$52 sps:$4 sm:$0xff]  }
 0x4bb   :  { %6424 = vmatprep.subr.bf16.mxu1 %v13454_v33  ;;  %v13517_v33 = vld [vmem:[%s18701_s7 + $0x914] ss:$52 sps:$4 sm:$0xff]  }
 0x4bd   :  { %6261 = vmatpush1.bf16.msra.mxu0 %v13449_v13  ;;  %v13520_v13 = vld [vmem:[%s18701_s7 + $0x91c] ss:$52 sps:$4 sm:$0xff]  }
 0x4be   :  { %6425 = vmatpush1.bf16.msra.mxu1 %v13452_v14  ;;  %6262 = vmatprep.subr.bf16.mxu0 %v13457_v16  ;;  %v13515_v14 = vld [vmem:[%s18701_s7 + $0x910] ss:$52 sps:$4 sm:$0xff]   ;;  %v13518_v16 = vld [vmem:[%s18701_s7 + $0x918] ss:$52 sps:$4 sm:$0xff]  }
 0x4bf   :  { %6426 = vmatprep.subr.bf16.mxu1 %v13460_v17  ;;  %v13523_v17 = vld [vmem:[%s18701_s7 + $0x97c] ss:$52 sps:$4 sm:$0xff]  }
 0x4c1   :  { %6263 = vmatpush1.bf16.msra.mxu0 %v13455_v18  ;;  %v13526_v18 = vld [vmem:[%s18701_s7 + $0x984] ss:$52 sps:$4 sm:$0xff]  }
 0x4c2   :  { %6427 = vmatpush1.bf16.msra.mxu1 %v13458_v22  ;;  %6264 = vmatprep.subr.bf16.mxu0 %v13463_v26  ;;  %v13521_v22 = vld [vmem:[%s18701_s7 + $0x978] ss:$52 sps:$4 sm:$0xff]   ;;  %v13524_v26 = vld [vmem:[%s18701_s7 + $0x980] ss:$52 sps:$4 sm:$0xff]  }
 0x4c3   :  { %6428 = vmatprep.subr.bf16.mxu1 %v13466_v31  ;;  %v13529_v31 = vld [vmem:[%s18701_s7 + $0x9e4] ss:$52 sps:$4 sm:$0xff]  }
 0x4c5   :  { %6265 = vmatpush1.bf16.msra.mxu0 %v13461_v35  ;;  %v13532_v35 = vld [vmem:[%s18701_s7 + $0x9ec] ss:$52 sps:$4 sm:$0xff]  }
 0x4c6   :  { %6429 = vmatpush1.bf16.msra.mxu1 %v13464_v36  ;;  %6266 = vmatprep.subr.bf16.mxu0 %v13469_v12  ;;  %v13527_v36 = vld [vmem:[%s18701_s7 + $0x9e0] ss:$52 sps:$4 sm:$0xff]   ;;  %v13530_v12 = vld [vmem:[%s18701_s7 + $0x9e8] ss:$52 sps:$4 sm:$0xff]  }
 0x4c7   :  { %6430 = vmatprep.subr.bf16.mxu1 %v13472_v37  ;;  %v13535_v37 = vld [vmem:[%s18701_s7 + $0xa4c] ss:$52 sps:$4 sm:$0xff]  }
 0x4c9   :  { %6267 = vmatpush1.bf16.msra.mxu0 %v13467_v39  ;;  %v13538_v39 = vld [vmem:[%s18701_s7 + $0xa54] ss:$52 sps:$4 sm:$0xff]  }
 0x4ca   :  { %6431 = vmatpush1.bf16.msra.mxu1 %v13470_v40  ;;  %6268 = vmatprep.subr.bf16.mxu0 %v13475_v42  ;;  %v13533_v40 = vld [vmem:[%s18701_s7 + $0xa48] ss:$52 sps:$4 sm:$0xff]   ;;  %v13536_v42 = vld [vmem:[%s18701_s7 + $0xa50] ss:$52 sps:$4 sm:$0xff]  }
 0x4cb   :  { %6432 = vmatprep.subr.bf16.mxu1 %v13478_v43  ;;  %v13541_v43 = vld [vmem:[%s18701_s7 + $0xab4] ss:$52 sps:$4 sm:$0xff]  }
 0x4cd   :  { %6269 = vmatpush1.bf16.msra.mxu0 %v13473_v27  ;;  %v13544_v27 = vld [vmem:[%s18701_s7 + $0xabc] ss:$52 sps:$4 sm:$0xff]  }
 0x4ce   :  { %6433 = vmatpush1.bf16.msra.mxu1 %v13476_v45  ;;  %6279 = vmatprep.subr.bf16.mxu0 %v13481_v46  ;;  %v13539_v45 = vld [vmem:[%s18701_s7 + $0xab0] ss:$52 sps:$4 sm:$0xff]   ;;  %v13542_v46 = vld [vmem:[%s18701_s7 + $0xab8] ss:$52 sps:$4 sm:$0xff]  }
 0x4cf   :  { %6443 = vmatprep.subr.bf16.mxu1 %v13484_v47  ;;  %v13547_v47 = vld [vmem:[%s18701_s7 + $0xb1c] ss:$52 sps:$4 sm:$0xff]  }
 0x4d0   :  { %6271 = vmatmul.mubr.bf16.vlgmr.msra.gmra.mrb[28].mxu0 %v15242_v50 }
 0x4d1   :  { %6435 = vmatmul.mubr.bf16.vlgmr.msra.gmra.mrb[20].mxu1 %v15242_v50  ;;  %6280 = vmatpush1.bf16.msra.mxu0 %v13479_v48  ;;  %v13550_v48 = vld [vmem:[%s18701_s7 + $0xb24] ss:$52 sps:$4 sm:$0xff]  }
 0x4d2   :  { %6311 = vmatprep.mubr.bf16.mxu0 %v15246_v51  ;;  %6444 = vmatpush1.bf16.msra.mxu1 %v13482_v32  ;;  %v13545_v32 = vld [vmem:[%s18701_s7 + $0xb18] ss:$52 sps:$4 sm:$0xff]  }
 0x4d3   :  { %6475 = vmatprep.mubr.bf16.mxu1 %v15246_v51  ;;  %6281 = vmatprep.subr.bf16.mxu0 %v13487_v49  ;;  %v13548_v49 = vld [vmem:[%s18701_s7 + $0xb20] ss:$52 sps:$4 sm:$0xff]  }
 0x4d4   :  { %6445 = vmatprep.subr.bf16.mxu1 %v13490_v52  ;;  %v13553_v52 = vld [vmem:[%s18701_s7 + $0xb84] ss:$52 sps:$4 sm:$0xff]  }
 0x4d5   :  { %6282 = vmatpush1.bf16.msra.mxu0 %v13485_v54  ;;  %v13556_v54 = vld [vmem:[%s18701_s7 + $0xb8c] ss:$52 sps:$4 sm:$0xff]  }
 0x4d6   :  { %6446 = vmatpush1.bf16.msra.mxu1 %v13488_v56  ;;  %6283 = vmatprep.subr.bf16.mxu0 %v13493_v57  ;;  %v13551_v56 = vld [vmem:[%s18701_s7 + $0xb80] ss:$52 sps:$4 sm:$0xff]   ;;  %v13554_v57 = vld [vmem:[%s18701_s7 + $0xb88] ss:$52 sps:$4 sm:$0xff]  }
 0x4d7   :  { %6447 = vmatprep.subr.bf16.mxu1 %v13496_v59  ;;  %v13559_v59 = vld [vmem:[%s18701_s7 + $0xbec] ss:$52 sps:$4 sm:$0xff]  }
 0x4d9   :  { %6284 = vmatpush1.bf16.msra.mxu0 %v13491_v60  ;;  %v13562_v60 = vld [vmem:[%s18701_s7 + $0xbf4] ss:$52 sps:$4 sm:$0xff]  }
 0x4da   :  { %6448 = vmatpush1.bf16.msra.mxu1 %v13494_v61  ;;  %6285 = vmatprep.subr.bf16.mxu0 %v13499_v62  ;;  %v13557_v61 = vld [vmem:[%s18701_s7 + $0xbe8] ss:$52 sps:$4 sm:$0xff]   ;;  %v13560_v62 = vld [vmem:[%s18701_s7 + $0xbf0] ss:$52 sps:$4 sm:$0xff]  }
 0x4db   :  { %6449 = vmatprep.subr.bf16.mxu1 %v13502_v63  ;;  %v13565_v63 = vld [vmem:[%s18701_s7 + $0xc54] ss:$52 sps:$4 sm:$0xff]  }
 0x4dd   :  { %6286 = vmatpush1.bf16.msra.mxu0 %v13497_v1  ;;  %v13568_v1 = vld [vmem:[%s18701_s7 + $0xc5c] ss:$52 sps:$4 sm:$0xff]  }
 0x4de   :  { %6450 = vmatpush1.bf16.msra.mxu1 %v13500_v2  ;;  %6287 = vmatprep.subr.bf16.mxu0 %v13505_v38  ;;  %v13563_v2 = vld [vmem:[%s18701_s7 + $0xc50] ss:$52 sps:$4 sm:$0xff]   ;;  %v13566_v38 = vld [vmem:[%s18701_s7 + $0xc58] ss:$52 sps:$4 sm:$0xff]  }
 0x4df   :  { %6451 = vmatprep.subr.bf16.mxu1 %v13508_v5  ;;  %v13571_v5 = vld [vmem:[%s18701_s7 + $0xcbc] ss:$52 sps:$4 sm:$0xff]  }
 0x4e1   :  { %6288 = vmatpush1.bf16.msra.mxu0 %v13503_v6  ;;  %v13574_v6 = vld [vmem:[%s18701_s7 + $0xcc4] ss:$52 sps:$4 sm:$0xff]  }
 0x4e2   :  { %6452 = vmatpush1.bf16.msra.mxu1 %v13506_v7  ;;  %6289 = vmatprep.subr.bf16.mxu0 %v13511_v8  ;;  %v13569_v7 = vld [vmem:[%s18701_s7 + $0xcb8] ss:$52 sps:$4 sm:$0xff]   ;;  %v13572_v8 = vld [vmem:[%s18701_s7 + $0xcc0] ss:$52 sps:$4 sm:$0xff]  }
 0x4e3   :  { %6453 = vmatprep.subr.bf16.mxu1 %v13514_v9  ;;  %v13577_v9 = vld [vmem:[%s18701_s7 + $0xd24] ss:$52 sps:$4 sm:$0xff]  }
 0x4e5   :  { %6290 = vmatpush1.bf16.msra.mxu0 %v13509_v10  ;;  %v13580_v10 = vld [vmem:[%s18701_s7 + $0xd2c] ss:$52 sps:$4 sm:$0xff]  }
 0x4e6   :  { %6454 = vmatpush1.bf16.msra.mxu1 %v13512_v11  ;;  %6291 = vmatprep.subr.bf16.mxu0 %v13517_v33  ;;  %v13575_v11 = vld [vmem:[%s18701_s7 + $0xd20] ss:$52 sps:$4 sm:$0xff]   ;;  %v13578_v33 = vld [vmem:[%s18701_s7 + $0xd28] ss:$52 sps:$4 sm:$0xff]  }
 0x4e7   :  { %6455 = vmatprep.subr.bf16.mxu1 %v13520_v13  ;;  %v13583_v13 = vld [vmem:[%s18701_s7 + $0xd8c] ss:$52 sps:$4 sm:$0xff]  }
 0x4e9   :  { %6292 = vmatpush1.bf16.msra.mxu0 %v13515_v14  ;;  %v13586_v14 = vld [vmem:[%s18701_s7 + $0xd94] ss:$52 sps:$4 sm:$0xff]  }
 0x4ea   :  { %6456 = vmatpush1.bf16.msra.mxu1 %v13518_v16  ;;  %6293 = vmatprep.subr.bf16.mxu0 %v13523_v17  ;;  %v13581_v16 = vld [vmem:[%s18701_s7 + $0xd88] ss:$52 sps:$4 sm:$0xff]   ;;  %v13584_v17 = vld [vmem:[%s18701_s7 + $0xd90] ss:$52 sps:$4 sm:$0xff]  }
 0x4eb   :  { %6457 = vmatprep.subr.bf16.mxu1 %v13526_v18  ;;  %v13589_v18 = vld [vmem:[%s18701_s7 + $0xdf4] ss:$52 sps:$4 sm:$0xff]  }
 0x4ed   :  { %6294 = vmatpush1.bf16.msra.mxu0 %v13521_v22  ;;  %v13592_v22 = vld [vmem:[%s18701_s7 + $0xdfc] ss:$52 sps:$4 sm:$0xff]  }
 0x4ee   :  { %6458 = vmatpush1.bf16.msra.mxu1 %v13524_v26  ;;  %6295 = vmatprep.subr.bf16.mxu0 %v13529_v31  ;;  %v13587_v26 = vld [vmem:[%s18701_s7 + $0xdf0] ss:$52 sps:$4 sm:$0xff]   ;;  %v13590_v31 = vld [vmem:[%s18701_s7 + $0xdf8] ss:$52 sps:$4 sm:$0xff]  }
 0x4ef   :  { %6459 = vmatprep.subr.bf16.mxu1 %v13532_v35  ;;  %v13595_v35 = vld [vmem:[%s18701_s7 + $0xe5c] ss:$52 sps:$4 sm:$0xff]  }
 0x4f1   :  { %6296 = vmatpush1.bf16.msra.mxu0 %v13527_v36  ;;  %v13593_v36 = vld [vmem:[%s18701_s7 + $0xe58] ss:$52 sps:$4 sm:$0xff]  }
 0x4f2   :  { %6460 = vmatpush1.bf16.msra.mxu1 %v13530_v12  ;;  %6297 = vmatprep.subr.bf16.mxu0 %v13535_v37  ;;  %v13598_v12 = vld [vmem:[%s18701_s7 + $0xe64] ss:$52 sps:$4 sm:$0xff]   ;;  %v13596_v37 = vld [vmem:[%s18701_s7 + $0xe60] ss:$52 sps:$4 sm:$0xff]  }
 0x4f3   :  { %6461 = vmatprep.subr.bf16.mxu1 %v13538_v39  ;;  %v13601_v39 = vld [vmem:[%s18701_s7 + $0xec4] ss:$52 sps:$4 sm:$0xff]  }
 0x4f5   :  { %6298 = vmatpush1.bf16.msra.mxu0 %v13533_v40  ;;  %v13604_v40 = vld [vmem:[%s18701_s7 + $0xecc] ss:$52 sps:$4 sm:$0xff]  }
 0x4f6   :  { %6462 = vmatpush1.bf16.msra.mxu1 %v13536_v42  ;;  %6299 = vmatprep.subr.bf16.mxu0 %v13541_v43  ;;  %v13599_v42 = vld [vmem:[%s18701_s7 + $0xec0] ss:$52 sps:$4 sm:$0xff]   ;;  %v13602_v43 = vld [vmem:[%s18701_s7 + $0xec8] ss:$52 sps:$4 sm:$0xff]  }
 0x4f7   :  { %6463 = vmatprep.subr.bf16.mxu1 %v13544_v27  ;;  %v13607_v27 = vld [vmem:[%s18701_s7 + $0xf2c] ss:$52 sps:$4 sm:$0xff]  }
 0x4f9   :  { %6300 = vmatpush1.bf16.msra.mxu0 %v13539_v45  ;;  %v13605_v45 = vld [vmem:[%s18701_s7 + $0xf28] ss:$52 sps:$4 sm:$0xff]  }
 0x4fa   :  { %6464 = vmatpush1.bf16.msra.mxu1 %v13542_v46  ;;  %6301 = vmatprep.subr.bf16.mxu0 %v13547_v47  ;;  %v13610_v46 = vld [vmem:[%s18701_s7 + $0xf34] ss:$52 sps:$4 sm:$0xff]   ;;  %v13608_v47 = vld [vmem:[%s18701_s7 + $0xf30] ss:$52 sps:$4 sm:$0xff]  }
 0x4fb   :  { %6465 = vmatprep.subr.bf16.mxu1 %v13550_v48  ;;  %v13613_v48 = vld [vmem:[%s18701_s7 + $0xf94] ss:$52 sps:$4 sm:$0xff]  }
 0x4fd   :  { %6302 = vmatpush1.bf16.msra.mxu0 %v13545_v32  ;;  %v13611_v32 = vld [vmem:[%s18701_s7 + $0xf90] ss:$52 sps:$4 sm:$0xff]  }
 0x4fe   :  { %6466 = vmatpush1.bf16.msra.mxu1 %v13548_v49  ;;  %6303 = vmatprep.subr.bf16.mxu0 %v13553_v52  ;;  %v13616_v49 = vld [vmem:[%s18701_s7 + $0xf9c] ss:$52 sps:$4 sm:$0xff]   ;;  %v13614_v52 = vld [vmem:[%s18701_s7 + $0xf98] ss:$52 sps:$4 sm:$0xff]  }
 0x4ff   :  { %6467 = vmatprep.subr.bf16.mxu1 %v13556_v54  ;;  %v13619_v54 = vld [vmem:[%s18701_s7 + $0xffc] ss:$52 sps:$4 sm:$0xff]  }
 0x501   :  { %6304 = vmatpush1.bf16.msra.mxu0 %v13551_v56  ;;  %v13617_v56 = vld [vmem:[%s18701_s7 + $0xff8] ss:$52 sps:$4 sm:$0xff]  }
 0x502   :  { %6468 = vmatpush1.bf16.msra.mxu1 %v13554_v57  ;;  %6305 = vmatprep.subr.bf16.mxu0 %v13559_v59  ;;  %v13622_v57 = vld [vmem:[%s18701_s7 + $0x1004] ss:$52 sps:$4 sm:$0xff]   ;;  %v13620_v59 = vld [vmem:[%s18701_s7 + $0x1000] ss:$52 sps:$4 sm:$0xff]  }
 0x503   :  { %6469 = vmatprep.subr.bf16.mxu1 %v13562_v60  ;;  %v13625_v60 = vld [vmem:[%s18701_s7 + $0x1064] ss:$52 sps:$4 sm:$0xff]  }
 0x505   :  { %6306 = vmatpush1.bf16.msra.mxu0 %v13557_v61  ;;  %v13623_v61 = vld [vmem:[%s18701_s7 + $0x1060] ss:$52 sps:$4 sm:$0xff]  }
 0x506   :  { %6470 = vmatpush1.bf16.msra.mxu1 %v13560_v62  ;;  %6307 = vmatprep.subr.bf16.mxu0 %v13565_v63  ;;  %v13628_v62 = vld [vmem:[%s18701_s7 + $0x106c] ss:$52 sps:$4 sm:$0xff]   ;;  %v13626_v63 = vld [vmem:[%s18701_s7 + $0x1068] ss:$52 sps:$4 sm:$0xff]  }
 0x507   :  { %6471 = vmatprep.subr.bf16.mxu1 %v13568_v1  ;;  %v13631_v1 = vld [vmem:[%s18701_s7 + $0x10cc] ss:$52 sps:$4 sm:$0xff]  }
 0x509   :  { %6308 = vmatpush1.bf16.msra.mxu0 %v13563_v2  ;;  %v13629_v2 = vld [vmem:[%s18701_s7 + $0x10c8] ss:$52 sps:$4 sm:$0xff]  }
 0x50a   :  { %6472 = vmatpush1.bf16.msra.mxu1 %v13566_v38  ;;  %6309 = vmatprep.subr.bf16.mxu0 %v13571_v5  ;;  %v13634_v38 = vld [vmem:[%s18701_s7 + $0x10d4] ss:$52 sps:$4 sm:$0xff]   ;;  %v13632_v5 = vld [vmem:[%s18701_s7 + $0x10d0] ss:$52 sps:$4 sm:$0xff]  }
 0x50b   :  { %6473 = vmatprep.subr.bf16.mxu1 %v13574_v6  ;;  %v13637_v6 = vld [vmem:[%s18701_s7 + $0x1134] ss:$52 sps:$4 sm:$0xff]  }
 0x50d   :  { %6310 = vmatpush1.bf16.msra.mxu0 %v13569_v7  ;;  %v13635_v7 = vld [vmem:[%s18701_s7 + $0x1130] ss:$52 sps:$4 sm:$0xff]  }
 0x50e   :  { %6474 = vmatpush1.bf16.msra.mxu1 %v13572_v8  ;;  %6320 = vmatprep.subr.bf16.mxu0 %v13577_v9  ;;  %v13640_v8 = vld [vmem:[%s18701_s7 + $0x113c] ss:$52 sps:$4 sm:$0xff]   ;;  %v13638_v9 = vld [vmem:[%s18701_s7 + $0x1138] ss:$52 sps:$4 sm:$0xff]  }
 0x50f   :  { %6484 = vmatprep.subr.bf16.mxu1 %v13580_v10  ;;  %v13643_v10 = vld [vmem:[%s18701_s7 + $0x119c] ss:$52 sps:$4 sm:$0xff]  }
 0x510   :  { %6312 = vmatmul.mubr.bf16.vlgmr.msra.gmra.mrb[28].mxu0 %v15448_v20 }
 0x511   :  { %6476 = vmatmul.mubr.bf16.vlgmr.msra.gmra.mrb[20].mxu1 %v15448_v20  ;;  %6321 = vmatpush1.bf16.msra.mxu0 %v13575_v11  ;;  %v13641_v11 = vld [vmem:[%s18701_s7 + $0x1198] ss:$52 sps:$4 sm:$0xff]  }
 0x512   :  { %6352 = vmatprep.mubr.bf16.mxu0 %v15487_v44  ;;  %6485 = vmatpush1.bf16.msra.mxu1 %v13578_v33  ;;  %v13646_v33 = vld [vmem:[%s18701_s7 + $0x11a4] ss:$52 sps:$4 sm:$0xff]  }
 0x513   :  { %6516 = vmatprep.mubr.bf16.mxu1 %v15487_v44  ;;  %6322 = vmatprep.subr.bf16.mxu0 %v13583_v13  ;;  %v13644_v13 = vld [vmem:[%s18701_s7 + $0x11a0] ss:$52 sps:$4 sm:$0xff]  }
 0x514   :  { %6486 = vmatprep.subr.bf16.mxu1 %v13586_v14  ;;  %v13649_v14 = vld [vmem:[%s18701_s7 + $0x1204] ss:$52 sps:$4 sm:$0xff]  }
 0x515   :  { %6323 = vmatpush1.bf16.msra.mxu0 %v13581_v16  ;;  %v13647_v16 = vld [vmem:[%s18701_s7 + $0x1200] ss:$52 sps:$4 sm:$0xff]  }
 0x516   :  { %6487 = vmatpush1.bf16.msra.mxu1 %v13584_v17  ;;  %6324 = vmatprep.subr.bf16.mxu0 %v13589_v18  ;;  %v13652_v17 = vld [vmem:[%s18701_s7 + $0x120c] ss:$52 sps:$4 sm:$0xff]   ;;  %v13650_v18 = vld [vmem:[%s18701_s7 + $0x1208] ss:$52 sps:$4 sm:$0xff]  }
 0x517   :  { %6488 = vmatprep.subr.bf16.mxu1 %v13592_v22  ;;  %v13655_v22 = vld [vmem:[%s18701_s7 + $0x126c] ss:$52 sps:$4 sm:$0xff]  }
 0x519   :  { %6325 = vmatpush1.bf16.msra.mxu0 %v13587_v26  ;;  %v13653_v26 = vld [vmem:[%s18701_s7 + $0x1268] ss:$52 sps:$4 sm:$0xff]  }
 0x51a   :  { %6489 = vmatpush1.bf16.msra.mxu1 %v13590_v31  ;;  %6326 = vmatprep.subr.bf16.mxu0 %v13595_v35  ;;  %v13658_v31 = vld [vmem:[%s18701_s7 + $0x1274] ss:$52 sps:$4 sm:$0xff]   ;;  %v13656_v35 = vld [vmem:[%s18701_s7 + $0x1270] ss:$52 sps:$4 sm:$0xff]  }
 0x51b   :  { %6490 = vmatprep.subr.bf16.mxu1 %v13598_v12  ;;  %v13664_v12 = vld [vmem:[%s18701_s7 + $0x12dc] ss:$52 sps:$4 sm:$0xff]  }
 0x51d   :  { %6327 = vmatpush1.bf16.msra.mxu0 %v13593_v36  ;;  %v13661_v36 = vld [vmem:[%s18701_s7 + $0x12d4] ss:$52 sps:$4 sm:$0xff]  }
 0x51e   :  { %6491 = vmatpush1.bf16.msra.mxu1 %v13596_v37  ;;  %6328 = vmatprep.subr.bf16.mxu0 %v13601_v39  ;;  %v13659_v37 = vld [vmem:[%s18701_s7 + $0x12d0] ss:$52 sps:$4 sm:$0xff]   ;;  %v13662_v39 = vld [vmem:[%s18701_s7 + $0x12d8] ss:$52 sps:$4 sm:$0xff]  }
 0x51f   :  { %6492 = vmatprep.subr.bf16.mxu1 %v13604_v40  ;;  %v13667_v40 = vld [vmem:[%s18701_s7 + $0x133c] ss:$52 sps:$4 sm:$0xff]  }
 0x521   :  { %6329 = vmatpush1.bf16.msra.mxu0 %v13599_v42  ;;  %v13665_v42 = vld [vmem:[%s18701_s7 + $0x1338] ss:$52 sps:$4 sm:$0xff]  }
 0x522   :  { %6493 = vmatpush1.bf16.msra.mxu1 %v13602_v43  ;;  %6330 = vmatprep.subr.bf16.mxu0 %v13607_v27  ;;  %v13670_v43 = vld [vmem:[%s18701_s7 + $0x1344] ss:$52 sps:$4 sm:$0xff]   ;;  %v13668_v27 = vld [vmem:[%s18701_s7 + $0x1340] ss:$52 sps:$4 sm:$0xff]  }
 0x523   :  { %6494 = vmatprep.subr.bf16.mxu1 %v13610_v46  ;;  %v13671_v46 = vld [vmem:[%s18701_s7 + $0x13a0] ss:$52 sps:$4 sm:$0xff]  }
 0x525   :  { %6331 = vmatpush1.bf16.msra.mxu0 %v13605_v45  ;;  %v13673_v45 = vld [vmem:[%s18701_s7 + $0x13a4] ss:$52 sps:$4 sm:$0xff]  }
 0x526   :  { %6495 = vmatpush1.bf16.msra.mxu1 %v13608_v47  ;;  %6332 = vmatprep.subr.bf16.mxu0 %v13613_v48  ;;  %v13676_v47 = vld [vmem:[%s18701_s7 + $0x13ac] ss:$52 sps:$4 sm:$0xff]   ;;  %v13674_v48 = vld [vmem:[%s18701_s7 + $0x13a8] ss:$52 sps:$4 sm:$0xff]  }
 0x527   :  { %6496 = vmatprep.subr.bf16.mxu1 %v13616_v49  ;;  %v13678_v49 = vld [vmem:[%s18701_s7 + $0x9f0] ss:$52 sps:$4 sm:$0xff]  }
 0x529   :  { %6333 = vmatpush1.bf16.msra.mxu0 %v13611_v32  ;;  %v13677_v32 = vld [vmem:[%s18701_s7 + $0x370] ss:$52 sps:$4 sm:$0xff]  }
 0x52a   :  { %6497 = vmatpush1.bf16.msra.mxu1 %v13614_v52  ;;  %6334 = vmatprep.subr.bf16.mxu0 %v13619_v54  ;;  %v13679_v52 = vld [vmem:[%s18701_s7 + $0x30] ss:$52 sps:$4 sm:$0xff]  }
 0x52b   :  { %6498 = vmatprep.subr.bf16.mxu1 %v13622_v57  ;;  %v13680_v54 = vld [vmem:[%s18701_s7 + $0x6b0] ss:$52 sps:$4 sm:$0xff]   ;;  %v13682_v57 = vld [vmem:[%s18701_s7 + $0xa58] ss:$52 sps:$4 sm:$0xff]  }
 0x52d   :  { %6335 = vmatpush1.bf16.msra.mxu0 %v13617_v56  ;;  %v13681_v56 = vld [vmem:[%s18701_s7 + $0x3d8] ss:$52 sps:$4 sm:$0xff]  }
 0x52e   :  { %6499 = vmatpush1.bf16.msra.mxu1 %v13620_v59  ;;  %6336 = vmatprep.subr.bf16.mxu0 %v13625_v60  ;;  %v13683_v59 = vld [vmem:[%s18701_s7 + $0x98] ss:$52 sps:$4 sm:$0xff]  }
 0x52f   :  { %6500 = vmatprep.subr.bf16.mxu1 %v13628_v62  ;;  %v13684_v60 = vld [vmem:[%s18701_s7 + $0x718] ss:$52 sps:$4 sm:$0xff]   ;;  %v13686_v62 = vld [vmem:[%s18701_s7 + $0xac0] ss:$52 sps:$4 sm:$0xff]  }
 0x531   :  { %6337 = vmatpush1.bf16.msra.mxu0 %v13623_v61  ;;  %v13685_v61 = vld [vmem:[%s18701_s7 + $0x440] ss:$52 sps:$4 sm:$0xff]  }
 0x532   :  { %6501 = vmatpush1.bf16.msra.mxu1 %v13626_v63  ;;  %6338 = vmatprep.subr.bf16.mxu0 %v13631_v1  ;;  %v13687_v63 = vld [vmem:[%s18701_s7 + $0x100] ss:$52 sps:$4 sm:$0xff]  }
 0x533   :  { %6502 = vmatprep.subr.bf16.mxu1 %v13634_v38  ;;  %v13691_v38 = vld [vmem:[%s18701_s7 + $0x168] ss:$52 sps:$4 sm:$0xff]  }
 0x535   :  { %6339 = vmatpush1.bf16.msra.mxu0 %v13629_v2  ;;  %v13690_v2 = vld [vmem:[%s18701_s7 + $0xb28] ss:$52 sps:$4 sm:$0xff]  }
 0x536   :  { %6503 = vmatpush1.bf16.msra.mxu1 %v13632_v5  ;;  %6340 = vmatprep.subr.bf16.mxu0 %v13637_v6 }
 0x537   :  { %6504 = vmatprep.subr.bf16.mxu1 %v13640_v8 }
 0x539   :  { %6341 = vmatpush1.bf16.msra.mxu0 %v13635_v7  ;;  %v13692_v7 = vld [vmem:[%s18701_s7 + $0x7e8] ss:$52 sps:$4 sm:$0xff]  }
 0x53a   :  { %6505 = vmatpush1.bf16.msra.mxu1 %v13638_v9  ;;  %6342 = vmatprep.subr.bf16.mxu0 %v13643_v10 }
 0x53b   :  { %6506 = vmatprep.subr.bf16.mxu1 %v13646_v33  ;;  %v13693_v33 = vld [vmem:[%s18701_s7 + $0x510] ss:$52 sps:$4 sm:$0xff]  }
 0x53d   :  { %6343 = vmatpush1.bf16.msra.mxu0 %v13641_v11 }
 0x53e   :  { %6507 = vmatpush1.bf16.msra.mxu1 %v13644_v13  ;;  %6344 = vmatprep.subr.bf16.mxu0 %v13649_v14  ;;  %v13694_v14 = vld [vmem:[%s18701_s7 + $0xb90] ss:$52 sps:$4 sm:$0xff]  }
 0x53f   :  { %6508 = vmatprep.subr.bf16.mxu1 %v13652_v17  ;;  %v13696_v17 = vld [vmem:[%s18701_s7 + $0x850] ss:$52 sps:$4 sm:$0xff]  }
 0x541   :  { %6345 = vmatpush1.bf16.msra.mxu0 %v13647_v16  ;;  %v13695_v16 = vld [vmem:[%s18701_s7 + $0x1d0] ss:$52 sps:$4 sm:$0xff]  }
 0x542   :  { %6509 = vmatpush1.bf16.msra.mxu1 %v13650_v18  ;;  %6346 = vmatprep.subr.bf16.mxu0 %v13655_v22  ;;  %v13697_v18 = vld [vmem:[%s18701_s7 + $0x578] ss:$52 sps:$4 sm:$0xff]  }
 0x543   :  { %6510 = vmatprep.subr.bf16.mxu1 %v13658_v31  ;;  %v13698_v22 = vld [vmem:[%s18701_s7 + $0xbf8] ss:$52 sps:$4 sm:$0xff]  }
 0x544   :  { %v13700_v31 = vld [vmem:[%s18701_s7 + $0x8b8] ss:$52 sps:$4 sm:$0xff]  }
 0x545   :  { %6347 = vmatpush1.bf16.msra.mxu0 %v13653_v26  ;;  %v13699_v26 = vld [vmem:[%s18701_s7 + $0x238] ss:$52 sps:$4 sm:$0xff]  }
 0x546   :  { %6511 = vmatpush1.bf16.msra.mxu1 %v13656_v35  ;;  %6348 = vmatprep.subr.bf16.mxu0 %v13661_v36  ;;  %v13701_v35 = vld [vmem:[%s18701_s7 + $0x5e0] ss:$52 sps:$4 sm:$0xff]  }
 0x547   :  { %6512 = vmatprep.subr.bf16.mxu1 %v13664_v12  ;;  %v13702_v36 = vld [vmem:[%s18701_s7 + $0xc60] ss:$52 sps:$4 sm:$0xff]  }
 0x548   :  { %v13703_v12 = vld [vmem:[%s18701_s7 + $0x2a0] ss:$52 sps:$4 sm:$0xff]  }
 0x549   :  { %6349 = vmatpush1.bf16.msra.mxu0 %v13659_v37  ;;  %v13704_v37 = vld [vmem:[%s18701_s7 + $0x920] ss:$52 sps:$4 sm:$0xff]  }
 0x54a   :  { %6513 = vmatpush1.bf16.msra.mxu1 %v13662_v39  ;;  %6350 = vmatprep.subr.bf16.mxu0 %v13667_v40  ;;  %v13705_v39 = vld [vmem:[%s18701_s7 + $0x648] ss:$52 sps:$4 sm:$0xff]   ;;  %v16992_v40 = vld [vmem:[%s18705_s8] sm:$0xff] }
 0x54b   :  { %6514 = vmatprep.subr.bf16.mxu1 %v13670_v43  ;;  %v13707_v43 = vld [vmem:[%s18701_s7 + $0x308] ss:$52 sps:$4 sm:$0xff]  }
 0x54d   :  { %6351 = vmatpush1.bf16.msra.mxu0 %v13665_v42  ;;  %v13706_v42 = vld [vmem:[%s18701_s7 + $0xcc8] ss:$52 sps:$4 sm:$0xff]  }
 0x54e   :  { %6515 = vmatpush1.bf16.msra.mxu1 %v13668_v27  ;;  %6361 = vmatprep.subr.bf16.mxu0 %v13673_v45  ;;  %v13708_v27 = vld [vmem:[%s18701_s7 + $0x988] ss:$52 sps:$4 sm:$0xff]   ;;  %v13709_v45 = vld [vmem:[%s18701_s7 + $0x1070] ss:$52 sps:$4 sm:$0xff]  }
 0x54f   :  { %6525 = vmatprep.subr.bf16.mxu1 %v13676_v47  ;;  %v2286_v47 = vrot.slane %v16992_v40, %v14803_v55 }
 0x550   :  { %6353 = vmatmul.mubr.bf16.vlgmr.msra.gmra.mrb[28].mxu0 %v15659_v58 }
 0x551   :  { %6517 = vmatmul.mubr.bf16.vlgmr.msra.gmra.mrb[20].mxu1 %v15659_v58  ;;  %6362 = vmatpush1.bf16.msra.mxu0 %v13671_v46  ;;  %v13710_v46 = vld [vmem:[%s18701_s7 + $0xd30] ss:$52 sps:$4 sm:$0xff]  }
 0x552   :  { %6526 = vmatpush1.bf16.msra.mxu1 %v13674_v48  ;;  %6393 = vmatprep.mubr.bf16.mxu0 %v14435_v41  ;;  %v13711_v48 = vld [vmem:[%s18701_s7 + $0x10d8] ss:$52 sps:$4 sm:$0xff]  }
 0x553   :  { %6557 = vmatprep.mubr.bf16.mxu1 %v14435_v41  ;;  %12175 = vmatprep.subr.bf16.mxu0 %v13677_v32  ;;  %v13712_v32 = vld [vmem:[%s18701_s7 + $0x13b0] ss:$52 sps:$4 sm:$0xff]  }
 0x554   :  { %12197 = vmatprep.subr.bf16.mxu1 %v13678_v49  ;;  %v13713_v49 = vld [vmem:[%s18701_s7 + $0xd98] ss:$52 sps:$4 sm:$0xff]  }
 0x55c   :  { %11638 = vmatmul.mubr.msk.bf16.vlgmr.msra.gmra.mrb[28].mxu0 %vm5578_vm6, %v15678_v0 }
 0x55d   :  { %11639 = vmatmul.mubr.msk.bf16.vlgmr.msra.gmra.mrb[20].mxu1 %vm5578_vm6, %v15678_v0  ;;  %12176 = vmatpush3.bf16.msra.mxu0 %v13679_v52  ;;  %v13716_v52 = vld [vmem:[%s18704_s9 + $0xc] ss:$20 sps:$4 sm:$0xff]  }
 0x55e   :  { %12198 = vmatpush3.bf16.msra.mxu1 %v13680_v54  ;;  %6598 = vmatprep.mubr.bf16.mxu0 %v15234_v25  ;;  %v13688_v25 = vld [vmem:[%s18701_s7 + $0x780] ss:$52 sps:$4 sm:$0xff]   ;;  %v12432_v54 = vadd.f32 %v16326_v29, %v2286_v47  ;;  %v13762_v47 = vld [vmem:[%s18704_s9 + $0x170] ss:$20 sps:$4 sm:$0xff]  }
 0x55f   :  { %6638 = vmatprep.mubr.bf16.mxu1 %v15246_v51  ;;  %12177 = vmatprep.subr.bf16.mxu0 %v13681_v56  ;;  %v13689_v51 = vld [vmem:[%s18701_s7 + $0x4a8] ss:$52 sps:$4 sm:$0xff]   ;;  %v13717_v56 = vld [vmem:[%s18701_s7 + $0x1140] ss:$52 sps:$4 sm:$0xff]  }
 0x560   :  { %12199 = vmatprep.subr.bf16.mxu1 %v13682_v57  ;;  %v13718_v29 = vld [vmem:[%s18701_s7 + $0xe00] ss:$52 sps:$4 sm:$0xff]   ;;  %v6727_v57 = vmax.f32 %v12432_v54, 0.0 }
 0x561   :  { %12178 = vmatpush3.bf16.msra.mxu0 %v13683_v59  ;;  %v13779_v54 = vld [vmem:[%s18704_s9 + $0xcc] ss:$20 sps:$4 sm:$0xff]  }
 0x562   :  { %12200 = vmatpush3.bf16.msra.mxu1 %v13684_v60  ;;  %12179 = vmatprep.subr.bf16.mxu0 %v13685_v61  ;;  %v17045_v59 = vpack.c.bf16 %v6727_v57, %v6727_v57  ;;  %v13723_v60 = vld [vmem:[%s18701_s7 + $0xe68] ss:$52 sps:$4 sm:$0xff]   ;;  %v13719_v61 = vld [vmem:[%s18704_s9 + $0x30] ss:$20 sps:$4 sm:$0xff]   ;;  %v13774_v57 = vld [vmem:[%s18704_s9 + $0x1c0] ss:$20 sps:$4 sm:$0xff]  }
 0x563   :  { %12201 = vmatprep.subr.bf16.mxu1 %v13686_v62  ;;  %v16933_v1 = vpop.f32.mrb[24].mxu0  ;;  %v13727_v62 = vld [vmem:[%s18701_s7 + $0x1210] ss:$52 sps:$4 sm:$0xff]  }
 0x564   :  { %v16941_v5 = vpop.f32.mrb[16].mxu1  ;;  %v16943_v6 = vpop.f32.mrb[25].mxu0 }
 0x565   :  { %12180 = vmatpush3.bf16.msra.mxu0 %v13687_v63  ;;  %v16948_v8 = vpop.f32.mrb[17].mxu1  ;;  %v6071_v9 = vpop.f32.mrb[26].mxu0  ;;  %v13728_v63 = vld [vmem:[%s18701_s7 + $0xed0] ss:$52 sps:$4 sm:$0xff]  }
 0x566   :  { %12202 = vmatpush3.bf16.msra.mxu1 %v13688_v25  ;;  %v6235_v10 = vpop.f32.mrb[18].mxu1  ;;  %v6072_v11 = vpop.f32.mrb[27].mxu0  ;;  %12181 = vmatprep.subr.bf16.mxu0 %v13689_v51  ;;  %v13724_v25 = vld [vmem:[%s18704_s9 + $0x58] ss:$20 sps:$4 sm:$0xff]   ;;  %v13737_v9 = vld [vmem:[%s18701_s7 + $0x12e0] ss:$52 sps:$4 sm:$0xff]  }
 0x567   :  { %v6236_v13 = vpop.f32.mrb[19].mxu1  ;;  %12203 = vmatprep.subr.bf16.mxu1 %v13690_v2  ;;  %v13732_v51 = vld [vmem:[%s18701_s7 + $0x1278] ss:$52 sps:$4 sm:$0xff]   ;;  %v13738_v11 = vld [vmem:[%s18701_s7 + $0xfa0] ss:$52 sps:$4 sm:$0xff]  }
 0x568   :  { %v13731_v2 = vld [vmem:[%s18704_s9 + $0x84] ss:$20 sps:$4 sm:$0xff]   ;;  %v13736_v10 = vld [vmem:[%s18704_s9 + $0xac] ss:$20 sps:$4 sm:$0xff]   ;;  %v13742_v13 = vld [vmem:[%s18701_s7 + $0x1348] ss:$52 sps:$4 sm:$0xff]  }
 0x569   :  { %12182 = vmatpush3.bf16.msra.mxu0 %v13691_v38  ;;  %v13733_v38 = vld [vmem:[%s18701_s7 + $0xf38] ss:$52 sps:$4 sm:$0xff]  }
 0x56a   :  { %12204 = vmatpush3.bf16.msra.mxu1 %v13692_v7  ;;  %12183 = vmatprep.subr.bf16.mxu0 %v13693_v33  ;;  %v13729_v7 = vld [vmem:[%s18704_s9 + $0x80] ss:$20 sps:$4 sm:$0xff]   ;;  %v13734_v33 = vld [vmem:[%s18704_s9 + $0xa8] ss:$20 sps:$4 sm:$0xff]  }
 0x56b   :  { %12205 = vmatprep.subr.bf16.mxu1 %v13694_v14  ;;  %v13741_v14 = vld [vmem:[%s18704_s9 + $0xd4] ss:$20 sps:$4 sm:$0xff]  }
 0x56d   :  { %12184 = vmatpush3.bf16.msra.mxu0 %v13695_v16  ;;  %v13743_v16 = vld [vmem:[%s18701_s7 + $0x1008] ss:$52 sps:$4 sm:$0xff]  }
 0x56e   :  { %12206 = vmatpush3.bf16.msra.mxu1 %v13696_v17  ;;  %12185 = vmatprep.subr.bf16.mxu0 %v13697_v18  ;;  %v13739_v17 = vld [vmem:[%s18704_s9 + $0xd0] ss:$20 sps:$4 sm:$0xff]  }
 0x56f   :  { %12207 = vmatprep.subr.bf16.mxu1 %v13698_v22  ;;  %v13749_v18 = vld [vmem:[%s18704_s9 + $0x4] ss:$20 sps:$4 sm:$0xff]   ;;  %v13746_v22 = vld [vmem:[%s18704_s9 + $0xfc] ss:$20 sps:$4 sm:$0xff]  }
 0x571   :  { %12186 = vmatpush3.bf16.msra.mxu0 %v13699_v26  ;;  %v13747_v26 = vld [vmem:[%s18704_s9] ss:$20 sps:$4 sm:$0xff]  }
 0x572   :  { %12208 = vmatpush3.bf16.msra.mxu1 %v13700_v31  ;;  %12187 = vmatprep.subr.bf16.mxu0 %v13701_v35  ;;  %v13744_v31 = vld [vmem:[%s18704_s9 + $0xf8] ss:$20 sps:$4 sm:$0xff]  }
 0x573   :  { %12209 = vmatprep.subr.bf16.mxu1 %v13702_v36  ;;  %v13752_v35 = vld [vmem:[%s18704_s9 + $0x124] ss:$20 sps:$4 sm:$0xff]   ;;  %v13755_v36 = vld [vmem:[%s18704_s9 + $0x2c] ss:$20 sps:$4 sm:$0xff]  }
 0x575   :  { %12188 = vmatpush3.bf16.msra.mxu0 %v13703_v12  ;;  %v13753_v12 = vld [vmem:[%s18704_s9 + $0x28] ss:$20 sps:$4 sm:$0xff]  }
 0x576   :  { %12210 = vmatpush3.bf16.msra.mxu1 %v13704_v37  ;;  %12189 = vmatprep.subr.bf16.mxu0 %v13705_v39  ;;  %v13750_v37 = vld [vmem:[%s18704_s9 + $0x120] ss:$20 sps:$4 sm:$0xff]  }
 0x577   :  { %12211 = vmatprep.subr.bf16.mxu1 %v13706_v42  ;;  %v13761_v39 = vld [vmem:[%s18704_s9 + $0x54] ss:$20 sps:$4 sm:$0xff]   ;;  %v13759_v42 = vld [vmem:[%s18704_s9 + $0x50] ss:$20 sps:$4 sm:$0xff]  }
 0x579   :  { %12190 = vmatpush3.bf16.msra.mxu0 %v13707_v43  ;;  %v13756_v43 = vld [vmem:[%s18704_s9 + $0x148] ss:$20 sps:$4 sm:$0xff]  }
 0x57a   :  { %12212 = vmatpush3.bf16.msra.mxu1 %v13708_v27  ;;  %12219 = vmatprep.subr.bf16.mxu0 %v13709_v45  ;;  %v13767_v27 = vld [vmem:[%s18704_s9 + $0x7c] ss:$20 sps:$4 sm:$0xff]   ;;  %v13764_v45 = vld [vmem:[%s18704_s9 + $0x174] ss:$20 sps:$4 sm:$0xff]  }
 0x57b   :  { %12411 = vmatprep.subr.bf16.mxu1 %v14433_v4 }
 0x57c   :  { %6599 = vmatmul.mubr.bf16.vlgmr.msra.gmra.mrb[32].mxu0 %v15242_v50  ;;  %v13714_v50 = vld [vmem:[%s18704_s9 + $0x8] ss:$20 sps:$4 sm:$0xff]  }
 0x57d   :  { %6639 = vmatmul.mubr.bf16.vlgmr.msra.gmra.mrb[24].mxu1 %v15448_v20  ;;  %12220 = vmatpush3.bf16.msra.mxu0 %v13710_v46  ;;  %v13721_v20 = vld [vmem:[%s18704_s9 + $0x34] ss:$20 sps:$4 sm:$0xff]   ;;  %v13765_v46 = vld [vmem:[%s18704_s9 + $0x78] ss:$20 sps:$4 sm:$0xff]  }
 0x57e   :  { %6678 = vmatprep.mubr.bf16.mxu0 %v15487_v44  ;;  %12221 = vmatprep.subr.bf16.mxu0 %v13711_v48  ;;  %v13722_v44 = vld [vmem:[%s18701_s7 + $0x11a8] ss:$52 sps:$4 sm:$0xff]   ;;  %v13773_v48 = vld [vmem:[%s18704_s9 + $0xa4] ss:$20 sps:$4 sm:$0xff]  }
 0x57f   :  { %12412 = vmatpush3.bf16.msra.mxu1 %v13712_v32  ;;  %12413 = vmatprep.mubr.msk.bf16.mxu1 %vm14434_vm2, %v14433_v4  ;;  %v13770_v32 = vld [vmem:[%s18704_s9 + $0x19c] ss:$20 sps:$4 sm:$0xff]  }
 0x580   :  { %10205 = vmatprep.subr.bf16.mxu1 %v13716_v52  ;;  %v13768_v52 = vld [vmem:[%s18704_s9 + $0x198] ss:$20 sps:$4 sm:$0xff]  }
 0x581   :  { %12222 = vmatpush3.bf16.msra.mxu0 %v13713_v49  ;;  %v13771_v49 = vld [vmem:[%s18704_s9 + $0xa0] ss:$20 sps:$4 sm:$0xff]  }
 0x582   :  { %12223 = vmatprep.subr.bf16.mxu0 %v13717_v56  ;;  %v13776_v56 = vld [vmem:[%s18704_s9 + $0x1c4] ss:$20 sps:$4 sm:$0xff]  }
 0x585   :  { %12414 = vmatmul.mubr.msk.bf16.vlgmr.msra.gmra.mrb[28].mxu1 %vm5578_vm6, %v15678_v0  ;;  %12224 = vmatpush3.bf16.msra.mxu0 %v13718_v29  ;;  %v13726_v0 = vld [vmem:[%s18704_s9 + $0x5c] ss:$20 sps:$4 sm:$0xff]  }
 0x586   :  { %10206 = vmatpush1.bf16.msra.mxu1 %v13714_v50  ;;  %10237 = vmatprep.mubr.bf16.mxu1 %v17045_v59  ;;  %v13777_v29 = vld [vmem:[%s18704_s9 + $0xc8] ss:$20 sps:$4 sm:$0xff]  }
 0x587   :  { %10207 = vmatprep.subr.bf16.mxu1 %v13721_v20  ;;  %12225 = vmatprep.subr.bf16.mxu0 %v13722_v44  ;;  %v13785_v50 = vld [vmem:[%s18704_s9 + $0xf4] ss:$20 sps:$4 sm:$0xff]   ;;  %v13782_v20 = vld [vmem:[%s18704_s9 + $0x1ec] ss:$20 sps:$4 sm:$0xff]  }
 0x588   :  { %v13780_v44 = vld [vmem:[%s18704_s9 + $0x1e8] ss:$20 sps:$4 sm:$0xff]  }
 0x589   :  { %12226 = vmatpush3.bf16.msra.mxu0 %v13723_v60  ;;  %v13783_v60 = vld [vmem:[%s18704_s9 + $0xf0] ss:$20 sps:$4 sm:$0xff]  }
 0x58a   :  { %10208 = vmatpush1.bf16.msra.mxu1 %v13719_v61  ;;  %12227 = vmatprep.subr.bf16.mxu0 %v13727_v62  ;;  %v13791_v61 = vld [vmem:[%s18704_s9 + $0x11c] ss:$20 sps:$4 sm:$0xff]   ;;  %v13788_v62 = vld [vmem:[%s18704_s9 + $0x214] ss:$20 sps:$4 sm:$0xff]  }
 0x58b   :  { %10209 = vmatprep.subr.bf16.mxu1 %v13726_v0  ;;  %v13789_v0 = vld [vmem:[%s18704_s9 + $0x118] ss:$20 sps:$4 sm:$0xff]  }
 0x58d   :  { %12228 = vmatpush3.bf16.msra.mxu0 %v13728_v63  ;;  %v13786_v63 = vld [vmem:[%s18704_s9 + $0x210] ss:$20 sps:$4 sm:$0xff]  }
 0x58e   :  { %10210 = vmatpush1.bf16.msra.mxu1 %v13724_v25  ;;  %12229 = vmatprep.subr.bf16.mxu0 %v13732_v51  ;;  %v13797_v25 = vld [vmem:[%s18704_s9 + $0x144] ss:$20 sps:$4 sm:$0xff]   ;;  %v2282_v51 = vrot.slane %v16992_v40, %v14797_v53 }
 0x58f   :  { %10211 = vmatprep.subr.bf16.mxu1 %v13731_v2  ;;  %v13794_v2 = vld [vmem:[%s18704_s9 + $0x23c] ss:$20 sps:$4 sm:$0xff]  }
 0x591   :  { %12230 = vmatpush3.bf16.msra.mxu0 %v13733_v38  ;;  %v13795_v38 = vld [vmem:[%s18704_s9 + $0x140] ss:$20 sps:$4 sm:$0xff]  }
 0x592   :  { %10212 = vmatpush1.bf16.msra.mxu1 %v13729_v7  ;;  %12231 = vmatprep.subr.bf16.mxu0 %v13737_v9  ;;  %v2294_v7 = vrot.slane %v16992_v40, %v15218_v28  ;;  %v13792_v9 = vld [vmem:[%s18704_s9 + $0x238] ss:$20 sps:$4 sm:$0xff]   ;;  %v13801_v40 = vld [vmem:[%s18704_s9 + $0x168] ss:$20 sps:$4 sm:$0xff]  }
 0x593   :  { %10213 = vmatprep.subr.bf16.mxu1 %v13736_v10  ;;  %v13803_v10 = vld [vmem:[%s18704_s9 + $0x16c] ss:$20 sps:$4 sm:$0xff]  }
 0x595   :  { %12232 = vmatpush3.bf16.msra.mxu0 %v13738_v11  ;;  %v12431_v11 = vadd.f32 %v16319_v23, %v2282_v51  ;;  %v13809_v23 = vld [vmem:[%s18704_s9 + $0x194] ss:$20 sps:$4 sm:$0xff]   ;;  %v13854_v51 = vld [vmem:[%s18704_s9 + $0x3cc] ss:$20 sps:$4 sm:$0xff]  }
 0x596   :  { %10214 = vmatpush1.bf16.msra.mxu1 %v13734_v33  ;;  %12233 = vmatprep.subr.bf16.mxu0 %v13742_v13  ;;  %v13800_v33 = vld [vmem:[%s18704_s9 + $0x264] ss:$20 sps:$4 sm:$0xff]   ;;  %v12434_v13 = vadd.f32 %v16328_v30, %v2294_v7  ;;  %v13863_v7 = vld [vmem:[%s18704_s9 + $0x2fc] ss:$20 sps:$4 sm:$0xff]  }
 0x597   :  { %10215 = vmatprep.subr.bf16.mxu1 %v13741_v14  ;;  %v13798_v14 = vld [vmem:[%s18704_s9 + $0x260] ss:$20 sps:$4 sm:$0xff]   ;;  %v13807_v30 = vld [vmem:[%s18704_s9 + $0x190] ss:$20 sps:$4 sm:$0xff]  }
 0x599   :  { %12234 = vmatpush3.bf16.msra.mxu0 %v13743_v16  ;;  %v6726_v16 = vmax.f32 %v12431_v11, 0.0  ;;  %v13858_v11 = vld [vmem:[%s18704_s9 + $0x3f0] ss:$20 sps:$4 sm:$0xff]  }
 0x59a   :  { %10216 = vmatpush1.bf16.msra.mxu1 %v13739_v17  ;;  %9918 = vmatprep.subr.bf16.mxu0 %v13749_v18  ;;  %v13806_v17 = vld [vmem:[%s18704_s9 + $0x28c] ss:$20 sps:$4 sm:$0xff]   ;;  %v6729_v18 = vmax.f32 %v12434_v13, 0.0 }
 0x59b   :  { %10217 = vmatprep.subr.bf16.mxu1 %v13746_v22  ;;  %v13804_v22 = vld [vmem:[%s18704_s9 + $0x288] ss:$20 sps:$4 sm:$0xff]   ;;  %v13867_v13 = vld [vmem:[%s18704_s9 + $0x320] ss:$20 sps:$4 sm:$0xff]  }
 0x59c   :  { %6679 = vmatmul.mubr.bf16.vlgmr.msra.gmra.mrb[36].mxu0 %v15659_v58  ;;  %v13758_v58 = vld [vmem:[%s18704_s9 + $0x14c] ss:$20 sps:$4 sm:$0xff]  }
 0x59d   :  { %9919 = vmatpush1.bf16.msra.mxu0 %v13747_v26  ;;  %9950 = vmatprep.mubr.bf16.mxu0 %v17045_v59  ;;  %v13812_v26 = vld [vmem:[%s18704_s9 + $0x2b4] ss:$20 sps:$4 sm:$0xff]  }
 0x59e   :  { %10218 = vmatpush1.bf16.msra.mxu1 %v13744_v31  ;;  %9920 = vmatprep.subr.bf16.mxu0 %v13755_v36  ;;  %v17247_v31 = vpack.c.bf16 %v6726_v16, %v6726_v16  ;;  %v17252_v36 = vpack.c.bf16 %v6729_v18, %v6729_v18  ;;  %v13872_v16 = vld [vmem:[%s18704_s9 + $0x444] ss:$20 sps:$4 sm:$0xff]   ;;  %v13881_v18 = vld [vmem:[%s18704_s9 + $0x374] ss:$20 sps:$4 sm:$0xff]  }
 0x59f   :  { %10219 = vmatprep.subr.bf16.mxu1 %v13752_v35  ;;  %v13815_v35 = vld [vmem:[%s18704_s9 + $0x1bc] ss:$20 sps:$4 sm:$0xff]  }
 0x5a1   :  { %9921 = vmatpush1.bf16.msra.mxu0 %v13753_v12  ;;  %v13813_v12 = vld [vmem:[%s18704_s9 + $0x1b8] ss:$20 sps:$4 sm:$0xff]  }
 0x5a2   :  { %10220 = vmatpush1.bf16.msra.mxu1 %v13750_v37  ;;  %9922 = vmatprep.subr.bf16.mxu0 %v13761_v39  ;;  %v13810_v37 = vld [vmem:[%s18704_s9 + $0x2b0] ss:$20 sps:$4 sm:$0xff]  }
 0x5a3   :  { %10221 = vmatprep.subr.bf16.mxu1 %v13758_v58  ;;  %v13821_v39 = vld [vmem:[%s18704_s9 + $0x1e4] ss:$20 sps:$4 sm:$0xff]   ;;  %v13818_v58 = vld [vmem:[%s18704_s9 + $0x2dc] ss:$20 sps:$4 sm:$0xff]  }
 0x5a5   :  { %9923 = vmatpush1.bf16.msra.mxu0 %v13759_v42  ;;  %v13819_v42 = vld [vmem:[%s18704_s9 + $0x1e0] ss:$20 sps:$4 sm:$0xff]  }
 0x5a6   :  { %10222 = vmatpush1.bf16.msra.mxu1 %v13756_v43  ;;  %9924 = vmatprep.subr.bf16.mxu0 %v13767_v27  ;;  %v13816_v43 = vld [vmem:[%s18704_s9 + $0x2d8] ss:$20 sps:$4 sm:$0xff]  }
 0x5a7   :  { %10223 = vmatprep.subr.bf16.mxu1 %v13764_v45  ;;  %v13827_v27 = vld [vmem:[%s18704_s9 + $0x20c] ss:$20 sps:$4 sm:$0xff]   ;;  %v13824_v45 = vld [vmem:[%s18704_s9 + $0x304] ss:$20 sps:$4 sm:$0xff]  }
 0x5a9   :  { %9925 = vmatpush1.bf16.msra.mxu0 %v13765_v46  ;;  %v13825_v46 = vld [vmem:[%s18704_s9 + $0x208] ss:$20 sps:$4 sm:$0xff]  }
 0x5aa   :  { %10224 = vmatpush1.bf16.msra.mxu1 %v13762_v47  ;;  %9926 = vmatprep.subr.bf16.mxu0 %v13773_v48  ;;  %v13822_v47 = vld [vmem:[%s18704_s9 + $0x300] ss:$20 sps:$4 sm:$0xff]  }
 0x5ab   :  { %10225 = vmatprep.subr.bf16.mxu1 %v13770_v32  ;;  %v13833_v48 = vld [vmem:[%s18704_s9 + $0x234] ss:$20 sps:$4 sm:$0xff]   ;;  %v13830_v32 = vld [vmem:[%s18704_s9 + $0x32c] ss:$20 sps:$4 sm:$0xff]  }
 0x5ad   :  { %9927 = vmatpush1.bf16.msra.mxu0 %v13771_v49  ;;  %v13828_v49 = vld [vmem:[%s18704_s9 + $0x328] ss:$20 sps:$4 sm:$0xff]  }
 0x5ae   :  { %10226 = vmatpush1.bf16.msra.mxu1 %v13768_v52  ;;  %9928 = vmatprep.subr.bf16.mxu0 %v13779_v54  ;;  %v13831_v52 = vld [vmem:[%s18704_s9 + $0x230] ss:$20 sps:$4 sm:$0xff]  }
 0x5af   :  { %10227 = vmatprep.subr.bf16.mxu1 %v13776_v56  ;;  %v13839_v54 = vld [vmem:[%s18704_s9 + $0x25c] ss:$20 sps:$4 sm:$0xff]   ;;  %v13836_v56 = vld [vmem:[%s18704_s9 + $0x354] ss:$20 sps:$4 sm:$0xff]  }
 0x5b1   :  { %9929 = vmatpush1.bf16.msra.mxu0 %v13777_v29  ;;  %v13834_v29 = vld [vmem:[%s18704_s9 + $0x350] ss:$20 sps:$4 sm:$0xff]  }
 0x5b2   :  { %10228 = vmatpush1.bf16.msra.mxu1 %v13774_v57  ;;  %9930 = vmatprep.subr.bf16.mxu0 %v13785_v50  ;;  %v13837_v57 = vld [vmem:[%s18704_s9 + $0x258] ss:$20 sps:$4 sm:$0xff]  }
 0x5b3   :  { %10229 = vmatprep.subr.bf16.mxu1 %v13782_v20  ;;  %v13845_v50 = vld [vmem:[%s18704_s9 + $0x284] ss:$20 sps:$4 sm:$0xff]   ;;  %v13842_v20 = vld [vmem:[%s18704_s9 + $0x37c] ss:$20 sps:$4 sm:$0xff]  }
 0x5b5   :  { %9931 = vmatpush1.bf16.msra.mxu0 %v13783_v60  ;;  %v13843_v60 = vld [vmem:[%s18704_s9 + $0x280] ss:$20 sps:$4 sm:$0xff]  }
 0x5b6   :  { %10230 = vmatpush1.bf16.msra.mxu1 %v13780_v44  ;;  %9932 = vmatprep.subr.bf16.mxu0 %v13791_v61  ;;  %v13840_v44 = vld [vmem:[%s18704_s9 + $0x378] ss:$20 sps:$4 sm:$0xff]  }
 0x5b7   :  { %10231 = vmatprep.subr.bf16.mxu1 %v13788_v62  ;;  %v13851_v61 = vld [vmem:[%s18704_s9 + $0x2ac] ss:$20 sps:$4 sm:$0xff]   ;;  %v13848_v62 = vld [vmem:[%s18704_s9 + $0x3a4] ss:$20 sps:$4 sm:$0xff]  }
 0x5b9   :  { %9933 = vmatpush1.bf16.msra.mxu0 %v13789_v0  ;;  %v13849_v0 = vld [vmem:[%s18704_s9 + $0x2a8] ss:$20 sps:$4 sm:$0xff]  }
 0x5ba   :  { %10232 = vmatpush1.bf16.msra.mxu1 %v13786_v63  ;;  %9934 = vmatprep.subr.bf16.mxu0 %v13797_v25  ;;  %v13846_v63 = vld [vmem:[%s18704_s9 + $0x3a0] ss:$20 sps:$4 sm:$0xff]  }
 0x5bb   :  { %10233 = vmatprep.subr.bf16.mxu1 %v13794_v2  ;;  %v13857_v25 = vld [vmem:[%s18704_s9 + $0x2d4] ss:$20 sps:$4 sm:$0xff]   ;;  %v13855_v2 = vld [vmem:[%s18704_s9 + $0x2d0] ss:$20 sps:$4 sm:$0xff]  }
 0x5bd   :  { %9935 = vmatpush1.bf16.msra.mxu0 %v13795_v38  ;;  %v13852_v38 = vld [vmem:[%s18704_s9 + $0x3c8] ss:$20 sps:$4 sm:$0xff]  }
 0x5be   :  { %10234 = vmatpush1.bf16.msra.mxu1 %v13792_v9  ;;  %9936 = vmatprep.subr.bf16.mxu0 %v13803_v10  ;;  %v13860_v9 = vld [vmem:[%s18704_s9 + $0x3f4] ss:$20 sps:$4 sm:$0xff]   ;;  %v13861_v10 = vld [vmem:[%s18704_s9 + $0x2f8] ss:$20 sps:$4 sm:$0xff]  }
 0x5bf   :  { %10235 = vmatprep.subr.bf16.mxu1 %v13800_v33  ;;  %v13869_v33 = vld [vmem:[%s18704_s9 + $0x324] ss:$20 sps:$4 sm:$0xff]  }
 0x5c1   :  { %9937 = vmatpush1.bf16.msra.mxu0 %v13801_v40  ;;  %v13866_v40 = vld [vmem:[%s18704_s9 + $0x41c] ss:$20 sps:$4 sm:$0xff]  }
 0x5c2   :  { %10236 = vmatpush1.bf16.msra.mxu1 %v13798_v14  ;;  %9938 = vmatprep.subr.bf16.mxu0 %v13809_v23  ;;  %v13864_v14 = vld [vmem:[%s18704_s9 + $0x418] ss:$20 sps:$4 sm:$0xff]  }
 0x5c3   :  { %10246 = vmatprep.subr.bf16.mxu1 %v13806_v17  ;;  %v13875_v23 = vld [vmem:[%s18704_s9 + $0x34c] ss:$20 sps:$4 sm:$0xff]   ;;  %v13873_v17 = vld [vmem:[%s18704_s9 + $0x348] ss:$20 sps:$4 sm:$0xff]  }
 0x5c5   :  { %10238 = vmatmul.mubr.bf16.vlgmr.msra.gmra.mrb[32].mxu1 %v17247_v31  ;;  %9939 = vmatpush1.bf16.msra.mxu0 %v13807_v30  ;;  %v13870_v30 = vld [vmem:[%s18704_s9 + $0x440] ss:$20 sps:$4 sm:$0xff]  }
 0x5c6   :  { %10247 = vmatpush1.bf16.msra.mxu1 %v13804_v22  ;;  %10278 = vmatprep.mubr.bf16.mxu1 %v17252_v36  ;;  %v13878_v22 = vld [vmem:[%s18704_s9 + $0x46c] ss:$20 sps:$4 sm:$0xff]  }
 0x5c7   :  { %10248 = vmatprep.subr.bf16.mxu1 %v13812_v26  ;;  %9940 = vmatprep.subr.bf16.mxu0 %v13815_v35  ;;  %v17393_v26 = vld [vmem:[%s18705_s8] sm:$0xff] }
 0x5c8   :  { %v2290_v35 = vrot.slane %v17393_v26, %v14808_v3 }
 0x5c9   :  { %9941 = vmatpush1.bf16.msra.mxu0 %v13813_v12  ;;  %v2302_v12 = vrot.slane %v17393_v26, %v584_v19  ;;  %v13884_v19 = vld [vmem:[%s18704_s9 + $0x494] ss:$20 sps:$4 sm:$0xff]  }
 0x5ca   :  { %10249 = vmatpush1.bf16.msra.mxu1 %v13810_v37  ;;  %9942 = vmatprep.subr.bf16.mxu0 %v13821_v39  ;;  %v13876_v37 = vld [vmem:[%s18704_s9 + $0x468] ss:$20 sps:$4 sm:$0xff]   ;;  %v13879_v39 = vld [vmem:[%s18704_s9 + $0x370] ss:$20 sps:$4 sm:$0xff]  }
 0x5cb   :  { %10250 = vmatprep.subr.bf16.mxu1 %v13818_v58  ;;  %v13887_v58 = vld [vmem:[%s18704_s9 + $0x39c] ss:$20 sps:$4 sm:$0xff]  }
 0x5cd   :  { %9943 = vmatpush1.bf16.msra.mxu0 %v13819_v42  ;;  %v12433_v42 = vadd.f32 %v16321_v24, %v2290_v35  ;;  %v13890_v24 = vld [vmem:[%s18704_s9 + $0x4bc] ss:$20 sps:$4 sm:$0xff]   ;;  %v13939_v35 = vld [vmem:[%s18704_s9 + $0x500] ss:$20 sps:$4 sm:$0xff]  }
 0x5ce   :  { %10251 = vmatpush1.bf16.msra.mxu1 %v13816_v43  ;;  %9944 = vmatprep.subr.bf16.mxu0 %v13827_v27  ;;  %v12436_v43 = vadd.f32 %v16943_v6, %v2302_v12  ;;  %v13882_v27 = vld [vmem:[%s18704_s9 + $0x490] ss:$20 sps:$4 sm:$0xff]   ;;  %v13936_v12 = vld [vmem:[%s18704_s9 + $0x5f8] ss:$20 sps:$4 sm:$0xff]  }
 0x5cf   :  { %10252 = vmatprep.subr.bf16.mxu1 %v13824_v45  ;;  %v13885_v45 = vld [vmem:[%s18704_s9 + $0x398] ss:$20 sps:$4 sm:$0xff]   ;;  %v6728_v6 = vmax.f32 %v12433_v42, 0.0  ;;  %v13953_v42 = vld [vmem:[%s18704_s9 + $0x554] ss:$20 sps:$4 sm:$0xff]  }
 0x5d1   :  { %9945 = vmatpush1.bf16.msra.mxu0 %v13825_v46  ;;  %v13893_v46 = vld [vmem:[%s18704_s9 + $0x3c4] ss:$20 sps:$4 sm:$0xff]  }
 0x5d2   :  { %10253 = vmatpush1.bf16.msra.mxu1 %v13822_v47  ;;  %9946 = vmatprep.subr.bf16.mxu0 %v13833_v48  ;;  %v6731_v47 = vmax.f32 %v12436_v43, 0.0  ;;  %v13891_v48 = vld [vmem:[%s18704_s9 + $0x3c0] ss:$20 sps:$4 sm:$0xff]  }
 0x5d3   :  { %10254 = vmatprep.subr.bf16.mxu1 %v13830_v32  ;;  %v13888_v32 = vld [vmem:[%s18704_s9 + $0x4b8] ss:$20 sps:$4 sm:$0xff]  }
 0x5d4   :  { %v13950_v43 = vld [vmem:[%s18704_s9 + $0x64c] ss:$20 sps:$4 sm:$0xff]  }
 0x5d5   :  { %9947 = vmatpush1.bf16.msra.mxu0 %v13831_v52  ;;  %v13896_v52 = vld [vmem:[%s18704_s9 + $0x4e4] ss:$20 sps:$4 sm:$0xff]  }
 0x5d6   :  { %10255 = vmatpush1.bf16.msra.mxu1 %v13828_v49  ;;  %9948 = vmatprep.subr.bf16.mxu0 %v13839_v54  ;;  %v13899_v49 = vld [vmem:[%s18704_s9 + $0x3ec] ss:$20 sps:$4 sm:$0xff]   ;;  %v13897_v54 = vld [vmem:[%s18704_s9 + $0x3e8] ss:$20 sps:$4 sm:$0xff]  }
 0x5d7   :  { %10256 = vmatprep.subr.bf16.mxu1 %v13836_v56  ;;  %v13894_v56 = vld [vmem:[%s18704_s9 + $0x4e0] ss:$20 sps:$4 sm:$0xff]  }
 0x5d9   :  { %9949 = vmatpush1.bf16.msra.mxu0 %v13837_v57  ;;  %v13902_v57 = vld [vmem:[%s18704_s9 + $0x50c] ss:$20 sps:$4 sm:$0xff]  }
 0x5da   :  { %10257 = vmatpush1.bf16.msra.mxu1 %v13834_v29  ;;  %9959 = vmatprep.subr.bf16.mxu0 %v13845_v50  ;;  %v13905_v29 = vld [vmem:[%s18704_s9 + $0x414] ss:$20 sps:$4 sm:$0xff]   ;;  %v13903_v50 = vld [vmem:[%s18704_s9 + $0x410] ss:$20 sps:$4 sm:$0xff]  }
 0x5db   :  { %10258 = vmatprep.subr.bf16.mxu1 %v13842_v20  ;;  %v13900_v20 = vld [vmem:[%s18704_s9 + $0x508] ss:$20 sps:$4 sm:$0xff]  }
 0x5dc   :  { %9951 = vmatmul.mubr.bf16.vlgmr.msra.gmra.mrb[40].mxu0 %v17247_v31 }
 0x5dd   :  { %9960 = vmatpush1.bf16.msra.mxu0 %v13843_v60  ;;  %9991 = vmatprep.mubr.bf16.mxu0 %v17252_v36  ;;  %v17459_v60 = vpack.c.bf16 %v6728_v6, %v6728_v6  ;;  %v13957_v6 = vld [vmem:[%s18704_s9 + $0x578] ss:$20 sps:$4 sm:$0xff]  }
 0x5de   :  { %10259 = vmatpush1.bf16.msra.mxu1 %v13840_v44  ;;  %9961 = vmatprep.subr.bf16.mxu0 %v13851_v61  ;;  %v13908_v44 = vld [vmem:[%s18704_s9 + $0x534] ss:$20 sps:$4 sm:$0xff]   ;;  %v13911_v61 = vld [vmem:[%s18704_s9 + $0x43c] ss:$20 sps:$4 sm:$0xff]  }
 0x5df   :  { %10260 = vmatprep.subr.bf16.mxu1 %v13848_v62  ;;  %v17464_v62 = vpack.c.bf16 %v6731_v47, %v6731_v47  ;;  %v13954_v47 = vld [vmem:[%s18704_s9 + $0x670] ss:$20 sps:$4 sm:$0xff]  }
 0x5e1   :  { %9962 = vmatpush1.bf16.msra.mxu0 %v13849_v0  ;;  %v13909_v0 = vld [vmem:[%s18704_s9 + $0x438] ss:$20 sps:$4 sm:$0xff]  }
 0x5e2   :  { %10261 = vmatpush1.bf16.msra.mxu1 %v13846_v63  ;;  %9963 = vmatprep.subr.bf16.mxu0 %v13857_v25  ;;  %v13906_v63 = vld [vmem:[%s18704_s9 + $0x530] ss:$20 sps:$4 sm:$0xff]  }
 0x5e3   :  { %10262 = vmatprep.subr.bf16.mxu1 %v13854_v51  ;;  %v13917_v25 = vld [vmem:[%s18704_s9 + $0x464] ss:$20 sps:$4 sm:$0xff]   ;;  %v13914_v51 = vld [vmem:[%s18704_s9 + $0x55c] ss:$20 sps:$4 sm:$0xff]  }
 0x5e5   :  { %9964 = vmatpush1.bf16.msra.mxu0 %v13855_v2  ;;  %v13915_v2 = vld [vmem:[%s18704_s9 + $0x460] ss:$20 sps:$4 sm:$0xff]  }
 0x5e6   :  { %10263 = vmatpush1.bf16.msra.mxu1 %v13852_v38  ;;  %9965 = vmatprep.subr.bf16.mxu0 %v13863_v7  ;;  %v13912_v38 = vld [vmem:[%s18704_s9 + $0x558] ss:$20 sps:$4 sm:$0xff]  }
 0x5e7   :  { %10264 = vmatprep.subr.bf16.mxu1 %v13860_v9  ;;  %v13923_v7 = vld [vmem:[%s18704_s9 + $0x48c] ss:$20 sps:$4 sm:$0xff]   ;;  %v13920_v9 = vld [vmem:[%s18704_s9 + $0x584] ss:$20 sps:$4 sm:$0xff]  }
 0x5e9   :  { %9966 = vmatpush1.bf16.msra.mxu0 %v13861_v10  ;;  %v13921_v10 = vld [vmem:[%s18704_s9 + $0x488] ss:$20 sps:$4 sm:$0xff]  }
 0x5ea   :  { %10265 = vmatpush1.bf16.msra.mxu1 %v13858_v11  ;;  %9967 = vmatprep.subr.bf16.mxu0 %v13869_v33  ;;  %v13918_v11 = vld [vmem:[%s18704_s9 + $0x580] ss:$20 sps:$4 sm:$0xff]  }
 0x5eb   :  { %10266 = vmatprep.subr.bf16.mxu1 %v13866_v40  ;;  %v13929_v33 = vld [vmem:[%s18704_s9 + $0x4b4] ss:$20 sps:$4 sm:$0xff]   ;;  %v13926_v40 = vld [vmem:[%s18704_s9 + $0x5ac] ss:$20 sps:$4 sm:$0xff]  }
 0x5ed   :  { %9968 = vmatpush1.bf16.msra.mxu0 %v13867_v13  ;;  %v13927_v13 = vld [vmem:[%s18704_s9 + $0x4b0] ss:$20 sps:$4 sm:$0xff]  }
 0x5ee   :  { %10267 = vmatpush1.bf16.msra.mxu1 %v13864_v14  ;;  %9969 = vmatprep.subr.bf16.mxu0 %v13875_v23  ;;  %v13924_v14 = vld [vmem:[%s18704_s9 + $0x5a8] ss:$20 sps:$4 sm:$0xff]  }
 0x5ef   :  { %10268 = vmatprep.subr.bf16.mxu1 %v13872_v16  ;;  %v13935_v23 = vld [vmem:[%s18704_s9 + $0x4dc] ss:$20 sps:$4 sm:$0xff]   ;;  %v13932_v16 = vld [vmem:[%s18704_s9 + $0x5d4] ss:$20 sps:$4 sm:$0xff]  }
 0x5f1   :  { %9970 = vmatpush1.bf16.msra.mxu0 %v13873_v17  ;;  %v13933_v17 = vld [vmem:[%s18704_s9 + $0x4d8] ss:$20 sps:$4 sm:$0xff]  }
 0x5f2   :  { %10269 = vmatpush1.bf16.msra.mxu1 %v13870_v30  ;;  %9971 = vmatprep.subr.bf16.mxu0 %v13881_v18  ;;  %v13930_v30 = vld [vmem:[%s18704_s9 + $0x5d0] ss:$20 sps:$4 sm:$0xff]  }
 0x5f3   :  { %10270 = vmatprep.subr.bf16.mxu1 %v13878_v22  ;;  %v13941_v18 = vld [vmem:[%s18704_s9 + $0x504] ss:$20 sps:$4 sm:$0xff]   ;;  %v13938_v22 = vld [vmem:[%s18704_s9 + $0x5fc] ss:$20 sps:$4 sm:$0xff]  }
 0x5f5   :  { %9972 = vmatpush1.bf16.msra.mxu0 %v13879_v39  ;;  %v13947_v39 = vld [vmem:[%s18704_s9 + $0x52c] ss:$20 sps:$4 sm:$0xff]  }
 0x5f6   :  { %10271 = vmatpush1.bf16.msra.mxu1 %v13876_v37  ;;  %9973 = vmatprep.subr.bf16.mxu0 %v13887_v58  ;;  %v13944_v37 = vld [vmem:[%s18704_s9 + $0x624] ss:$20 sps:$4 sm:$0xff]   ;;  %v13945_v58 = vld [vmem:[%s18704_s9 + $0x528] ss:$20 sps:$4 sm:$0xff]  }
 0x5f7   :  { %10272 = vmatprep.subr.bf16.mxu1 %v13884_v19  ;;  %v13942_v19 = vld [vmem:[%s18704_s9 + $0x620] ss:$20 sps:$4 sm:$0xff]  }
 0x5f9   :  { %9974 = vmatpush1.bf16.msra.mxu0 %v13885_v45  ;;  %v13948_v45 = vld [vmem:[%s18704_s9 + $0x648] ss:$20 sps:$4 sm:$0xff]  }
 0x5fa   :  { %10273 = vmatpush1.bf16.msra.mxu1 %v13882_v27  ;;  %9975 = vmatprep.subr.bf16.mxu0 %v13893_v46  ;;  %v13951_v27 = vld [vmem:[%s18704_s9 + $0x550] ss:$20 sps:$4 sm:$0xff]  }
 0x5fb   :  { %10274 = vmatprep.subr.bf16.mxu1 %v13890_v24  ;;  %v13959_v46 = vld [vmem:[%s18704_s9 + $0x57c] ss:$20 sps:$4 sm:$0xff]   ;;  %v13956_v24 = vld [vmem:[%s18704_s9 + $0x674] ss:$20 sps:$4 sm:$0xff]  }
 0x5fd   :  { %9976 = vmatpush1.bf16.msra.mxu0 %v13891_v48  ;;  %v13965_v48 = vld [vmem:[%s18704_s9 + $0x5a4] ss:$20 sps:$4 sm:$0xff]  }
 0x5fe   :  { %10275 = vmatpush1.bf16.msra.mxu1 %v13888_v32  ;;  %9977 = vmatprep.subr.bf16.mxu0 %v13899_v49  ;;  %v13962_v32 = vld [vmem:[%s18704_s9 + $0x69c] ss:$20 sps:$4 sm:$0xff]   ;;  %v13963_v49 = vld [vmem:[%s18704_s9 + $0x5a0] ss:$20 sps:$4 sm:$0xff]  }
 0x5ff   :  { %10276 = vmatprep.subr.bf16.mxu1 %v13896_v52  ;;  %v13960_v52 = vld [vmem:[%s18704_s9 + $0x698] ss:$20 sps:$4 sm:$0xff]  }
 0x601   :  { %9978 = vmatpush1.bf16.msra.mxu0 %v13897_v54  ;;  %v17587_v54 = vld [vmem:[%s18705_s8 + $0x8] sm:$0x1f] }
 0x602   :  { %10277 = vmatpush1.bf16.msra.mxu1 %v13894_v56  ;;  %9979 = vmatprep.subr.bf16.mxu0 %v13905_v29  ;;  %v13971_v56 = vld [vmem:[%s18704_s9 + $0x5cc] ss:$20 sps:$4 sm:$0xff]   ;;  %v13968_v29 = vld [vmem:[%s18704_s9 + $0x6c4] ss:$20 sps:$4 sm:$0xff]  }
 0x603   :  { %10287 = vmatprep.subr.bf16.mxu1 %v13902_v57  ;;  %v2322_v57 = vrot.slane %v17587_v54, %v14808_v3 }
 0x605   :  { %10279 = vmatmul.mubr.bf16.vlgmr.msra.gmra.mrb[32].mxu1 %v17459_v60  ;;  %9980 = vmatpush1.bf16.msra.mxu0 %v13903_v50  ;;  %v13969_v50 = vld [vmem:[%s18704_s9 + $0x5c8] ss:$20 sps:$4 sm:$0xff]  }
 0x606   :  { %10288 = vmatpush1.bf16.msra.mxu1 %v13900_v20  ;;  %10319 = vmatprep.mubr.bf16.mxu1 %v17464_v62  ;;  %v13966_v20 = vld [vmem:[%s18704_s9 + $0x6c0] ss:$20 sps:$4 sm:$0xff]  }
 0x607   :  { %10289 = vmatprep.subr.bf16.mxu1 %v13908_v44  ;;  %9981 = vmatprep.subr.bf16.mxu0 %v13911_v61  ;;  %v2326_v44 = vrot.slane %v17587_v54, %v15218_v28  ;;  %v13977_v61 = vld [vmem:[%s18704_s9 + $0x5f4] ss:$20 sps:$4 sm:$0xff]  }
 0x609   :  { %9982 = vmatpush1.bf16.msra.mxu0 %v13909_v0 }
 0x60a   :  { %10290 = vmatpush1.bf16.msra.mxu1 %v13906_v63  ;;  %9983 = vmatprep.subr.bf16.mxu0 %v13917_v25  ;;  %v13974_v63 = vld [vmem:[%s18704_s9 + $0x6ec] ss:$20 sps:$4 sm:$0xff]  }
 0x60b   :  { %10291 = vmatprep.subr.bf16.mxu1 %v13914_v51 }
 0x60d   :  { %9984 = vmatpush1.bf16.msra.mxu0 %v13915_v2 }
 0x60e   :  { %10292 = vmatpush1.bf16.msra.mxu1 %v13912_v38  ;;  %9985 = vmatprep.subr.bf16.mxu0 %v13923_v7 }
 0x60f   :  { %10293 = vmatprep.subr.bf16.mxu1 %v13920_v9  ;;  %v13975_v9 = vld [vmem:[%s18704_s9 + $0x5f0] ss:$20 sps:$4 sm:$0xff]  }
 0x611   :  { %9986 = vmatpush1.bf16.msra.mxu0 %v13921_v10 }
 0x612   :  { %10294 = vmatpush1.bf16.msra.mxu1 %v13918_v11  ;;  %9987 = vmatprep.subr.bf16.mxu0 %v13929_v33 }
 0x613   :  { %10295 = vmatprep.subr.bf16.mxu1 %v13926_v40  ;;  %v13972_v40 = vld [vmem:[%s18704_s9 + $0x6e8] ss:$20 sps:$4 sm:$0xff]  }
 0x615   :  { %9988 = vmatpush1.bf16.msra.mxu0 %v13927_v13  ;;  %v13983_v13 = vld [vmem:[%s18704_s9 + $0x61c] ss:$20 sps:$4 sm:$0xff]  }
 0x616   :  { %10296 = vmatpush1.bf16.msra.mxu1 %v13924_v14  ;;  %9989 = vmatprep.subr.bf16.mxu0 %v13935_v23  ;;  %v13980_v23 = vld [vmem:[%s18704_s9 + $0x714] ss:$20 sps:$4 sm:$0xff]  }
 0x617   :  { %10297 = vmatprep.subr.bf16.mxu1 %v13932_v16  ;;  %v2309_v16 = vsub.s32 7, %v14549_v21 }
 0x619   :  { %9990 = vmatpush1.bf16.msra.mxu0 %v13933_v17  ;;  %v13981_v17 = vld [vmem:[%s18704_s9 + $0x618] ss:$20 sps:$4 sm:$0xff]  }
 0x61a   :  { %10298 = vmatpush1.bf16.msra.mxu1 %v13930_v30  ;;  %10000 = vmatprep.subr.bf16.mxu0 %v13941_v18  ;;  %v13978_v30 = vld [vmem:[%s18704_s9 + $0x710] ss:$20 sps:$4 sm:$0xff]  }
 0x61b   :  { %10299 = vmatprep.subr.bf16.mxu1 %v13938_v22  ;;  %v13989_v18 = vld [vmem:[%s18704_s9 + $0x644] ss:$20 sps:$4 sm:$0xff]   ;;  %v2298_v22 = vrot.slane %v17393_v26, %v15606_v34 }
 0x61c   :  { %9992 = vmatmul.mubr.bf16.vlgmr.msra.gmra.mrb[40].mxu0 %v17459_v60 }
 0x61d   :  { %10001 = vmatpush1.bf16.msra.mxu0 %v13939_v35  ;;  %10032 = vmatprep.mubr.bf16.mxu0 %v17464_v62  ;;  %v13986_v35 = vld [vmem:[%s18704_s9 + $0x73c] ss:$20 sps:$4 sm:$0xff]  }
 0x61e   :  { %10300 = vmatpush1.bf16.msra.mxu1 %v13936_v12  ;;  %10002 = vmatprep.subr.bf16.mxu0 %v13947_v39  ;;  %v2310_v12 = vrot.slane %v17393_v26, %v2309_v16  ;;  %v13984_v39 = vld [vmem:[%s18704_s9 + $0x738] ss:$20 sps:$4 sm:$0xff]  }
 0x61f   :  { %10301 = vmatprep.subr.bf16.mxu1 %v13944_v37  ;;  %v13987_v37 = vld [vmem:[%s18704_s9 + $0x640] ss:$20 sps:$4 sm:$0xff]  }
 0x621   :  { %10003 = vmatpush1.bf16.msra.mxu0 %v13945_v58  ;;  %v13995_v58 = vld [vmem:[%s18704_s9 + $0x66c] ss:$20 sps:$4 sm:$0xff]  }
 0x622   :  { %10302 = vmatpush1.bf16.msra.mxu1 %v13942_v19  ;;  %10004 = vmatprep.subr.bf16.mxu0 %v13953_v42  ;;  %v12435_v19 = vadd.f32 %v16933_v1, %v2298_v22  ;;  %v13992_v42 = vld [vmem:[%s18704_s9 + $0x764] ss:$20 sps:$4 sm:$0xff]   ;;  %v14001_v1 = vld [vmem:[%s18704_s9 + $0x694] ss:$20 sps:$4 sm:$0xff]  }
 0x623   :  { %10303 = vmatprep.subr.bf16.mxu1 %v13950_v43  ;;  %v12438_v43 = vadd.f32 %v16948_v8, %v2310_v12  ;;  %v13998_v8 = vld [vmem:[%s18704_s9 + $0x78c] ss:$20 sps:$4 sm:$0xff]   ;;  %v14031_v12 = vld [vmem:[%s18704_s9 + $0x75c] ss:$20 sps:$4 sm:$0xff]  }
 0x625   :  { %10005 = vmatpush1.bf16.msra.mxu0 %v13951_v27  ;;  %v13993_v27 = vld [vmem:[%s18704_s9 + $0x668] ss:$20 sps:$4 sm:$0xff]  }
 0x626   :  { %10304 = vmatpush1.bf16.msra.mxu1 %v13948_v45  ;;  %10006 = vmatprep.subr.bf16.mxu0 %v13959_v46  ;;  %v13990_v45 = vld [vmem:[%s18704_s9 + $0x760] ss:$20 sps:$4 sm:$0xff]   ;;  %v6730_v46 = vmax.f32 %v12435_v19, 0.0 }
 0x627   :  { %10305 = vmatprep.subr.bf16.mxu1 %v13956_v24  ;;  %v6733_v24 = vmax.f32 %v12438_v43, 0.0  ;;  %v14026_v43 = vld [vmem:[%s18704_s9 + $0x850] ss:$20 sps:$4 sm:$0xff]  }
 0x629   :  { %10007 = vmatpush1.bf16.msra.mxu0 %v13957_v6  ;;  %v13999_v6 = vld [vmem:[%s18704_s9 + $0x690] ss:$20 sps:$4 sm:$0xff]  }
 0x62a   :  { %10306 = vmatpush1.bf16.msra.mxu1 %v13954_v47  ;;  %10008 = vmatprep.subr.bf16.mxu0 %v13965_v48  ;;  %v13996_v47 = vld [vmem:[%s18704_s9 + $0x788] ss:$20 sps:$4 sm:$0xff]   ;;  %v17679_v48 = vpack.c.bf16 %v6730_v46, %v6730_v46 }
 0x62b   :  { %10307 = vmatprep.subr.bf16.mxu1 %v13962_v32  ;;  %v14004_v32 = vld [vmem:[%s18704_s9 + $0x7b4] ss:$20 sps:$4 sm:$0xff]  }
 0x62d   :  { %10009 = vmatpush1.bf16.msra.mxu0 %v13963_v49  ;;  %v14007_v49 = vld [vmem:[%s18704_s9 + $0x6bc] ss:$20 sps:$4 sm:$0xff]  }
 0x62e   :  { %10308 = vmatpush1.bf16.msra.mxu1 %v13960_v52  ;;  %10010 = vmatprep.subr.bf16.mxu0 %v13971_v56  ;;  %v17687_v52 = vpack.c.bf16 %v6733_v24, %v6733_v24  ;;  %v14005_v56 = vld [vmem:[%s18704_s9 + $0x6b8] ss:$20 sps:$4 sm:$0xff]  }
 0x62f   :  { %10309 = vmatprep.subr.bf16.mxu1 %v13968_v29  ;;  %v17608_v0 = vpop.f32.mrb[28].mxu0  ;;  %v14002_v29 = vld [vmem:[%s18704_s9 + $0x7b0] ss:$20 sps:$4 sm:$0xff]  }
 0x630   :  { %v6559_v25 = vpop.f32.mrb[20].mxu1  ;;  %v17613_v51 = vpop.f32.mrb[29].mxu0 }
 0x631   :  { %v17615_v2 = vadd.f32 %v6559_v25, %v2322_v57  ;;  %v6561_v38 = vpop.f32.mrb[21].mxu1  ;;  %10011 = vmatpush1.bf16.msra.mxu0 %v13969_v50  ;;  %v6399_v7 = vpop.f32.mrb[30].mxu0  ;;  %v14013_v57 = vld [vmem:[%s18704_s9 + $0x6e4] ss:$20 sps:$4 sm:$0xff]   ;;  %v14010_v50 = vld [vmem:[%s18704_s9 + $0x7dc] ss:$20 sps:$4 sm:$0xff]  }
 0x632   :  { %10310 = vmatpush1.bf16.msra.mxu1 %v13966_v20  ;;  %v17620_v10 = vadd.f32 %v6561_v38, %v2326_v44  ;;  %v6563_v11 = vpop.f32.mrb[22].mxu1  ;;  %v6400_v33 = vpop.f32.mrb[31].mxu0  ;;  %10012 = vmatprep.subr.bf16.mxu0 %v13977_v61  ;;  %v14011_v20 = vld [vmem:[%s18704_s9 + $0x6e0] ss:$20 sps:$4 sm:$0xff]   ;;  %v14008_v44 = vld [vmem:[%s18704_s9 + $0x7d8] ss:$20 sps:$4 sm:$0xff]  }
 0x633   :  { %v6564_v14 = vpop.f32.mrb[23].mxu1  ;;  %10311 = vmatprep.subr.bf16.mxu1 %v13974_v63  ;;  %v14019_v61 = vld [vmem:[%s18704_s9 + $0x70c] ss:$20 sps:$4 sm:$0xff]   ;;  %v14016_v63 = vld [vmem:[%s18704_s9 + $0x804] ss:$20 sps:$4 sm:$0xff]   ;;  %v2330_v11 = vrot.slane %v17587_v54, %v15606_v34 }
 0x634   :  { %v14017_v25 = vld [vmem:[%s18704_s9 + $0x708] ss:$20 sps:$4 sm:$0xff]   ;;  %v14014_v38 = vld [vmem:[%s18704_s9 + $0x800] ss:$20 sps:$4 sm:$0xff]  }
 0x635   :  { %10013 = vmatpush1.bf16.msra.mxu0 %v13975_v9  ;;  %v14025_v7 = vld [vmem:[%s18704_s9 + $0x734] ss:$20 sps:$4 sm:$0xff]   ;;  %v14022_v33 = vld [vmem:[%s18704_s9 + $0x82c] ss:$20 sps:$4 sm:$0xff]  }
 0x636   :  { %10312 = vmatpush1.bf16.msra.mxu1 %v13972_v40  ;;  %10014 = vmatprep.subr.bf16.mxu0 %v13983_v13 }
 0x637   :  { %10313 = vmatprep.subr.bf16.mxu1 %v13980_v23 }
 0x639   :  { %10015 = vmatpush1.bf16.msra.mxu0 %v13981_v17  ;;  %v14023_v17 = vld [vmem:[%s18704_s9 + $0x730] ss:$20 sps:$4 sm:$0xff]  }
 0x63a   :  { %10314 = vmatpush1.bf16.msra.mxu1 %v13978_v30  ;;  %10016 = vmatprep.subr.bf16.mxu0 %v13989_v18 }
 0x63b   :  { %10315 = vmatprep.subr.bf16.mxu1 %v13986_v35  ;;  %v14020_v35 = vld [vmem:[%s18704_s9 + $0x828] ss:$20 sps:$4 sm:$0xff]  }
 0x63d   :  { %10017 = vmatpush1.bf16.msra.mxu0 %v13987_v37 }
 0x63e   :  { %10316 = vmatpush1.bf16.msra.mxu1 %v13984_v39  ;;  %10018 = vmatprep.subr.bf16.mxu0 %v13995_v58  ;;  %v14028_v58 = vld [vmem:[%s18704_s9 + $0x854] ss:$20 sps:$4 sm:$0xff]  }
 0x63f   :  { %10317 = vmatprep.subr.bf16.mxu1 %v13992_v42  ;;  %v14029_v42 = vld [vmem:[%s18704_s9 + $0x758] ss:$20 sps:$4 sm:$0xff]  }
 0x641   :  { %10019 = vmatpush1.bf16.msra.mxu0 %v13993_v27  ;;  %v14037_v27 = vld [vmem:[%s18704_s9 + $0x784] ss:$20 sps:$4 sm:$0xff]  }
 0x642   :  { %10318 = vmatpush1.bf16.msra.mxu1 %v13990_v45  ;;  %10020 = vmatprep.subr.bf16.mxu0 %v14001_v1  ;;  %v14034_v45 = vld [vmem:[%s18704_s9 + $0x87c] ss:$20 sps:$4 sm:$0xff]  }
 0x643   :  { %10328 = vmatprep.subr.bf16.mxu1 %v13998_v8  ;;  %v14035_v8 = vld [vmem:[%s18704_s9 + $0x780] ss:$20 sps:$4 sm:$0xff]  }
 0x645   :  { %10320 = vmatmul.mubr.bf16.vlgmr.msra.gmra.mrb[32].mxu1 %v17679_v48  ;;  %10021 = vmatpush1.bf16.msra.mxu0 %v13999_v6  ;;  %v14032_v6 = vld [vmem:[%s18704_s9 + $0x878] ss:$20 sps:$4 sm:$0xff]  }
 0x646   :  { %10329 = vmatpush1.bf16.msra.mxu1 %v13996_v47  ;;  %10360 = vmatprep.mubr.bf16.mxu1 %v17687_v52  ;;  %v14043_v47 = vld [vmem:[%s18704_s9 + $0x7ac] ss:$20 sps:$4 sm:$0xff]  }
 0x647   :  { %10330 = vmatprep.subr.bf16.mxu1 %v14004_v32  ;;  %10022 = vmatprep.subr.bf16.mxu0 %v14007_v49  ;;  %v14040_v49 = vld [vmem:[%s18704_s9 + $0x8a4] ss:$20 sps:$4 sm:$0xff]  }
 0x649   :  { %10023 = vmatpush1.bf16.msra.mxu0 %v14005_v56  ;;  %v14041_v56 = vld [vmem:[%s18704_s9 + $0x7a8] ss:$20 sps:$4 sm:$0xff]  }
 0x64a   :  { %10331 = vmatpush1.bf16.msra.mxu1 %v14002_v29  ;;  %10024 = vmatprep.subr.bf16.mxu0 %v14013_v57  ;;  %v14038_v29 = vld [vmem:[%s18704_s9 + $0x8a0] ss:$20 sps:$4 sm:$0xff]  }
 0x64b   :  { %10332 = vmatprep.subr.bf16.mxu1 %v14010_v50  ;;  %v14049_v57 = vld [vmem:[%s18704_s9 + $0x7d4] ss:$20 sps:$4 sm:$0xff]   ;;  %v14046_v50 = vld [vmem:[%s18704_s9 + $0x8cc] ss:$20 sps:$4 sm:$0xff]  }
 0x64d   :  { %10025 = vmatpush1.bf16.msra.mxu0 %v14011_v20  ;;  %v14047_v20 = vld [vmem:[%s18704_s9 + $0x7d0] ss:$20 sps:$4 sm:$0xff]  }
 0x64e   :  { %10333 = vmatpush1.bf16.msra.mxu1 %v14008_v44  ;;  %10026 = vmatprep.subr.bf16.mxu0 %v14019_v61  ;;  %v14044_v44 = vld [vmem:[%s18704_s9 + $0x8c8] ss:$20 sps:$4 sm:$0xff]  }
 0x64f   :  { %v12191_v9 = vpop.f32.mrb[32].mxu0  ;;  %10334 = vmatprep.subr.bf16.mxu1 %v14016_v63  ;;  %v14055_v61 = vld [vmem:[%s18704_s9 + $0x7fc] ss:$20 sps:$4 sm:$0xff]   ;;  %v14052_v63 = vld [vmem:[%s18704_s9 + $0x8f4] ss:$20 sps:$4 sm:$0xff]  }
 0x650   :  { %v12213_v40 = vpop.f32.mrb[24].mxu1  ;;  %v12192_v13 = vpop.f32.mrb[33].mxu0 }
 0x651   :  { %v12193_v14 = vadd.f32 %v12192_v13, %v12191_v9  ;;  %v12214_v23 = vpop.f32.mrb[25].mxu1  ;;  %v12194_v16 = vpop.f32.mrb[34].mxu0  ;;  %10027 = vmatpush1.bf16.msra.mxu0 %v14017_v25  ;;  %v14053_v25 = vld [vmem:[%s18704_s9 + $0x7f8] ss:$20 sps:$4 sm:$0xff]   ;;  %v14058_v9 = vld [vmem:[%s18704_s9 + $0x91c] ss:$20 sps:$4 sm:$0xff]  }
 0x652   :  { %v12215_v30 = vadd.f32 %v12214_v23, %v12213_v40  ;;  %10335 = vmatpush1.bf16.msra.mxu1 %v14014_v38  ;;  %v12216_v18 = vpop.f32.mrb[26].mxu1  ;;  %v12195_v22 = vpop.f32.mrb[35].mxu0  ;;  %10028 = vmatprep.subr.bf16.mxu0 %v14025_v7  ;;  %v14050_v38 = vld [vmem:[%s18704_s9 + $0x8f0] ss:$20 sps:$4 sm:$0xff]   ;;  %v14067_v40 = vld [vmem:[%s18704_s9 + $0x84c] ss:$20 sps:$4 sm:$0xff]  }
 0x653   :  { %v6601_v37 = vadd.f32 %v12193_v14, %v2330_v11  ;;  %v12217_v39 = vpop.f32.mrb[27].mxu1  ;;  %10336 = vmatprep.subr.bf16.mxu1 %v14022_v33  ;;  %v14061_v7 = vld [vmem:[%s18704_s9 + $0x824] ss:$20 sps:$4 sm:$0xff]   ;;  %v14059_v11 = vld [vmem:[%s18704_s9 + $0x820] ss:$20 sps:$4 sm:$0xff]  }
 0x654   :  { %v14056_v33 = vld [vmem:[%s18704_s9 + $0x918] ss:$20 sps:$4 sm:$0xff]   ;;  %v14065_v14 = vld [vmem:[%s18704_s9 + $0x848] ss:$20 sps:$4 sm:$0xff]   ;;  %v14062_v23 = vld [vmem:[%s18704_s9 + $0x940] ss:$20 sps:$4 sm:$0xff]  }
 0x655   :  { %v17741_v19 = vadd.f32 %v12215_v30, %v6601_v37  ;;  %10029 = vmatpush1.bf16.msra.mxu0 %v14023_v17  ;;  %v14064_v13 = vld [vmem:[%s18704_s9 + $0x944] ss:$20 sps:$4 sm:$0xff]   ;;  %v14073_v16 = vld [vmem:[%s18704_s9 + $0x874] ss:$20 sps:$4 sm:$0xff]   ;;  %v14070_v30 = vld [vmem:[%s18704_s9 + $0x96c] ss:$20 sps:$4 sm:$0xff]  }
 0x656   :  { %10337 = vmatpush1.bf16.msra.mxu1 %v14020_v35  ;;  %10030 = vmatprep.subr.bf16.mxu0 %v14031_v12  ;;  %v14071_v12 = vld [vmem:[%s18704_s9 + $0x870] ss:$20 sps:$4 sm:$0xff]   ;;  %v14068_v39 = vld [vmem:[%s18704_s9 + $0x968] ss:$20 sps:$4 sm:$0xff]  }
 0x657   :  { %10338 = vmatprep.subr.bf16.mxu1 %v14028_v58  ;;  %v14079_v58 = vld [vmem:[%s18704_s9 + $0x89c] ss:$20 sps:$4 sm:$0xff]  }
 0x658   :  { %v17755_v1 = vpop.f32.mrb[28].mxu1 }
 0x659   :  { %v12415_v46 = vpop.f32.mrb[29].mxu1  ;;  %10031 = vmatpush1.bf16.msra.mxu0 %v14029_v42 }
 0x65a   :  { %10339 = vmatpush1.bf16.msra.mxu1 %v14026_v43  ;;  %v6723_v24 = vpop.f32.mrb[30].mxu1  ;;  %10041 = vmatprep.subr.bf16.mxu0 %v14037_v27  ;;  %v14076_v43 = vld [vmem:[%s18704_s9 + $0x994] ss:$20 sps:$4 sm:$0xff]   ;;  %v14074_v46 = vld [vmem:[%s18704_s9 + $0x990] ss:$20 sps:$4 sm:$0xff]  }
 0x65b   :  { %v12416_v32 = vpop.f32.mrb[31].mxu1  ;;  %10340 = vmatprep.subr.bf16.mxu1 %v14034_v45  ;;  %v14077_v45 = vld [vmem:[%s18704_s9 + $0x898] ss:$20 sps:$4 sm:$0xff]   ;;  %v2318_v24 = vrot.slane %v17587_v54, %v14803_v55 }
 0x65c   :  { %10033 = vmatmul.mubr.bf16.vlgmr.msra.gmra.mrb[40].mxu0 %v17679_v48  ;;  %v14088_v32 = vld [vmem:[%s18704_s9 + $0x9e4] ss:$20 sps:$4 sm:$0xff]  }
 0x65d   :  { %10042 = vmatpush1.bf16.msra.mxu0 %v14035_v8  ;;  %10073 = vmatprep.mubr.bf16.mxu0 %v17687_v52  ;;  %v14082_v8 = vld [vmem:[%s18704_s9 + $0x9bc] ss:$20 sps:$4 sm:$0xff]  }
 0x65e   :  { %10341 = vmatpush1.bf16.msra.mxu1 %v14032_v6  ;;  %10043 = vmatprep.subr.bf16.mxu0 %v14043_v47  ;;  %v14083_v6 = vld [vmem:[%s18704_s9 + $0x8c0] ss:$20 sps:$4 sm:$0xff]   ;;  %v14080_v47 = vld [vmem:[%s18704_s9 + $0x9b8] ss:$20 sps:$4 sm:$0xff]  }
 0x65f   :  { %10342 = vmatprep.subr.bf16.mxu1 %v14040_v49  ;;  %v12440_v49 = vadd.f32 %v17613_v51, %v2318_v24  ;;  %v14094_v51 = vld [vmem:[%s18704_s9 + $0xa0c] ss:$20 sps:$4 sm:$0xff]  }
 0x660   :  { %v14134_v24 = vld [vmem:[%s18704_s9 + $0xb20] ss:$20 sps:$4 sm:$0xff]  }
 0x661   :  { %10044 = vmatpush1.bf16.msra.mxu0 %v14041_v56  ;;  %v14089_v56 = vld [vmem:[%s18704_s9 + $0x8e8] ss:$20 sps:$4 sm:$0xff]  }
 0x662   :  { %10343 = vmatpush1.bf16.msra.mxu1 %v14038_v29  ;;  %10045 = vmatprep.subr.bf16.mxu0 %v14049_v57  ;;  %v14086_v29 = vld [vmem:[%s18704_s9 + $0x9e0] ss:$20 sps:$4 sm:$0xff]  }
 0x663   :  { %10344 = vmatprep.subr.bf16.mxu1 %v14046_v50  ;;  %v6735_v50 = vmax.f32 %v12440_v49, 0.0  ;;  %v14148_v49 = vld [vmem:[%s18704_s9 + $0xb74] ss:$20 sps:$4 sm:$0xff]  }
 0x665   :  { %10046 = vmatpush1.bf16.msra.mxu0 %v14047_v20  ;;  %v14095_v20 = vld [vmem:[%s18704_s9 + $0x910] ss:$20 sps:$4 sm:$0xff]  }
 0x666   :  { %10345 = vmatpush1.bf16.msra.mxu1 %v14044_v44  ;;  %10047 = vmatprep.subr.bf16.mxu0 %v14055_v61  ;;  %v14092_v44 = vld [vmem:[%s18704_s9 + $0xa08] ss:$20 sps:$4 sm:$0xff]  }
 0x667   :  { %10346 = vmatprep.subr.bf16.mxu1 %v14052_v63  ;;  %v14100_v63 = vld [vmem:[%s18704_s9 + $0xa34] ss:$20 sps:$4 sm:$0xff]  }
 0x669   :  { %10048 = vmatpush1.bf16.msra.mxu0 %v14053_v25  ;;  %v14103_v25 = vld [vmem:[%s18704_s9 + $0x93c] ss:$20 sps:$4 sm:$0xff]  }
 0x66a   :  { %10347 = vmatpush1.bf16.msra.mxu1 %v14050_v38  ;;  %10049 = vmatprep.subr.bf16.mxu0 %v14061_v7  ;;  %v17904_v38 = vpack.c.bf16 %v6735_v50, %v6735_v50  ;;  %v14101_v7 = vld [vmem:[%s18704_s9 + $0x938] ss:$20 sps:$4 sm:$0xff]  }
 0x66b   :  { %10348 = vmatprep.subr.bf16.mxu1 %v14058_v9  ;;  %v14098_v9 = vld [vmem:[%s18704_s9 + $0xa30] ss:$20 sps:$4 sm:$0xff]   ;;  %v14152_v50 = vld [vmem:[%s18704_s9 + $0xb98] ss:$20 sps:$4 sm:$0xff]  }
 0x66d   :  { %10050 = vmatpush1.bf16.msra.mxu0 %v14059_v11  ;;  %v14109_v11 = vld [vmem:[%s18704_s9 + $0x964] ss:$20 sps:$4 sm:$0xff]  }
 0x66e   :  { %10349 = vmatpush1.bf16.msra.mxu1 %v14056_v33  ;;  %10051 = vmatprep.subr.bf16.mxu0 %v14067_v40  ;;  %v14106_v33 = vld [vmem:[%s18704_s9 + $0xa5c] ss:$20 sps:$4 sm:$0xff]   ;;  %v14107_v40 = vld [vmem:[%s18704_s9 + $0x960] ss:$20 sps:$4 sm:$0xff]  }
 0x66f   :  { %v12235_v17 = vpop.f32.mrb[36].mxu0  ;;  %10350 = vmatprep.subr.bf16.mxu1 %v14064_v13  ;;  %v14104_v13 = vld [vmem:[%s18704_s9 + $0xa58] ss:$20 sps:$4 sm:$0xff]  }
 0x670   :  { %v12236_v18 = vpop.f32.mrb[37].mxu0 }
 0x671   :  { %v12237_v22 = vadd.f32 %v12236_v18, %v12235_v17  ;;  %v12238_v35 = vpop.f32.mrb[38].mxu0  ;;  %10052 = vmatpush1.bf16.msra.mxu0 %v14065_v14  ;;  %v14115_v14 = vld [vmem:[%s18704_s9 + $0x98c] ss:$20 sps:$4 sm:$0xff]  }
 0x672   :  { %10351 = vmatpush1.bf16.msra.mxu1 %v14062_v23  ;;  %v12239_v37 = vpop.f32.mrb[39].mxu0  ;;  %10053 = vmatprep.subr.bf16.mxu0 %v14073_v16  ;;  %v14112_v23 = vld [vmem:[%s18704_s9 + $0xa84] ss:$20 sps:$4 sm:$0xff]   ;;  %v14113_v16 = vld [vmem:[%s18704_s9 + $0x988] ss:$20 sps:$4 sm:$0xff]  }
 0x673   :  { %v6681_v42 = vadd.f32 %v12237_v22, %v17741_v19  ;;  %10352 = vmatprep.subr.bf16.mxu1 %v14070_v30  ;;  %v14085_v19 = vld [vmem:[%s18704_s9 + $0x8c4] ss:$20 sps:$4 sm:$0xff]   ;;  %v14110_v17 = vld [vmem:[%s18704_s9 + $0xa80] ss:$20 sps:$4 sm:$0xff]   ;;  %v14116_v35 = vld [vmem:[%s18704_s9 + $0xaa8] ss:$20 sps:$4 sm:$0xff]  }
 0x674   :  { %v14121_v30 = vld [vmem:[%s18704_s9 + $0x9b4] ss:$20 sps:$4 sm:$0xff]   ;;  %v14118_v18 = vld [vmem:[%s18704_s9 + $0xaac] ss:$20 sps:$4 sm:$0xff]   ;;  %v14119_v22 = vld [vmem:[%s18704_s9 + $0x9b0] ss:$20 sps:$4 sm:$0xff]  }
 0x675   :  { %v17845_v27 = vadd.f32 %v17755_v1, %v6681_v42  ;;  %10054 = vmatpush1.bf16.msra.mxu0 %v14071_v12  ;;  %v2306_v1 = vrot.slane %v17393_v26, %v588_v15  ;;  %v14091_v15 = vld [vmem:[%s18704_s9 + $0x8ec] ss:$20 sps:$4 sm:$0xff]   ;;  %v14127_v12 = vld [vmem:[%s18704_s9 + $0x9dc] ss:$20 sps:$4 sm:$0xff]   ;;  %v14124_v37 = vld [vmem:[%s18704_s9 + $0xad4] ss:$20 sps:$4 sm:$0xff]  }
 0x676   :  { %10353 = vmatpush1.bf16.msra.mxu1 %v14068_v39  ;;  %10055 = vmatprep.subr.bf16.mxu0 %v14079_v58  ;;  %v14125_v39 = vld [vmem:[%s18704_s9 + $0x9d8] ss:$20 sps:$4 sm:$0xff]   ;;  %v14122_v58 = vld [vmem:[%s18704_s9 + $0xad0] ss:$20 sps:$4 sm:$0xff]  }
 0x677   :  { %10354 = vmatprep.subr.bf16.mxu1 %v14076_v43  ;;  %v12437_v26 = vadd.f32 %v16941_v5, %v2306_v1  ;;  %v14097_v5 = vld [vmem:[%s18704_s9 + $0x914] ss:$20 sps:$4 sm:$0xff]   ;;  %v14133_v42 = vld [vmem:[%s18704_s9 + $0xa04] ss:$20 sps:$4 sm:$0xff]   ;;  %v14130_v43 = vld [vmem:[%s18704_s9 + $0xafc] ss:$20 sps:$4 sm:$0xff]  }
 0x678   :  { %v14136_v1 = vld [vmem:[%s18704_s9 + $0xb24] ss:$20 sps:$4 sm:$0xff]  }
 0x679   :  { %10056 = vmatpush1.bf16.msra.mxu0 %v14077_v45  ;;  %v6732_v57 = vmax.f32 %v12437_v26, 0.0  ;;  %v14131_v45 = vld [vmem:[%s18704_s9 + $0xa00] ss:$20 sps:$4 sm:$0xff]   ;;  %v14140_v26 = vld [vmem:[%s18704_s9 + $0xb48] ss:$20 sps:$4 sm:$0xff]  }
 0x67a   :  { %10355 = vmatpush1.bf16.msra.mxu1 %v14074_v46  ;;  %10057 = vmatprep.subr.bf16.mxu0 %v14085_v19  ;;  %v14128_v46 = vld [vmem:[%s18704_s9 + $0xaf8] ss:$20 sps:$4 sm:$0xff]  }
 0x67b   :  { %10356 = vmatprep.subr.bf16.mxu1 %v14082_v8  ;;  %v17896_v61 = vpack.c.bf16 %v6732_v57, %v6732_v57  ;;  %v14139_v19 = vld [vmem:[%s18704_s9 + $0xa2c] ss:$20 sps:$4 sm:$0xff]   ;;  %v14137_v8 = vld [vmem:[%s18704_s9 + $0xa28] ss:$20 sps:$4 sm:$0xff]  }
 0x67c   :  { %v14154_v57 = vld [vmem:[%s18704_s9 + $0xb9c] ss:$20 sps:$4 sm:$0xff]  }
 0x67d   :  { %10058 = vmatpush1.bf16.msra.mxu0 %v14083_v6  ;;  %v14145_v6 = vld [vmem:[%s18704_s9 + $0xa54] ss:$20 sps:$4 sm:$0xff]  }
 0x67e   :  { %10357 = vmatpush1.bf16.msra.mxu1 %v14080_v47  ;;  %10059 = vmatprep.subr.bf16.mxu0 %v14091_v15  ;;  %v14142_v47 = vld [vmem:[%s18704_s9 + $0xb4c] ss:$20 sps:$4 sm:$0xff]   ;;  %v14143_v15 = vld [vmem:[%s18704_s9 + $0xa50] ss:$20 sps:$4 sm:$0xff]  }
 0x67f   :  { %10358 = vmatprep.subr.bf16.mxu1 %v14088_v32  ;;  %v14151_v32 = vld [vmem:[%s18704_s9 + $0xa7c] ss:$20 sps:$4 sm:$0xff]  }
 0x681   :  { %10060 = vmatpush1.bf16.msra.mxu0 %v14089_v56  ;;  %v14149_v56 = vld [vmem:[%s18704_s9 + $0xa78] ss:$20 sps:$4 sm:$0xff]  }
 0x682   :  { %10359 = vmatpush1.bf16.msra.mxu1 %v14086_v29  ;;  %10061 = vmatprep.subr.bf16.mxu0 %v14097_v5  ;;  %v14146_v29 = vld [vmem:[%s18704_s9 + $0xb70] ss:$20 sps:$4 sm:$0xff]  }
 0x683   :  { %10369 = vmatprep.subr.bf16.mxu1 %v14094_v51  ;;  %v14157_v5 = vld [vmem:[%s18704_s9 + $0xaa4] ss:$20 sps:$4 sm:$0xff]   ;;  %v14155_v51 = vld [vmem:[%s18704_s9 + $0xaa0] ss:$20 sps:$4 sm:$0xff]  }
 0x685   :  { %10361 = vmatmul.mubr.bf16.vlgmr.msra.gmra.mrb[32].mxu1 %v17896_v61  ;;  %10062 = vmatpush1.bf16.msra.mxu0 %v14095_v20  ;;  %v14163_v20 = vld [vmem:[%s18704_s9 + $0xacc] ss:$20 sps:$4 sm:$0xff]  }
 0x686   :  { %10370 = vmatpush1.bf16.msra.mxu1 %v14092_v44  ;;  %10401 = vmatprep.mubr.bf16.mxu1 %v17904_v38  ;;  %v14160_v44 = vld [vmem:[%s18704_s9 + $0xbc4] ss:$20 sps:$4 sm:$0xff]  }
 0x687   :  { %10371 = vmatprep.subr.bf16.mxu1 %v14100_v63  ;;  %10063 = vmatprep.subr.bf16.mxu0 %v14103_v25  ;;  %v14161_v63 = vld [vmem:[%s18704_s9 + $0xac8] ss:$20 sps:$4 sm:$0xff]   ;;  %v14158_v25 = vld [vmem:[%s18704_s9 + $0xbc0] ss:$20 sps:$4 sm:$0xff]  }
 0x689   :  { %10064 = vmatpush1.bf16.msra.mxu0 %v14101_v7  ;;  %v14169_v7 = vld [vmem:[%s18704_s9 + $0xaf4] ss:$20 sps:$4 sm:$0xff]  }
 0x68a   :  { %10372 = vmatpush1.bf16.msra.mxu1 %v14098_v9  ;;  %10065 = vmatprep.subr.bf16.mxu0 %v14109_v11  ;;  %v14166_v9 = vld [vmem:[%s18704_s9 + $0xbec] ss:$20 sps:$4 sm:$0xff]   ;;  %v14167_v11 = vld [vmem:[%s18704_s9 + $0xaf0] ss:$20 sps:$4 sm:$0xff]  }
 0x68b   :  { %10373 = vmatprep.subr.bf16.mxu1 %v14106_v33  ;;  %v14164_v33 = vld [vmem:[%s18704_s9 + $0xbe8] ss:$20 sps:$4 sm:$0xff]  }
 0x68d   :  { %10066 = vmatpush1.bf16.msra.mxu0 %v14107_v40  ;;  %v14175_v40 = vld [vmem:[%s18704_s9 + $0xb1c] ss:$20 sps:$4 sm:$0xff]  }
 0x68e   :  { %10374 = vmatpush1.bf16.msra.mxu1 %v14104_v13  ;;  %10067 = vmatprep.subr.bf16.mxu0 %v14115_v14  ;;  %v14172_v13 = vld [vmem:[%s18704_s9 + $0xc14] ss:$20 sps:$4 sm:$0xff]   ;;  %v14173_v14 = vld [vmem:[%s18704_s9 + $0xb18] ss:$20 sps:$4 sm:$0xff]  }
 0x68f   :  { %10375 = vmatprep.subr.bf16.mxu1 %v14112_v23  ;;  %v14170_v23 = vld [vmem:[%s18704_s9 + $0xc10] ss:$20 sps:$4 sm:$0xff]  }
 0x691   :  { %10068 = vmatpush1.bf16.msra.mxu0 %v14113_v16  ;;  %v14181_v16 = vld [vmem:[%s18704_s9 + $0xb44] ss:$20 sps:$4 sm:$0xff]  }
 0x692   :  { %10376 = vmatpush1.bf16.msra.mxu1 %v14110_v17  ;;  %10069 = vmatprep.subr.bf16.mxu0 %v14121_v30  ;;  %v2314_v17 = vrot.slane %v17587_v54, %v14797_v53  ;;  %v14178_v30 = vld [vmem:[%s18704_s9 + $0xc3c] ss:$20 sps:$4 sm:$0xff]   ;;  %v14187_v54 = vld [vmem:[%s18704_s9 + $0xb6c] ss:$20 sps:$4 sm:$0xff]  }
 0x693   :  { %10377 = vmatprep.subr.bf16.mxu1 %v14118_v18  ;;  %v14179_v18 = vld [vmem:[%s18704_s9 + $0xb40] ss:$20 sps:$4 sm:$0xff]  }
 0x695   :  { %10070 = vmatpush1.bf16.msra.mxu0 %v14119_v22  ;;  %v14176_v22 = vld [vmem:[%s18704_s9 + $0xc38] ss:$20 sps:$4 sm:$0xff]  }
 0x696   :  { %10378 = vmatpush1.bf16.msra.mxu1 %v14116_v35  ;;  %10071 = vmatprep.subr.bf16.mxu0 %v14127_v12  ;;  %v12439_v35 = vadd.f32 %v17608_v0, %v2314_v17  ;;  %v14184_v12 = vld [vmem:[%s18704_s9 + $0xc64] ss:$20 sps:$4 sm:$0xff]   ;;  %v14193_v0 = vld [vmem:[%s18704_s9 + $0xb94] ss:$20 sps:$4 sm:$0xff]  }
 0x697   :  { %10379 = vmatprep.subr.bf16.mxu1 %v14124_v37  ;;  %v14185_v37 = vld [vmem:[%s18704_s9 + $0xb68] ss:$20 sps:$4 sm:$0xff]  }
 0x698   :  { %v14241_v17 = vld [vmem:[%s18704_s9 + $0xcd4] ss:$20 sps:$4 sm:$0xff]  }
 0x699   :  { %10072 = vmatpush1.bf16.msra.mxu0 %v14125_v39  ;;  %v14182_v39 = vld [vmem:[%s18704_s9 + $0xc60] ss:$20 sps:$4 sm:$0xff]  }
 0x69a   :  { %10380 = vmatpush1.bf16.msra.mxu1 %v14122_v58  ;;  %10082 = vmatprep.subr.bf16.mxu0 %v14133_v42  ;;  %v6734_v58 = vmax.f32 %v12439_v35, 0.0  ;;  %v14190_v42 = vld [vmem:[%s18704_s9 + $0xc8c] ss:$20 sps:$4 sm:$0xff]   ;;  %v14244_v35 = vld [vmem:[%s18704_s9 + $0xdf4] ss:$20 sps:$4 sm:$0xff]  }
 0x69b   :  { %10381 = vmatprep.subr.bf16.mxu1 %v14130_v43  ;;  %v6737_v43 = vmax.f32 %v17620_v10, 0.0  ;;  %v14199_v10 = vld [vmem:[%s18704_s9 + $0xbbc] ss:$20 sps:$4 sm:$0xff]  }
 0x69c   :  { %10074 = vmatmul.mubr.bf16.vlgmr.msra.gmra.mrb[40].mxu0 %v17896_v61 }
 0x69d   :  { %10083 = vmatpush1.bf16.msra.mxu0 %v14131_v45  ;;  %10114 = vmatprep.mubr.bf16.mxu0 %v17904_v38  ;;  %v14191_v45 = vld [vmem:[%s18704_s9 + $0xb90] ss:$20 sps:$4 sm:$0xff]  }
 0x69e   :  { %10382 = vmatpush1.bf16.msra.mxu1 %v14128_v46  ;;  %10084 = vmatprep.subr.bf16.mxu0 %v14139_v19  ;;  %v14188_v46 = vld [vmem:[%s18704_s9 + $0xc88] ss:$20 sps:$4 sm:$0xff]   ;;  %v18100_v19 = vpack.c.bf16 %v6734_v58, %v6734_v58  ;;  %v14251_v58 = vld [vmem:[%s18704_s9 + $0xd20] ss:$20 sps:$4 sm:$0xff]  }
 0x69f   :  { %10383 = vmatprep.subr.bf16.mxu1 %v14136_v1  ;;  %v14196_v1 = vld [vmem:[%s18704_s9 + $0xcb4] ss:$20 sps:$4 sm:$0xff]  }
 0x6a1   :  { %10085 = vmatpush1.bf16.msra.mxu0 %v14137_v8  ;;  %v18108_v8 = vpack.c.bf16 %v6737_v43, %v6737_v43  ;;  %v14259_v43 = vld [vmem:[%s18704_s9 + $0xd4c] ss:$20 sps:$4 sm:$0xff]  }
 0x6a2   :  { %10384 = vmatpush1.bf16.msra.mxu1 %v14134_v24  ;;  %10086 = vmatprep.subr.bf16.mxu0 %v14145_v6  ;;  %v14197_v24 = vld [vmem:[%s18704_s9 + $0xbb8] ss:$20 sps:$4 sm:$0xff]   ;;  %v14194_v6 = vld [vmem:[%s18704_s9 + $0xcb0] ss:$20 sps:$4 sm:$0xff]  }
 0x6a3   :  { %10385 = vmatprep.subr.bf16.mxu1 %v14142_v47  ;;  %v14205_v47 = vld [vmem:[%s18704_s9 + $0xbe4] ss:$20 sps:$4 sm:$0xff]  }
 0x6a5   :  { %10087 = vmatpush1.bf16.msra.mxu0 %v14143_v15  ;;  %v14202_v15 = vld [vmem:[%s18704_s9 + $0xcdc] ss:$20 sps:$4 sm:$0xff]  }
 0x6a6   :  { %10386 = vmatpush1.bf16.msra.mxu1 %v14140_v26  ;;  %10088 = vmatprep.subr.bf16.mxu0 %v14151_v32  ;;  %v14203_v26 = vld [vmem:[%s18704_s9 + $0xbe0] ss:$20 sps:$4 sm:$0xff]   ;;  %v14200_v32 = vld [vmem:[%s18704_s9 + $0xcd8] ss:$20 sps:$4 sm:$0xff]  }
 0x6a7   :  { %10387 = vmatprep.subr.bf16.mxu1 %v14148_v49  ;;  %v14211_v49 = vld [vmem:[%s18704_s9 + $0xc0c] ss:$20 sps:$4 sm:$0xff]  }
 0x6a9   :  { %10089 = vmatpush1.bf16.msra.mxu0 %v14149_v56  ;;  %v14208_v56 = vld [vmem:[%s18704_s9 + $0xd04] ss:$20 sps:$4 sm:$0xff]  }
 0x6aa   :  { %10388 = vmatpush1.bf16.msra.mxu1 %v14146_v29  ;;  %10090 = vmatprep.subr.bf16.mxu0 %v14157_v5  ;;  %v14209_v29 = vld [vmem:[%s18704_s9 + $0xc08] ss:$20 sps:$4 sm:$0xff]   ;;  %v14206_v5 = vld [vmem:[%s18704_s9 + $0xd00] ss:$20 sps:$4 sm:$0xff]  }
 0x6ab   :  { %10389 = vmatprep.subr.bf16.mxu1 %v14154_v57  ;;  %v14217_v57 = vld [vmem:[%s18704_s9 + $0xc34] ss:$20 sps:$4 sm:$0xff]  }
 0x6ad   :  { %10091 = vmatpush1.bf16.msra.mxu0 %v14155_v51  ;;  %v14214_v51 = vld [vmem:[%s18704_s9 + $0xd2c] ss:$20 sps:$4 sm:$0xff]  }
 0x6ae   :  { %10390 = vmatpush1.bf16.msra.mxu1 %v14152_v50  ;;  %10092 = vmatprep.subr.bf16.mxu0 %v14163_v20  ;;  %v14215_v50 = vld [vmem:[%s18704_s9 + $0xc30] ss:$20 sps:$4 sm:$0xff]   ;;  %v14212_v20 = vld [vmem:[%s18704_s9 + $0xd28] ss:$20 sps:$4 sm:$0xff]  }
 0x6af   :  { %10391 = vmatprep.subr.bf16.mxu1 %v14160_v44  ;;  %v14223_v44 = vld [vmem:[%s18704_s9 + $0xc5c] ss:$20 sps:$4 sm:$0xff]  }
 0x6b1   :  { %10093 = vmatpush1.bf16.msra.mxu0 %v14161_v63  ;;  %v14220_v63 = vld [vmem:[%s18704_s9 + $0xd54] ss:$20 sps:$4 sm:$0xff]  }
 0x6b2   :  { %10392 = vmatpush1.bf16.msra.mxu1 %v14158_v25  ;;  %10094 = vmatprep.subr.bf16.mxu0 %v14169_v7  ;;  %v14221_v25 = vld [vmem:[%s18704_s9 + $0xc58] ss:$20 sps:$4 sm:$0xff]   ;;  %v14218_v7 = vld [vmem:[%s18704_s9 + $0xd50] ss:$20 sps:$4 sm:$0xff]  }
 0x6b3   :  { %10393 = vmatprep.subr.bf16.mxu1 %v14166_v9  ;;  %v14229_v9 = vld [vmem:[%s18704_s9 + $0xc84] ss:$20 sps:$4 sm:$0xff]  }
 0x6b5   :  { %10095 = vmatpush1.bf16.msra.mxu0 %v14167_v11  ;;  %v14226_v11 = vld [vmem:[%s18704_s9 + $0xd7c] ss:$20 sps:$4 sm:$0xff]  }
 0x6b6   :  { %10394 = vmatpush1.bf16.msra.mxu1 %v14164_v33  ;;  %10096 = vmatprep.subr.bf16.mxu0 %v14175_v40  ;;  %v14227_v33 = vld [vmem:[%s18704_s9 + $0xc80] ss:$20 sps:$4 sm:$0xff]   ;;  %v14224_v40 = vld [vmem:[%s18704_s9 + $0xd78] ss:$20 sps:$4 sm:$0xff]  }
 0x6b7   :  { %10395 = vmatprep.subr.bf16.mxu1 %v14172_v13  ;;  %v14235_v13 = vld [vmem:[%s18704_s9 + $0xcac] ss:$20 sps:$4 sm:$0xff]  }
 0x6b9   :  { %10097 = vmatpush1.bf16.msra.mxu0 %v14173_v14  ;;  %v14232_v14 = vld [vmem:[%s18704_s9 + $0xda4] ss:$20 sps:$4 sm:$0xff]  }
 0x6ba   :  { %10396 = vmatpush1.bf16.msra.mxu1 %v14170_v23  ;;  %10098 = vmatprep.subr.bf16.mxu0 %v14181_v16  ;;  %v14233_v23 = vld [vmem:[%s18704_s9 + $0xca8] ss:$20 sps:$4 sm:$0xff]   ;;  %v14230_v16 = vld [vmem:[%s18704_s9 + $0xda0] ss:$20 sps:$4 sm:$0xff]  }
 0x6bb   :  { %10397 = vmatprep.subr.bf16.mxu1 %v14178_v30  ;;  %v14238_v30 = vld [vmem:[%s18704_s9 + $0xdcc] ss:$20 sps:$4 sm:$0xff]  }
 0x6bd   :  { %10099 = vmatpush1.bf16.msra.mxu0 %v14179_v18  ;;  %v14239_v18 = vld [vmem:[%s18704_s9 + $0xcd0] ss:$20 sps:$4 sm:$0xff]  }
 0x6be   :  { %10398 = vmatpush1.bf16.msra.mxu1 %v14176_v22  ;;  %10100 = vmatprep.subr.bf16.mxu0 %v14187_v54  ;;  %v14236_v22 = vld [vmem:[%s18704_s9 + $0xdc8] ss:$20 sps:$4 sm:$0xff]  }
 0x6bf   :  { %10399 = vmatprep.subr.bf16.mxu1 %v14184_v12  ;;  %v14247_v54 = vld [vmem:[%s18704_s9 + $0xcfc] ss:$20 sps:$4 sm:$0xff]   ;;  %v14245_v12 = vld [vmem:[%s18704_s9 + $0xcf8] ss:$20 sps:$4 sm:$0xff]  }
 0x6c1   :  { %10101 = vmatpush1.bf16.msra.mxu0 %v14185_v37  ;;  %v14242_v37 = vld [vmem:[%s18704_s9 + $0xdf0] ss:$20 sps:$4 sm:$0xff]  }
 0x6c2   :  { %10400 = vmatpush1.bf16.msra.mxu1 %v14182_v39  ;;  %10102 = vmatprep.subr.bf16.mxu0 %v14193_v0  ;;  %v14253_v39 = vld [vmem:[%s18704_s9 + $0xd24] ss:$20 sps:$4 sm:$0xff]   ;;  %v14250_v0 = vld [vmem:[%s18704_s9 + $0xe1c] ss:$20 sps:$4 sm:$0xff]  }
 0x6c3   :  { %10410 = vmatprep.subr.bf16.mxu1 %v14190_v42  ;;  %v14248_v42 = vld [vmem:[%s18704_s9 + $0xe18] ss:$20 sps:$4 sm:$0xff]  }
 0x6c5   :  { %10402 = vmatmul.mubr.bf16.vlgmr.msra.gmra.mrb[32].mxu1 %v18100_v19  ;;  %10103 = vmatpush1.bf16.msra.mxu0 %v14191_v45  ;;  %v14256_v45 = vld [vmem:[%s18704_s9 + $0xe44] ss:$20 sps:$4 sm:$0xff]  }
 0x6c6   :  { %10411 = vmatpush1.bf16.msra.mxu1 %v14188_v46  ;;  %10442 = vmatprep.mubr.bf16.mxu1 %v18108_v8  ;;  %v14257_v46 = vld [vmem:[%s18704_s9 + $0xd48] ss:$20 sps:$4 sm:$0xff]  }
 0x6c7   :  { %10412 = vmatprep.subr.bf16.mxu1 %v14196_v1  ;;  %10104 = vmatprep.subr.bf16.mxu0 %v14199_v10  ;;  %v14254_v1 = vld [vmem:[%s18704_s9 + $0xe40] ss:$20 sps:$4 sm:$0xff]  }
 0x6c8   :  { %v14265_v10 = vld [vmem:[%s18704_s9 + $0xd74] ss:$20 sps:$4 sm:$0xff]  }
 0x6c9   :  { %10105 = vmatpush1.bf16.msra.mxu0 %v14197_v24  ;;  %v14262_v24 = vld [vmem:[%s18704_s9 + $0xe6c] ss:$20 sps:$4 sm:$0xff]  }
 0x6ca   :  { %10413 = vmatpush1.bf16.msra.mxu1 %v14194_v6  ;;  %10106 = vmatprep.subr.bf16.mxu0 %v14205_v47  ;;  %v14263_v6 = vld [vmem:[%s18704_s9 + $0xd70] ss:$20 sps:$4 sm:$0xff]   ;;  %v14260_v47 = vld [vmem:[%s18704_s9 + $0xe68] ss:$20 sps:$4 sm:$0xff]  }
 0x6cb   :  { %10414 = vmatprep.subr.bf16.mxu1 %v14202_v15  ;;  %v14271_v15 = vld [vmem:[%s18704_s9 + $0xd9c] ss:$20 sps:$4 sm:$0xff]  }
 0x6cd   :  { %10107 = vmatpush1.bf16.msra.mxu0 %v14203_v26  ;;  %v14268_v26 = vld [vmem:[%s18704_s9 + $0xe94] ss:$20 sps:$4 sm:$0xff]  }
 0x6ce   :  { %10415 = vmatpush1.bf16.msra.mxu1 %v14200_v32  ;;  %10108 = vmatprep.subr.bf16.mxu0 %v14211_v49  ;;  %v14269_v32 = vld [vmem:[%s18704_s9 + $0xd98] ss:$20 sps:$4 sm:$0xff]   ;;  %v14266_v49 = vld [vmem:[%s18704_s9 + $0xe90] ss:$20 sps:$4 sm:$0xff]  }
 0x6cf   :  { %10416 = vmatprep.subr.bf16.mxu1 %v14208_v56  ;;  %v14277_v56 = vld [vmem:[%s18704_s9 + $0xdc4] ss:$20 sps:$4 sm:$0xff]  }
 0x6d1   :  { %10109 = vmatpush1.bf16.msra.mxu0 %v14209_v29  ;;  %v14274_v29 = vld [vmem:[%s18704_s9 + $0xebc] ss:$20 sps:$4 sm:$0xff]  }
 0x6d2   :  { %10417 = vmatpush1.bf16.msra.mxu1 %v14206_v5  ;;  %10110 = vmatprep.subr.bf16.mxu0 %v14217_v57  ;;  %v14275_v5 = vld [vmem:[%s18704_s9 + $0xdc0] ss:$20 sps:$4 sm:$0xff]   ;;  %v14272_v57 = vld [vmem:[%s18704_s9 + $0xeb8] ss:$20 sps:$4 sm:$0xff]  }
 0x6d3   :  { %10418 = vmatprep.subr.bf16.mxu1 %v14214_v51  ;;  %v14283_v51 = vld [vmem:[%s18704_s9 + $0xdec] ss:$20 sps:$4 sm:$0xff]  }
 0x6d5   :  { %10111 = vmatpush1.bf16.msra.mxu0 %v14215_v50  ;;  %v14280_v50 = vld [vmem:[%s18704_s9 + $0xee4] ss:$20 sps:$4 sm:$0xff]  }
 0x6d6   :  { %10419 = vmatpush1.bf16.msra.mxu1 %v14212_v20  ;;  %10112 = vmatprep.subr.bf16.mxu0 %v14223_v44  ;;  %v14281_v20 = vld [vmem:[%s18704_s9 + $0xde8] ss:$20 sps:$4 sm:$0xff]   ;;  %v14278_v44 = vld [vmem:[%s18704_s9 + $0xee0] ss:$20 sps:$4 sm:$0xff]  }
 0x6d7   :  { %10420 = vmatprep.subr.bf16.mxu1 %v14220_v63  ;;  %v14286_v63 = vld [vmem:[%s18704_s9 + $0xe14] ss:$20 sps:$4 sm:$0xff]  }
 0x6d9   :  { %10113 = vmatpush1.bf16.msra.mxu0 %v14221_v25  ;;  %v6736_v25 = vmax.f32 %v17615_v2, 0.0  ;;  %v14292_v2 = vld [vmem:[%s18704_s9 + $0xe3c] ss:$20 sps:$4 sm:$0xff]  }
 0x6da   :  { %10421 = vmatpush1.bf16.msra.mxu1 %v14218_v7  ;;  %10123 = vmatprep.subr.bf16.mxu0 %v14229_v9  ;;  %v14289_v7 = vld [vmem:[%s18704_s9 + $0xf0c] ss:$20 sps:$4 sm:$0xff]   ;;  %v14284_v9 = vld [vmem:[%s18704_s9 + $0xe10] ss:$20 sps:$4 sm:$0xff]  }
 0x6db   :  { %10422 = vmatprep.subr.bf16.mxu1 %v14226_v11  ;;  %v14287_v11 = vld [vmem:[%s18704_s9 + $0xf08] ss:$20 sps:$4 sm:$0xff]  }
 0x6dc   :  { %10115 = vmatmul.mubr.bf16.vlgmr.msra.gmra.mrb[40].mxu0 %v18100_v19 }
 0x6dd   :  { %10124 = vmatpush1.bf16.msra.mxu0 %v14227_v33  ;;  %10155 = vmatprep.mubr.bf16.mxu0 %v18108_v8  ;;  %v18304_v33 = vpack.c.bf16 %v6736_v25, %v6736_v25  ;;  %v14339_v25 = vld [vmem:[%s18704_s9 + $0x1c8] ss:$20 sps:$4 sm:$0xff]  }
 0x6de   :  { %10423 = vmatpush1.bf16.msra.mxu1 %v14224_v40  ;;  %10125 = vmatprep.subr.bf16.mxu0 %v14235_v13  ;;  %v14295_v40 = vld [vmem:[%s18704_s9 + $0xf34] ss:$20 sps:$4 sm:$0xff]   ;;  %v14290_v13 = vld [vmem:[%s18704_s9 + $0xe38] ss:$20 sps:$4 sm:$0xff]  }
 0x6df   :  { %10424 = vmatprep.subr.bf16.mxu1 %v14232_v14  ;;  %v14293_v14 = vld [vmem:[%s18704_s9 + $0xf30] ss:$20 sps:$4 sm:$0xff]  }
 0x6e1   :  { %10126 = vmatpush1.bf16.msra.mxu0 %v14233_v23  ;;  %v14298_v23 = vld [vmem:[%s18704_s9 + $0xe64] ss:$20 sps:$4 sm:$0xff]  }
 0x6e2   :  { %10425 = vmatpush1.bf16.msra.mxu1 %v14230_v16  ;;  %10127 = vmatprep.subr.bf16.mxu0 %v14241_v17  ;;  %v14299_v16 = vld [vmem:[%s18704_s9 + $0x3d0] ss:$20 sps:$4 sm:$0xff]   ;;  %v14296_v17 = vld [vmem:[%s18704_s9 + $0xe60] ss:$20 sps:$4 sm:$0xff]  }
 0x6e3   :  { %10426 = vmatprep.subr.bf16.mxu1 %v14238_v30  ;;  %v14303_v30 = vld [vmem:[%s18704_s9 + $0xe8c] ss:$20 sps:$4 sm:$0xff]  }
 0x6e5   :  { %10128 = vmatpush1.bf16.msra.mxu0 %v14239_v18  ;;  %v6738_v18 = vmax.f32 %v17845_v27, 0.0  ;;  %v14308_v27 = vld [vmem:[%s18704_s9 + $0xeb4] ss:$20 sps:$4 sm:$0xff]  }
 0x6e6   :  { %10427 = vmatpush1.bf16.msra.mxu1 %v14236_v22  ;;  %10129 = vmatprep.subr.bf16.mxu0 %v14247_v54  ;;  %v14301_v22 = vld [vmem:[%s18704_s9 + $0xe88] ss:$20 sps:$4 sm:$0xff]   ;;  %v14300_v54 = vld [vmem:[%s18704_s9 + $0x290] ss:$20 sps:$4 sm:$0xff]  }
 0x6e7   :  { %10428 = vmatprep.subr.bf16.mxu1 %v14244_v35  ;;  %v18336_v35 = vpack.c.bf16 %v6738_v18, %v6738_v18  ;;  %v14352_v18 = vld [vmem:[%s18704_s9 + $0x830] ss:$20 sps:$4 sm:$0xff]  }
 0x6e9   :  { %10130 = vmatpush1.bf16.msra.mxu0 %v14245_v12  ;;  %v14304_v12 = vld [vmem:[%s18704_s9 + $0x3f8] ss:$20 sps:$4 sm:$0xff]  }
 0x6ea   :  { %10429 = vmatpush1.bf16.msra.mxu1 %v14242_v37  ;;  %10131 = vmatprep.subr.bf16.mxu0 %v14253_v39  ;;  %v14306_v37 = vld [vmem:[%s18704_s9 + $0xeb0] ss:$20 sps:$4 sm:$0xff]   ;;  %v14305_v39 = vld [vmem:[%s18704_s9 + $0x2b8] ss:$20 sps:$4 sm:$0xff]  }
 0x6eb   :  { %10430 = vmatprep.subr.bf16.mxu1 %v14250_v0  ;;  %v14313_v0 = vld [vmem:[%s18704_s9 + $0xedc] ss:$20 sps:$4 sm:$0xff]  }
 0x6ed   :  { %10132 = vmatpush1.bf16.msra.mxu0 %v14251_v58  ;;  %v14309_v58 = vld [vmem:[%s18704_s9 + $0x420] ss:$20 sps:$4 sm:$0xff]  }
 0x6ee   :  { %10431 = vmatpush1.bf16.msra.mxu1 %v14248_v42  ;;  %10133 = vmatprep.subr.bf16.mxu0 %v14259_v43  ;;  %v14311_v42 = vld [vmem:[%s18704_s9 + $0xed8] ss:$20 sps:$4 sm:$0xff]  }
 0x6ef   :  { %10432 = vmatprep.subr.bf16.mxu1 %v14256_v45  ;;  %v14318_v43 = vld [vmem:[%s18704_s9 + $0xf04] ss:$20 sps:$4 sm:$0xff]   ;;  %v14314_v45 = vld [vmem:[%s18704_s9 + $0x448] ss:$20 sps:$4 sm:$0xff]  }
 0x6f1   :  { %10134 = vmatpush1.bf16.msra.mxu0 %v14257_v46  ;;  %v14316_v46 = vld [vmem:[%s18704_s9 + $0xf00] ss:$20 sps:$4 sm:$0xff]  }
 0x6f2   :  { %10433 = vmatpush1.bf16.msra.mxu1 %v14254_v1  ;;  %10135 = vmatprep.subr.bf16.mxu0 %v14265_v10  ;;  %v14315_v1 = vld [vmem:[%s18704_s9 + $0x308] ss:$20 sps:$4 sm:$0xff]   ;;  %v14323_v10 = vld [vmem:[%s18704_s9 + $0xf2c] ss:$20 sps:$4 sm:$0xff]  }
 0x6f3   :  { %10434 = vmatprep.subr.bf16.mxu1 %v14262_v24  ;;  %v14319_v24 = vld [vmem:[%s18704_s9 + $0x470] ss:$20 sps:$4 sm:$0xff]  }
 0x6f5   :  { %10136 = vmatpush1.bf16.msra.mxu0 %v14263_v6  ;;  %v14321_v6 = vld [vmem:[%s18704_s9 + $0xf28] ss:$20 sps:$4 sm:$0xff]  }
 0x6f6   :  { %10435 = vmatpush1.bf16.msra.mxu1 %v14260_v47  ;;  %10137 = vmatprep.subr.bf16.mxu0 %v14271_v15  ;;  %v14320_v47 = vld [vmem:[%s18704_s9 + $0x330] ss:$20 sps:$4 sm:$0xff]  }
 0x6f7   :  { %10436 = vmatprep.subr.bf16.mxu1 %v14268_v26  ;;  %v14327_v15 = vld [vmem:[%s18704_s9 + $0x150] ss:$20 sps:$4 sm:$0xff]   ;;  %v14324_v26 = vld [vmem:[%s18704_s9 + $0x498] ss:$20 sps:$4 sm:$0xff]  }
 0x6f9   :  { %10138 = vmatpush1.bf16.msra.mxu0 %v14269_v32  ;;  %v14326_v32 = vld [vmem:[%s18704_s9 + $0x4c0] ss:$20 sps:$4 sm:$0xff]  }
 0x6fa   :  { %10437 = vmatpush1.bf16.msra.mxu1 %v14266_v49  ;;  %10139 = vmatprep.subr.bf16.mxu0 %v14277_v56  ;;  %v14329_v49 = vld [vmem:[%s18704_s9 + $0x10] ss:$20 sps:$4 sm:$0xff]   ;;  %v14328_v56 = vld [vmem:[%s18704_s9 + $0x380] ss:$20 sps:$4 sm:$0xff]  }
 0x6fb   :  { %10438 = vmatprep.subr.bf16.mxu1 %v14274_v29  ;;  %v14331_v29 = vld [vmem:[%s18704_s9 + $0x178] ss:$20 sps:$4 sm:$0xff]  }
 0x6fd   :  { %10140 = vmatpush1.bf16.msra.mxu0 %v14275_v5  ;;  %v14330_v5 = vld [vmem:[%s18704_s9 + $0x4e8] ss:$20 sps:$4 sm:$0xff]  }
 0x6fe   :  { %10439 = vmatpush1.bf16.msra.mxu1 %v14272_v57  ;;  %10141 = vmatprep.subr.bf16.mxu0 %v14283_v51  ;;  %v14333_v57 = vld [vmem:[%s18704_s9 + $0x38] ss:$20 sps:$4 sm:$0xff]   ;;  %v14332_v51 = vld [vmem:[%s18704_s9 + $0x3a8] ss:$20 sps:$4 sm:$0xff]  }
 0x6ff   :  { %10440 = vmatprep.subr.bf16.mxu1 %v14280_v50  ;;  %v14335_v50 = vld [vmem:[%s18704_s9 + $0x1a0] ss:$20 sps:$4 sm:$0xff]  }
 0x701   :  { %10142 = vmatpush1.bf16.msra.mxu0 %v14281_v20  ;;  %v14334_v20 = vld [vmem:[%s18704_s9 + $0x8d0] ss:$20 sps:$4 sm:$0xff]  }
 0x702   :  { %10441 = vmatpush1.bf16.msra.mxu1 %v14278_v44  ;;  %10143 = vmatprep.subr.bf16.mxu0 %v14286_v63  ;;  %v14336_v44 = vld [vmem:[%s18704_s9 + $0x790] ss:$20 sps:$4 sm:$0xff]   ;;  %v14338_v63 = vld [vmem:[%s18704_s9 + $0x8f8] ss:$20 sps:$4 sm:$0xff]  }
 0x703   :  { %10451 = vmatprep.subr.bf16.mxu1 %v14289_v7  ;;  %v14341_v7 = vld [vmem:[%s18704_s9 + $0x88] ss:$20 sps:$4 sm:$0xff]  }
 0x705   :  { %10443 = vmatmul.mubr.bf16.vlgmr.msra.gmra.mrb[32].mxu1 %v18304_v33  ;;  %10144 = vmatpush1.bf16.msra.mxu0 %v14284_v9  ;;  %v14340_v9 = vld [vmem:[%s18704_s9 + $0x7b8] ss:$20 sps:$4 sm:$0xff]  }
 0x706   :  { %10452 = vmatpush1.bf16.msra.mxu1 %v14287_v11  ;;  %10145 = vmatprep.subr.bf16.mxu0 %v14292_v2  ;;  %v14343_v11 = vld [vmem:[%s18704_s9 + $0x1f0] ss:$20 sps:$4 sm:$0xff]  }
 0x707   :  { %10453 = vmatprep.subr.bf16.mxu1 %v14295_v40  ;;  %10483 = vmatprep.mubr.bf16.mxu1 %v14435_v41  ;;  %v14345_v2 = vld [vmem:[%s18704_s9 + $0xb0] ss:$20 sps:$4 sm:$0xff]   ;;  %v14347_v40 = vld [vmem:[%s18704_s9 + $0x218] ss:$20 sps:$4 sm:$0xff]  }
 0x709   :  { %10146 = vmatpush1.bf16.msra.mxu0 %v14290_v13  ;;  %v14346_v13 = vld [vmem:[%s18704_s9 + $0x948] ss:$20 sps:$4 sm:$0xff]  }
 0x70a   :  { %10454 = vmatpush1.bf16.msra.mxu1 %v14293_v14  ;;  %10147 = vmatprep.subr.bf16.mxu0 %v14298_v23  ;;  %v14349_v14 = vld [vmem:[%s18704_s9 + $0xd8] ss:$20 sps:$4 sm:$0xff]   ;;  %v14348_v23 = vld [vmem:[%s18704_s9 + $0x808] ss:$20 sps:$4 sm:$0xff]  }
 0x70b   :  { %12265 = vmatprep.subr.bf16.mxu1 %v14299_v16  ;;  %v14351_v16 = vld [vmem:[%s18704_s9 + $0x240] ss:$20 sps:$4 sm:$0xff]  }
 0x70d   :  { %10148 = vmatpush1.bf16.msra.mxu0 %v14296_v17  ;;  %v14350_v17 = vld [vmem:[%s18704_s9 + $0x970] ss:$20 sps:$4 sm:$0xff]  }
 0x70e   :  { %10149 = vmatprep.subr.bf16.mxu0 %v14303_v30  ;;  %v14353_v30 = vld [vmem:[%s18704_s9 + $0x100] ss:$20 sps:$4 sm:$0xff]  }
 0x711   :  { %12132 = vmatmul.mubr.msk.bf16.vlgmr.msra.gmra.mrb[32].mxu1 %vm1245_vm5, %v18336_v35  ;;  %10150 = vmatpush1.bf16.msra.mxu0 %v14301_v22  ;;  %v14355_v22 = vld [vmem:[%s18704_s9 + $0x268] ss:$20 sps:$4 sm:$0xff]  }
 0x712   :  { %12266 = vmatpush3.bf16.msra.mxu1 %v14300_v54  ;;  %10564 = vmatprep.mubr.bf16.mxu1 %v17252_v36  ;;  %v14310_v36 = vld [vmem:[%s18704_s9 + $0x2e0] ss:$20 sps:$4 sm:$0xff]   ;;  %v14354_v54 = vld [vmem:[%s18704_s9 + $0x998] ss:$20 sps:$4 sm:$0xff]  }
 0x713   :  { %12267 = vmatprep.subr.bf16.mxu1 %v14304_v12  ;;  %10151 = vmatprep.subr.bf16.mxu0 %v14308_v27  ;;  %v14357_v12 = vld [vmem:[%s18704_s9 + $0x128] ss:$20 sps:$4 sm:$0xff]   ;;  %v14356_v27 = vld [vmem:[%s18704_s9 + $0x858] ss:$20 sps:$4 sm:$0xff]  }
 0x715   :  { %10152 = vmatpush1.bf16.msra.mxu0 %v14306_v37  ;;  %v14359_v37 = vld [vmem:[%s18704_s9 + $0x650] ss:$20 sps:$4 sm:$0xff]  }
 0x716   :  { %12268 = vmatpush3.bf16.msra.mxu1 %v14305_v39  ;;  %10153 = vmatprep.subr.bf16.mxu0 %v14313_v0  ;;  %v14358_v39 = vld [vmem:[%s18704_s9 + $0x9c0] ss:$20 sps:$4 sm:$0xff]   ;;  %v14361_v0 = vld [vmem:[%s18704_s9 + $0x510] ss:$20 sps:$4 sm:$0xff]  }
 0x717   :  { %12269 = vmatprep.subr.bf16.mxu1 %v14309_v58  ;;  %v14360_v58 = vld [vmem:[%s18704_s9 + $0x880] ss:$20 sps:$4 sm:$0xff]  }
 0x719   :  { %10154 = vmatpush1.bf16.msra.mxu0 %v14311_v42  ;;  %v14363_v42 = vld [vmem:[%s18704_s9 + $0x678] ss:$20 sps:$4 sm:$0xff]  }
 0x71a   :  { %12270 = vmatpush3.bf16.msra.mxu1 %v14310_v36  ;;  %10164 = vmatprep.subr.bf16.mxu0 %v14318_v43  ;;  %v14362_v36 = vld [vmem:[%s18704_s9 + $0x9e8] ss:$20 sps:$4 sm:$0xff]   ;;  %v14365_v43 = vld [vmem:[%s18704_s9 + $0x538] ss:$20 sps:$4 sm:$0xff]  }
 0x71b   :  { %12271 = vmatprep.subr.bf16.mxu1 %v14314_v45  ;;  %v14364_v45 = vld [vmem:[%s18704_s9 + $0x8a8] ss:$20 sps:$4 sm:$0xff]  }
 0x71c   :  { %10156 = vmatmul.mubr.bf16.vlgmr.msra.gmra.mrb[40].mxu0 %v18304_v33 }
 0x71d   :  { %10165 = vmatpush1.bf16.msra.mxu0 %v14316_v46  ;;  %10196 = vmatprep.mubr.bf16.mxu0 %v14435_v41  ;;  %v14325_v41 = vld [vmem:[%s18704_s9 + $0x358] ss:$20 sps:$4 sm:$0xff]   ;;  %v14367_v46 = vld [vmem:[%s18704_s9 + $0x6a0] ss:$20 sps:$4 sm:$0xff]  }
 0x71e   :  { %12272 = vmatpush3.bf16.msra.mxu1 %v14315_v1  ;;  %10166 = vmatprep.subr.bf16.mxu0 %v14323_v10  ;;  %v14368_v1 = vld [vmem:[%s18704_s9 + $0xc90] ss:$20 sps:$4 sm:$0xff]   ;;  %v14370_v10 = vld [vmem:[%s18704_s9 + $0xdf8] ss:$20 sps:$4 sm:$0xff]  }
 0x71f   :  { %12273 = vmatprep.subr.bf16.mxu1 %v14319_v24  ;;  %v14371_v24 = vld [vmem:[%s18704_s9 + $0x6c8] ss:$20 sps:$4 sm:$0xff]  }
 0x721   :  { %10167 = vmatpush1.bf16.msra.mxu0 %v14321_v6  ;;  %v14373_v6 = vld [vmem:[%s18704_s9 + $0x588] ss:$20 sps:$4 sm:$0xff]  }
 0x722   :  { %12274 = vmatpush3.bf16.msra.mxu1 %v14320_v47  ;;  %12243 = vmatprep.subr.bf16.mxu0 %v14327_v15  ;;  %v14372_v47 = vld [vmem:[%s18704_s9 + $0xcb8] ss:$20 sps:$4 sm:$0xff]   ;;  %v14375_v15 = vld [vmem:[%s18704_s9 + $0x6f0] ss:$20 sps:$4 sm:$0xff]  }
 0x723   :  { %12275 = vmatprep.subr.bf16.mxu1 %v14324_v26  ;;  %v14377_v26 = vld [vmem:[%s18704_s9 + $0x5b0] ss:$20 sps:$4 sm:$0xff]  }
 0x726   :  { %12276 = vmatpush3.bf16.msra.mxu1 %v14325_v41  ;;  %v14379_v41 = vld [vmem:[%s18704_s9 + $0x718] ss:$20 sps:$4 sm:$0xff]  }
 0x727   :  { %12277 = vmatprep.subr.bf16.mxu1 %v14326_v32  ;;  %v14378_v32 = vld [vmem:[%s18704_s9 + $0xe48] ss:$20 sps:$4 sm:$0xff]  }
 0x728   :  { %12131 = vmatmul.mubr.msk.bf16.vlgmr.msra.gmra.mrb[40].mxu0 %vm1245_vm5, %v18336_v35 }
 0x729   :  { %12244 = vmatpush3.bf16.msra.mxu0 %v14329_v49  ;;  %10524 = vmatprep.mubr.bf16.mxu0 %v17045_v59  ;;  %v14337_v59 = vld [vmem:[%s18704_s9 + $0x60] ss:$20 sps:$4 sm:$0xff]   ;;  %v14381_v49 = vld [vmem:[%s18704_s9 + $0x5d8] ss:$20 sps:$4 sm:$0xff]  }
 0x72a   :  { %12278 = vmatpush3.bf16.msra.mxu1 %v14328_v56  ;;  %12245 = vmatprep.subr.bf16.mxu0 %v14331_v29  ;;  %v14380_v56 = vld [vmem:[%s18704_s9 + $0xd08] ss:$20 sps:$4 sm:$0xff]   ;;  %v14383_v29 = vld [vmem:[%s18704_s9 + $0x740] ss:$20 sps:$4 sm:$0xff]  }
 0x72b   :  { %12279 = vmatprep.subr.bf16.mxu1 %v14330_v5  ;;  %v14382_v5 = vld [vmem:[%s18704_s9 + $0xe70] ss:$20 sps:$4 sm:$0xff]  }
 0x72d   :  { %12246 = vmatpush3.bf16.msra.mxu0 %v14333_v57  ;;  %v14385_v57 = vld [vmem:[%s18704_s9 + $0x600] ss:$20 sps:$4 sm:$0xff]  }
 0x72e   :  { %12280 = vmatpush3.bf16.msra.mxu1 %v14332_v51  ;;  %12247 = vmatprep.subr.bf16.mxu0 %v14335_v50  ;;  %v14384_v51 = vld [vmem:[%s18704_s9 + $0xd30] ss:$20 sps:$4 sm:$0xff]   ;;  %v14387_v50 = vld [vmem:[%s18704_s9 + $0x768] ss:$20 sps:$4 sm:$0xff]  }
 0x72f   :  { %12309 = vmatprep.subr.bf16.mxu1 %v14334_v20  ;;  %v14386_v20 = vld [vmem:[%s18704_s9 + $0xe98] ss:$20 sps:$4 sm:$0xff]  }
 0x731   :  { %10565 = vmatmul.mubr.bf16.vlgmr.msra.gmra.mrb[36].mxu1 %v17459_v60  ;;  %12248 = vmatpush3.bf16.msra.mxu0 %v14337_v59  ;;  %v14342_v60 = vld [vmem:[%s18704_s9 + $0x920] ss:$20 sps:$4 sm:$0xff]   ;;  %v14389_v59 = vld [vmem:[%s18704_s9 + $0x628] ss:$20 sps:$4 sm:$0xff]  }
 0x732   :  { %12310 = vmatpush3.bf16.msra.mxu1 %v14336_v44  ;;  %10644 = vmatprep.mubr.bf16.mxu1 %v17687_v52  ;;  %v14344_v52 = vld [vmem:[%s18704_s9 + $0x7e0] ss:$20 sps:$4 sm:$0xff]   ;;  %v14388_v44 = vld [vmem:[%s18704_s9 + $0xd58] ss:$20 sps:$4 sm:$0xff]  }
 0x733   :  { %12311 = vmatprep.subr.bf16.mxu1 %v14338_v63  ;;  %12249 = vmatprep.subr.bf16.mxu0 %v14339_v25  ;;  %v14391_v63 = vld [vmem:[%s18704_s9 + $0xb50] ss:$20 sps:$4 sm:$0xff]   ;;  %v14390_v25 = vld [vmem:[%s18704_s9 + $0xec0] ss:$20 sps:$4 sm:$0xff]  }
 0x735   :  { %12250 = vmatpush3.bf16.msra.mxu0 %v14341_v7  ;;  %v14393_v7 = vld [vmem:[%s18704_s9 + $0xa10] ss:$20 sps:$4 sm:$0xff]  }
 0x736   :  { %12312 = vmatpush3.bf16.msra.mxu1 %v14340_v9  ;;  %12251 = vmatprep.subr.bf16.mxu0 %v14343_v11  ;;  %v14392_v9 = vld [vmem:[%s18704_s9 + $0xd80] ss:$20 sps:$4 sm:$0xff]   ;;  %v14395_v11 = vld [vmem:[%s18704_s9 + $0xb78] ss:$20 sps:$4 sm:$0xff]  }
 0x737   :  { %12313 = vmatprep.subr.bf16.mxu1 %v14342_v60  ;;  %v14394_v60 = vld [vmem:[%s18704_s9 + $0xee8] ss:$20 sps:$4 sm:$0xff]  }
 0x739   :  { %12252 = vmatpush3.bf16.msra.mxu0 %v14345_v2  ;;  %v14397_v2 = vld [vmem:[%s18704_s9 + $0xa38] ss:$20 sps:$4 sm:$0xff]  }
 0x73a   :  { %12314 = vmatpush3.bf16.msra.mxu1 %v14344_v52  ;;  %12253 = vmatprep.subr.bf16.mxu0 %v14347_v40  ;;  %v14396_v52 = vld [vmem:[%s18704_s9 + $0xda8] ss:$20 sps:$4 sm:$0xff]   ;;  %v14398_v40 = vld [vmem:[%s18704_s9 + $0xba0] ss:$20 sps:$4 sm:$0xff]  }
 0x73b   :  { %12315 = vmatprep.subr.bf16.mxu1 %v14346_v13  ;;  %v14401_v13 = vld [vmem:[%s18704_s9 + $0xa88] ss:$20 sps:$4 sm:$0xff]  }
 0x73d   :  { %12254 = vmatpush3.bf16.msra.mxu0 %v14349_v14  ;;  %v14402_v14 = vld [vmem:[%s18704_s9 + $0xbf0] ss:$20 sps:$4 sm:$0xff]  }
 0x73e   :  { %12316 = vmatpush3.bf16.msra.mxu1 %v14348_v23  ;;  %12255 = vmatprep.subr.bf16.mxu0 %v14351_v16  ;;  %v14403_v23 = vld [vmem:[%s18704_s9 + $0xab0] ss:$20 sps:$4 sm:$0xff]   ;;  %v14405_v16 = vld [vmem:[%s18704_s9 + $0xad8] ss:$20 sps:$4 sm:$0xff]  }
 0x73f   :  { %12317 = vmatprep.subr.bf16.mxu1 %v14350_v17  ;;  %v14406_v17 = vld [vmem:[%s18704_s9 + $0xc40] ss:$20 sps:$4 sm:$0xff]  }
 0x741   :  { %12256 = vmatpush3.bf16.msra.mxu0 %v14353_v30  ;;  %v14407_v30 = vld [vmem:[%s18704_s9 + $0xb00] ss:$20 sps:$4 sm:$0xff]  }
 0x742   :  { %12318 = vmatpush3.bf16.msra.mxu1 %v14352_v18  ;;  %12257 = vmatprep.subr.bf16.mxu0 %v14355_v22  ;;  %v14408_v18 = vld [vmem:[%s18704_s9 + $0xc68] ss:$20 sps:$4 sm:$0xff]  }
 0x743   :  { %12319 = vmatprep.subr.bf16.mxu1 %v14354_v54  ;;  %v14409_v22 = vld [vmem:[%s18704_s9 + $0xb28] ss:$20 sps:$4 sm:$0xff]   ;;  %v14410_v54 = vld [vmem:[%s18704_s9 + $0xf10] ss:$20 sps:$4 sm:$0xff]  }
 0x745   :  { %12258 = vmatpush3.bf16.msra.mxu0 %v14357_v12  ;;  %v14411_v12 = vld [vmem:[%s18704_s9 + $0xf38] ss:$20 sps:$4 sm:$0xff]  }
 0x746   :  { %12320 = vmatpush3.bf16.msra.mxu1 %v14356_v27  ;;  %12287 = vmatprep.subr.bf16.mxu0 %v14359_v37  ;;  %v18677_v27 = vld [vmem:[%s18706_s10] sm:$0x1f] }
 0x747   :  { %12321 = vmatprep.subr.bf16.mxu1 %v14358_v39  ;;  %v7357_v37 = vrot.slane %v18677_v27, %v15218_v28  ;;  %v7349_v28 = vrot.slane %v18677_v27, %v14803_v55 }
 0x748   :  { %10525 = vmatmul.mubr.bf16.vlgmr.msra.gmra.mrb[44].mxu0 %v17247_v31  ;;  %v14366_v31 = vld [vmem:[%s18704_s9 + $0xdd0] ss:$20 sps:$4 sm:$0xff]  }
 0x749   :  { %12288 = vmatpush3.bf16.msra.mxu0 %v14361_v0  ;;  %10604 = vmatprep.mubr.bf16.mxu0 %v17464_v62  ;;  %v14369_v62 = vld [vmem:[%s18704_s9 + $0x560] ss:$20 sps:$4 sm:$0xff]  }
 0x74a   :  { %12322 = vmatpush3.bf16.msra.mxu1 %v14360_v58  ;;  %12289 = vmatprep.subr.bf16.mxu0 %v14363_v42 }
 0x74b   :  { %12323 = vmatprep.subr.bf16.mxu1 %v14362_v36 }
 0x74d   :  { %12290 = vmatpush3.bf16.msra.mxu0 %v14365_v43 }
 0x74e   :  { %12324 = vmatpush3.bf16.msra.mxu1 %v14364_v45  ;;  %12291 = vmatprep.subr.bf16.mxu0 %v14367_v46 }
 0x74f   :  { %12353 = vmatprep.subr.bf16.mxu1 %v14366_v31 }
 0x751   :  { %10645 = vmatmul.mubr.bf16.vlgmr.msra.gmra.mrb[40].mxu1 %v17896_v61  ;;  %12292 = vmatpush3.bf16.msra.mxu0 %v14369_v62  ;;  %v14374_v61 = vld [vmem:[%s18704_s9 + $0xe20] ss:$20 sps:$4 sm:$0xff]  }
 0x752   :  { %12354 = vmatpush3.bf16.msra.mxu1 %v14368_v1  ;;  %10724 = vmatprep.mubr.bf16.mxu1 %v18108_v8  ;;  %v14376_v8 = vld [vmem:[%s18704_s9 + $0xce0] ss:$20 sps:$4 sm:$0xff]  }
 0x753   :  { %12355 = vmatprep.subr.bf16.mxu1 %v14370_v10  ;;  %12293 = vmatprep.subr.bf16.mxu0 %v14371_v24 }
 0x755   :  { %12294 = vmatpush3.bf16.msra.mxu0 %v14373_v6 }
 0x756   :  { %12356 = vmatpush3.bf16.msra.mxu1 %v14372_v47  ;;  %12295 = vmatprep.subr.bf16.mxu0 %v14375_v15 }
 0x757   :  { %12357 = vmatprep.subr.bf16.mxu1 %v14374_v61 }
 0x759   :  { %12296 = vmatpush3.bf16.msra.mxu0 %v14377_v26 }
 0x75a   :  { %12358 = vmatpush3.bf16.msra.mxu1 %v14376_v8  ;;  %12297 = vmatprep.subr.bf16.mxu0 %v14379_v41 }
 0x75b   :  { %12359 = vmatprep.subr.bf16.mxu1 %v14378_v32 }
 0x75d   :  { %12298 = vmatpush3.bf16.msra.mxu0 %v14381_v49 }
 0x75e   :  { %12360 = vmatpush3.bf16.msra.mxu1 %v14380_v56  ;;  %12299 = vmatprep.subr.bf16.mxu0 %v14383_v29 }
 0x75f   :  { %12361 = vmatprep.subr.bf16.mxu1 %v14382_v5 }
 0x761   :  { %12300 = vmatpush3.bf16.msra.mxu0 %v14385_v57 }
 0x762   :  { %12362 = vmatpush3.bf16.msra.mxu1 %v14384_v51  ;;  %12301 = vmatprep.subr.bf16.mxu0 %v14387_v50 }
 0x763   :  { %12363 = vmatprep.subr.bf16.mxu1 %v14386_v20  ;;  %v14436_v20 = vmov 1983009808  }
 0x765   :  { %12302 = vmatpush3.bf16.msra.mxu0 %v14389_v59  ;;  %v10810_v59 = vunpack.c.l.s4 %v14436_v20 }
 0x766   :  { %12364 = vmatpush3.bf16.msra.mxu1 %v14388_v44  ;;  %12331 = vmatprep.subr.bf16.mxu0 %v14391_v63 }
 0x767   :  { %12365 = vmatprep.subr.bf16.mxu1 %v14390_v25  ;;  %v10811_v44 = vunpack.c.0.s8 %v10810_v59 }
 0x768   :  { %10605 = vmatmul.mubr.bf16.vlgmr.msra.gmra.mrb[48].mxu0 %v17679_v48  ;;  %v14399_v48 = vld [vmem:[%s18704_s9 + $0xa60] ss:$20 sps:$4 sm:$0xff]  }
 0x769   :  { %12332 = vmatpush3.bf16.msra.mxu0 %v14393_v7  ;;  %10684 = vmatprep.mubr.bf16.mxu0 %v17904_v38  ;;  %v14400_v38 = vld [vmem:[%s18704_s9 + $0xbc8] ss:$20 sps:$4 sm:$0xff]   ;;  %v10814_v25 = vsub.s32 %v10811_v44, %v14549_v21 }
 0x76a   :  { %12366 = vmatpush3.bf16.msra.mxu1 %v14392_v9  ;;  %12333 = vmatprep.subr.bf16.mxu0 %v14395_v11 }
 0x76b   :  { %12367 = vmatprep.subr.bf16.mxu1 %v14394_v60 }
 0x76d   :  { %12334 = vmatpush3.bf16.msra.mxu0 %v14397_v2 }
 0x76e   :  { %12368 = vmatpush3.bf16.msra.mxu1 %v14396_v52  ;;  %12335 = vmatprep.subr.bf16.mxu0 %v14398_v40  ;;  %v7361_v52 = vrot.slane %v18677_v27, %v15606_v34 }
 0x771   :  { %10725 = vmatmul.mubr.bf16.vlgmr.msra.gmra.mrb[44].mxu1 %v18304_v33  ;;  %12336 = vmatpush3.bf16.msra.mxu0 %v14399_v48  ;;  %v14404_v33 = vld [vmem:[%s18704_s9 + $0xc18] ss:$20 sps:$4 sm:$0xff]  }
 0x772   :  { %12337 = vmatprep.subr.bf16.mxu0 %v14400_v38 }
 0x775   :  { %12338 = vmatpush3.bf16.msra.mxu0 %v14401_v13 }
 0x776   :  { %12339 = vmatprep.subr.bf16.mxu0 %v14402_v14 }
 0x779   :  { %12340 = vmatpush3.bf16.msra.mxu0 %v14403_v23 }
 0x77a   :  { %12341 = vmatprep.subr.bf16.mxu0 %v14404_v33 }
 0x77d   :  { %12342 = vmatpush3.bf16.msra.mxu0 %v14405_v16 }
 0x77e   :  { %12343 = vmatprep.subr.bf16.mxu0 %v14406_v17 }
 0x781   :  { %12344 = vmatpush3.bf16.msra.mxu0 %v14407_v30 }
 0x782   :  { %12345 = vmatprep.subr.bf16.mxu0 %v14408_v18 }
 0x785   :  { %12346 = vmatpush3.bf16.msra.mxu0 %v14409_v22 }
 0x786   :  { %12417 = vmatprep.subr.bf16.mxu0 %v14433_v4 }
 0x788   :  { %10685 = vmatmul.mubr.bf16.vlgmr.msra.gmra.mrb[52].mxu0 %v18100_v19  ;;  %v7353_v19 = vrot.slane %v18677_v27, %v14808_v3  ;;  %v7345_v3 = vrot.slane %v18677_v27, %v14797_v53 }
 0x789   :  { %12418 = vmatpush3.bf16.msra.mxu0 %v14410_v54  ;;  %12421 = vmatprep.mubr.msk.bf16.mxu0 %vm14434_vm2, %v14433_v4 }
 0x78a   :  { %12419 = vmatprep.subr.bf16.mxu0 %v14433_v4 }
 0x78d   :  { %12420 = vmatpush3.bf16.msra.mxu0 %v14411_v12 }
 0x790   :  { %12422 = vmatmul.mubr.msk.bf16.vlgmr.msra.gmra.mrb[56].mxu0 %vm1245_vm5, %v18336_v35 }
 0x7e4   :  { %v10485_v39 = vpop.f32.mrb[32].mxu1 }
 0x7e5   :  { %v12445_v0 = vadd.f32 %v10485_v39, %v7353_v19  ;;  %v10487_v58 = vpop.f32.mrb[33].mxu1 }
 0x7e6   :  { %v12446_v42 = vadd.f32 %v10487_v58, %v7357_v37  ;;  %v10489_v4 = vpop.f32.mrb[34].mxu1 }
 0x7e7   :  { %v12136_v36 = vmul.f32 -1.442695, %v12445_v0  ;;  %v10490_v43 = vpop.f32.mrb[35].mxu1 }
 0x7e8   :  { %v12137_v45 = vmul.f32 -1.442695, %v12446_v42 }
 0x7e9   :  { %14412 = vpow2.f32 %v12136_v36 }
 0x7ea   :  { %14414 = vpow2.f32 %v12137_v45 }
 0x7f3   :  { %v14413_v35 = vpop.eup %14412 }
 0x7f4   :  { %v14415_v46 = vpop.eup %14414  ;;  %v10789_v31 = vadd.f32 1.0, %v14413_v35 }
 0x7f5   :  { %v10790_v62 = vadd.f32 1.0, %v14415_v46 }
 0x7f6   :  { %14416 = vrcp.f32 %v10789_v31 }
 0x7f7   :  { %14418 = vrcp.f32 %v10790_v62 }
 0x7fb   :  { %v10198_v1 = vpop.f32.mrb[40].mxu0 }
 0x7fc   :  { %v12443_v10 = vadd.f32 %v10198_v1, %v7345_v3  ;;  %v10200_v24 = vpop.f32.mrb[41].mxu0 }
 0x7fd   :  { %v12444_v6 = vadd.f32 %v10200_v24, %v7349_v28  ;;  %v10202_v47 = vpop.f32.mrb[42].mxu0 }
 0x7fe   :  { %v12134_v15 = vmul.f32 -1.442695, %v12443_v10  ;;  %v10203_v61 = vpop.f32.mrb[43].mxu0 }
 0x7ff   :  { %v12135_v26 = vmul.f32 -1.442695, %v12444_v6 }
 0x800   :  { %v14417_v8 = vpop.eup %14416  ;;  %14420 = vpow2.f32 %v12134_v15 }
 0x801   :  { %v14419_v41 = vpop.eup %14418  ;;  %14422 = vpow2.f32 %v12135_v26 }
 0x802   :  { %v10808_v32 = vcombine.low %v14417_v8, %v14419_v41 }
 0x804   :  { %v12281_v49 = vpop.f32.mrb[36].mxu1  ;;  %v10822_v11 = vrot.slane %v10808_v32, %v10814_v25 }
 0x805   :  { %v12282_v56 = vpop.f32.mrb[37].mxu1 }
 0x806   :  { %v12283_v29 = vadd.f32 %v12282_v56, %v12281_v49  ;;  %v12284_v53 = vpop.f32.mrb[38].mxu1 }
 0x807   :  { %v12285_v5 = vpop.f32.mrb[39].mxu1 }
 0x80a   :  { %v14421_v57 = vpop.eup %14420 }
 0x80b   :  { %v14423_v55 = vpop.eup %14422  ;;  %v10787_v51 = vadd.f32 1.0, %v14421_v57 }
 0x80c   :  { %v10788_v50 = vadd.f32 1.0, %v14423_v55 }
 0x80d   :  { %14424 = vrcp.f32 %v10787_v51 }
 0x80e   :  { %14426 = vrcp.f32 %v10788_v50 }
 0x817   :  { %v14425_v63 = vpop.eup %14424 }
 0x818   :  { %v14427_v7 = vpop.eup %14426 }
 0x819   :  { %v10807_v9 = vcombine.low %v14425_v63, %v14427_v7 }
 0x81b   :  { %v10815_v60 = vrot.slane %v10807_v9, %v10814_v25  ;;  %v12259_v2 = vpop.f32.mrb[44].mxu0 }
 0x81c   :  { %v12260_v40 = vpop.f32.mrb[45].mxu0 }
 0x81d   :  { %v10823_v48 = vcombine.low %v10815_v60, %v10822_v11  ;;  %v12261_v38 = vadd.f32 %v12260_v40, %v12259_v2  ;;  %v12262_v13 = vpop.f32.mrb[46].mxu0 }
 0x81e   :  { %v12263_v14 = vpop.f32.mrb[47].mxu0 }
 0x81f   :  { %10833 = vst [vmem:[%s18707_s11] sm:$0xff] %v10823_v48  ;;  %v10527_v23 = vadd.f32 %v12261_v38, %v7361_v52 }
 0x821   :  { %v10567_v33 = vadd.f32 %v12283_v29, %v10527_v23 }
 0x824   :  { %v12325_v21 = vpop.f32.mrb[40].mxu1 }
 0x825   :  { %v12326_v16 = vpop.f32.mrb[41].mxu1 }
 0x826   :  { %v12327_v17 = vadd.f32 %v12326_v16, %v12325_v21  ;;  %v12328_v30 = vpop.f32.mrb[42].mxu1 }
 0x827   :  { %v12329_v18 = vpop.f32.mrb[43].mxu1 }
 0x83b   :  { %v12303_v22 = vpop.f32.mrb[48].mxu0 }
 0x83c   :  { %v12304_v54 = vpop.f32.mrb[49].mxu0 }
 0x83d   :  { %v12305_v12 = vadd.f32 %v12304_v54, %v12303_v22  ;;  %v12306_v34 = vpop.f32.mrb[50].mxu0 }
 0x83e   :  { %v12307_v27 = vpop.f32.mrb[51].mxu0 }
 0x83f   :  { %v10607_v19 = vadd.f32 %v12305_v12, %v10567_v33 }
 0x841   :  { %v10647_v37 = vadd.f32 %v12327_v17, %v10607_v19 }
 0x844   :  { %v12369_v39 = vpop.f32.mrb[44].mxu1 }
 0x845   :  { %v12370_v0 = vpop.f32.mrb[45].mxu1 }
 0x846   :  { %v12371_v58 = vadd.f32 %v12370_v0, %v12369_v39  ;;  %v12372_v42 = vpop.f32.mrb[46].mxu1 }
 0x847   :  { %v12373_v4 = vpop.f32.mrb[47].mxu1 }
 0x85b   :  { %v12347_v36 = vpop.f32.mrb[52].mxu0 }
 0x85c   :  { %v12348_v43 = vpop.f32.mrb[53].mxu0 }
 0x85d   :  { %v12349_v45 = vadd.f32 %v12348_v43, %v12347_v36  ;;  %v12350_v35 = vpop.f32.mrb[54].mxu0 }
 0x85e   :  { %v12351_v46 = vpop.f32.mrb[55].mxu0 }
 0x85f   :  { %v10687_v31 = vadd.f32 %v12349_v45, %v10647_v37 }
 0x861   :  { %v10727_v62 = vadd.f32 %v12371_v58, %v10687_v31 }
 0x863   :  { %v10766_v3 = vpop.f32.mrb[56].mxu0 }
 0x864   :  { %v10767_v28 = vadd.f32 %v10766_v3, %v10727_v62  ;;  %v12423_v1 = vpop.f32.mrb[57].mxu0 }
 0x865   :  { %v10769_v10 = vpop.f32.mrb[58].mxu0 }
 0x866   :  { %v12138_v24 = vmul.f32 -1.442695, %v10767_v28  ;;  %v12424_v6 = vpop.f32.mrb[59].mxu0 }
 0x868   :  { %14428 = vpow2.f32 %v12138_v24 }
 0x872   :  { %v14429_v47 = vpop.eup %14428 }
 0x873   :  { %v10791_v15 = vadd.f32 1.0, %v14429_v47 }
 0x875   :  { %14430 = vrcp.f32 %v10791_v15 }
 0x87f   :  { %v14431_v61 = vpop.eup %14430 }
 0x880   :  { %v10830_v26 = vrot.slane %v14431_v61, %v10814_v25 }
 0x882   :  { %10835 = vst.msk [vmem:[%s18707_s11 + $0x8] sm:$0x3] %vm10834_vm7, %v10830_v26 }

</bundles_post_ra>
